<compile_context>
chip_gen: v7x
topology: tpu7x:2x2x1
jax: 0.10.0
libtpu: 0.0.40
codegen_flags: <defaults>
</compile_context>

<pallas_src>
import functools

import jax
import jax.numpy as jnp
import numpy as np
from jax import lax
from jax.experimental import pallas as pl
from jax.experimental.pallas import tpu as pltpu

EPS = 1e-5
NEG_SLOPE = 0.01     # nn.LeakyReLU() default
_W_OFF = 8           # sublane-aligned offset of the conv interior inside the padded
                     # VMEM scratch (left zero-pad column lives at _W_OFF - 1)


# ---------------------------------------------------------------------------
# Fused UpBlock kernel: one grid step == one image.
# ---------------------------------------------------------------------------
def _up_block_kernel(h, w,
                     x1_ref, x2_ref, w1x1_ref, b1x1_ref, upT_ref,
                     w1a_ref, w1b_ref, s1_ref, t1_ref,
                     w2_ref, s2_ref, t2_ref,
                     out_ref, padA_ref, padB_ref, padC_ref):
    # x1_ref : (1, C1, H1*W1)   deep features, channel-first, spatial flattened
    # x2_ref : (1, C2, H*W)     skip features
    # w1x1   : (C2, C1), b1x1: (C2, 1)
    # upT    : (H1*W1, H*W)     bilinear (align_corners=True) interpolation matrix^T
    # w1a/w1b: (9, C2, Cout)    conv1 taps for the skip / upsampled channel groups
    # w2     : (9, Cout, Cout)  conv2 taps
    # s*/t*  : (1, Cout)        folded BatchNorm scale / bias
    # out_ref: (1, Cout, H*W)   lane-dense channel-first output
    # pad*   : VMEM scratch (H+2, W + 2*_W_OFF, C) zero-padded conv inputs
    c2 = x2_ref.shape[1]
    cout = out_ref.shape[1]
    hw = h * w

    # ---- conv1x1 on x1 (channel-first, one MXU matmul) ----------------------
    y = jnp.dot(w1x1_ref[...], x1_ref[0],
                preferred_element_type=jnp.float32) + b1x1_ref[...]      # (C2, H1*W1)

    # ---- bilinear x2 upsample (align_corners=True) as one MXU matmul --------
    y = jnp.dot(y, upT_ref[...], preferred_element_type=jnp.float32)     # (C2, H*W)

    # channels-last spatial views of the two concat branches (skip first).
    x2_hwc = x2_ref[0].T.reshape(h, w, c2)                                # (H, W, C2)
    up_hwc = y.T.reshape(h, w, c2)                                        # (H, W, C2)

    def conv3x3_accum(pad_ref, x_hwc, w_taps_ref, acc):
        """acc += conv3x3(x_hwc, padding=1) via a zero-padded VMEM scratch."""
        cin = x_hwc.shape[-1]
        pad_ref[...] = jnp.zeros(pad_ref.shape, pad_ref.dtype)            # zero pad
        pad_ref[pl.ds(1, h), pl.ds(_W_OFF, w), :] = x_hwc                 # aligned store
        for dy in range(3):
            for dx in range(3):
                patch = pad_ref[pl.ds(dy, h), pl.ds(_W_OFF - 1 + dx, w), :]  # (H, W, cin)
                acc = acc + jnp.dot(patch.reshape(hw, cin),
                                    w_taps_ref[dy * 3 + dx],
                                    preferred_element_type=jnp.float32)
        return acc

    # ---- conv1 + folded BN + LeakyReLU; concat eliminated algebraically -----
    acc = jnp.zeros((hw, cout), jnp.float32)
    acc = conv3x3_accum(padA_ref, x2_hwc, w1a_ref, acc)   # input channels [0, C2)   = skip
    acc = conv3x3_accum(padB_ref, up_hwc, w1b_ref, acc)   # input channels [C2, 2C2) = upsampled
    z = acc * s1_ref[...] + t1_ref[...]
    z = jnp.where(z > 0, z, NEG_SLOPE * z)                                # (H*W, Cout)

    # Dropout(p): identity in inference mode.

    # ---- conv2 + folded BN + LeakyReLU ---------------------------------------
    acc2 = jnp.zeros((hw, cout), jnp.float32)
    acc2 = conv3x3_accum(padC_ref, z.reshape(h, w, cout), w2_ref, acc2)
    z2 = acc2 * s2_ref[...] + t2_ref[...]
    z2 = jnp.where(z2 > 0, z2, NEG_SLOPE * z2)                            # (H*W, Cout)

    # lane-dense (H*W lanes) channel-first store -> NCHW for free in the wrapper.
    out_ref[0] = z2.T.astype(out_ref.dtype)                               # (Cout, H*W)


# ---------------------------------------------------------------------------
# Weight preprocessing helpers (tiny, run inside the same jit).
# ---------------------------------------------------------------------------
def _axis_weights(out_n, in_n):
    """1-D align_corners=True linear interpolation matrix (out_n, in_n)."""
    if in_n == 1:
        return np.ones((out_n, 1), np.float32)
    src = np.arange(out_n, dtype=np.float32) * (in_n - 1) / (out_n - 1)
    i0 = np.clip(np.floor(src).astype(np.int64), 0, in_n - 2)
    frac = (src - i0).astype(np.float32)
    a = np.zeros((out_n, in_n), np.float32)
    a[np.arange(out_n), i0] += 1.0 - frac
    a[np.arange(out_n), i0 + 1] += frac
    return a


def _bilinear_matrix_t(h1, w1, h2, w2):
    """Returns U^T (H1*W1, H2*W2) so that up(x)[c] = x_flat[c] @ U^T."""
    u = np.kron(_axis_weights(h2, h1), _axis_weights(w2, w1))   # (H2*W2, H1*W1)
    return jnp.asarray(u.T)


def _conv_w_to_taps(w_oihw):
    """(Cout, Cin, 3, 3) OIHW -> (9, Cin, Cout), tap index = dy*3 + dx."""
    co, ci = w_oihw.shape[0], w_oihw.shape[1]
    return jnp.transpose(w_oihw, (2, 3, 1, 0)).reshape(9, ci, co)


def _fold_bn(gamma, beta, mean, var, conv_bias):
    s = gamma / jnp.sqrt(var + EPS)
    t = beta + s * (conv_bias - mean)
    return s.reshape(1, -1).astype(jnp.float32), t.reshape(1, -1).astype(jnp.float32)


# ---------------------------------------------------------------------------
# Wrapper: NCHW in -> NCHW out, single pallas_call, only free reshapes outside.
# ---------------------------------------------------------------------------
def up_block_forward(x1_nchw, x2_nchw, params):
    n, c1, h1, w1 = x1_nchw.shape
    n2, c2, h2, w2 = x2_nchw.shape
    assert n2 == n and h2 == 2 * h1 and w2 == 2 * w1
    cout = params["wc1"].shape[0]
    hw1, hw2 = h1 * w1, h2 * w2

    w1x1 = params["w1x1"].reshape(c2, c1)
    b1x1 = params["b1x1"].reshape(c2, 1)
    upT = _bilinear_matrix_t(h1, w1, h2, w2)
    w1a = _conv_w_to_taps(params["wc1"][:, :c2])      # skip (x2) input channels
    w1b = _conv_w_to_taps(params["wc1"][:, c2:])      # upsampled (x1) input channels
    s1, t1 = _fold_bn(params["g1"], params["be1"], params["m1"], params["v1"], params["bc1"])
    w2t = _conv_w_to_taps(params["wc2"])
    s2, t2 = _fold_bn(params["g2"], params["be2"], params["m2"], params["v2"], params["bc2"])

    # Free row-major collapses (no data movement, no wrapper transposes).
    x1f = x1_nchw.reshape(n, c1, hw1)
    x2f = x2_nchw.reshape(n, c2, hw2)

    wpad = w2 + 2 * _W_OFF
    kernel = functools.partial(_up_block_kernel, h2, w2)

    out = pl.pallas_call(
        kernel,
        out_shape=jax.ShapeDtypeStruct((n, cout, hw2), x1_nchw.dtype),
        grid=(n,),
        in_specs=[
            pl.BlockSpec((1, c1, hw1), lambda i: (i, 0, 0)),
            pl.BlockSpec((1, c2, hw2), lambda i: (i, 0, 0)),
            pl.BlockSpec((c2, c1), lambda i: (0, 0)),
            pl.BlockSpec((c2, 1), lambda i: (0, 0)),
            pl.BlockSpec((hw1, hw2), lambda i: (0, 0)),
            pl.BlockSpec((9, c2, cout), lambda i: (0, 0, 0)),
            pl.BlockSpec((9, c2, cout), lambda i: (0, 0, 0)),
            pl.BlockSpec((1, cout), lambda i: (0, 0)),
            pl.BlockSpec((1, cout), lambda i: (0, 0)),
            pl.BlockSpec((9, cout, cout), lambda i: (0, 0, 0)),
            pl.BlockSpec((1, cout), lambda i: (0, 0)),
            pl.BlockSpec((1, cout), lambda i: (0, 0)),
        ],
        out_specs=pl.BlockSpec((1, cout, hw2), lambda i: (i, 0, 0)),
        scratch_shapes=[
            pltpu.VMEM((h2 + 2, wpad, c2), jnp.float32),    # conv1, skip branch
            pltpu.VMEM((h2 + 2, wpad, c2), jnp.float32),    # conv1, upsampled branch
            pltpu.VMEM((h2 + 2, wpad, cout), jnp.float32),  # conv2 input
        ],
        compiler_params=pltpu.CompilerParams(
            dimension_semantics=("parallel",)),
    )(x1f, x2f, w1x1, b1x1, upT, w1a, w1b, s1, t1, w2t, s2, t2)

    return out.reshape(n, cout, h2, w2)        # free reshape back to NCHW


# ---------------------------------------------------------------------------
# Deterministic synthetic parameters.
# ---------------------------------------------------------------------------
def make_params(key, c1, c2, cout):
    ks = jax.random.split(key, 14)
    f32 = jnp.float32
    return dict(
        w1x1=0.2 * jax.random.normal(ks[0], (c2, c1, 1, 1), f32),
        b1x1=0.1 * jax.random.normal(ks[1], (c2,), f32),
        wc1=0.1 * jax.random.normal(ks[2], (cout, 2 * c2, 3, 3), f32),
        bc1=0.1 * jax.random.normal(ks[3], (cout,), f32),
        g1=1.0 + 0.1 * jax.random.normal(ks[4], (cout,), f32),
        be1=0.1 * jax.random.normal(ks[5], (cout,), f32),
        m1=0.1 * jax.random.normal(ks[6], (cout,), f32),
        v1=jax.random.uniform(ks[7], (cout,), f32, 0.5, 1.5),
        wc2=0.1 * jax.random.normal(ks[8], (cout, cout, 3, 3), f32),
        bc2=0.1 * jax.random.normal(ks[9], (cout,), f32),
        g2=1.0 + 0.1 * jax.random.normal(ks[10], (cout,), f32),
        be2=0.1 * jax.random.normal(ks[11], (cout,), f32),
        m2=0.1 * jax.random.normal(ks[12], (cout,), f32),
        v2=jax.random.uniform(ks[13], (cout,), f32, 0.5, 1.5),
    )


# ---------------------------------------------------------------------------
# Pure-JAX reference (NCHW, PyTorch eval-mode semantics).
# ---------------------------------------------------------------------------
def _ref_bilinear_up2_align_corners(x):
    n, c, h, w = x.shape
    H, W = 2 * h, 2 * w

    def idx(out_n, in_n):
        src = jnp.arange(out_n, dtype=jnp.float32) * (in_n - 1) / (out_n - 1)
        i0 = jnp.clip(jnp.floor(src).astype(jnp.int32), 0, in_n - 2)
        return i0, src - i0.astype(jnp.float32)

    y0, fy = idx(H, h)
    x0, fx = idx(W, w)
    top = x[:, :, y0, :]
    bot = x[:, :, y0 + 1, :]
    rows = top * (1.0 - fy)[None, None, :, None] + bot * fy[None, None, :, None]
    left = rows[:, :, :, x0]
    right = rows[:, :, :, x0 + 1]
    return left * (1.0 - fx)[None, None, None, :] + right * fx[None, None, None, :]


def ref_forward(x1, x2, p):
    y = lax.conv_general_dilated(x1, p["w1x1"], (1, 1), ((0, 0), (0, 0)),
                                 dimension_numbers=("NCHW", "OIHW", "NCHW"),
                                 precision=lax.Precision.HIGHEST)
    y = y + p["b1x1"][None, :, None, None]
    y = _ref_bilinear_up2_align_corners(y)
    z = jnp.concatenate([x2, y], axis=1)

    def cbr(z, w, b, g, bt, m, v):
        z = lax.conv_general_dilated(z, w, (1, 1), ((1, 1), (1, 1)),
                                     dimension_numbers=("NCHW", "OIHW", "NCHW"),
                                     precision=lax.Precision.HIGHEST)
        z = z + b[None, :, None, None]
        z = ((z - m[None, :, None, None]) /
             jnp.sqrt(v[None, :, None, None] + EPS) *
             g[None, :, None, None] + bt[None, :, None, None])
        return jnp.where(z > 0, z, NEG_SLOPE * z)

    z = cbr(z, p["wc1"], p["bc1"], p["g1"], p["be1"], p["m1"], p["v1"])
    z = cbr(z, p["wc2"], p["bc2"], p["g2"], p["be2"], p["m2"], p["v2"])
    return z


if __name__ == "__main__":
    in_channels1, in_channels2, out_channels, dropout_p = 8, 4, 8, 0.1

    key = jax.random.PRNGKey(0)
    k1, k2, kp = jax.random.split(key, 3)
    x1 = jax.random.normal(k1, (2, in_channels1, 8, 8), jnp.float32)      # deep features
    x2 = jax.random.normal(k2, (2, in_channels2, 16, 16), jnp.float32)    # skip features
    params = make_params(kp, in_channels1, in_channels2, out_channels)

    fwd = jax.jit(up_block_forward)
    out = jax.block_until_ready(fwd(x1, x2, params))
    assert out.shape == (2, out_channels, 16, 16), out.shape

    ref = jax.block_until_ready(ref_forward(x1, x2, params))
    err = float(jnp.max(jnp.abs(out - ref)))
    assert jnp.allclose(out, ref, atol=2e-3, rtol=2e-3), err

    print("KERNEL_OK")
</pallas_src>

<mosaic_0001>
module attributes {stable_mosaic.version = 11 : i64} {
  func.func @_up_block_kernel(%arg0: i32, %arg1: memref<1x8x64xf32, #tpu.memory_space<vmem>>, %arg2: memref<1x4x256xf32, #tpu.memory_space<vmem>>, %arg3: memref<4x8xf32, #tpu.memory_space<vmem>>, %arg4: memref<4x1xf32, #tpu.memory_space<vmem>>, %arg5: memref<64x256xf32, #tpu.memory_space<vmem>>, %arg6: memref<9x4x8xf32, #tpu.memory_space<vmem>>, %arg7: memref<9x4x8xf32, #tpu.memory_space<vmem>>, %arg8: memref<1x8xf32, #tpu.memory_space<vmem>>, %arg9: memref<1x8xf32, #tpu.memory_space<vmem>>, %arg10: memref<9x8x8xf32, #tpu.memory_space<vmem>>, %arg11: memref<1x8xf32, #tpu.memory_space<vmem>>, %arg12: memref<1x8xf32, #tpu.memory_space<vmem>>, %arg13: memref<1x8x256xf32, #tpu.memory_space<vmem>>, %arg14: memref<18x32x4xf32, #tpu.memory_space<vmem>>, %arg15: memref<18x32x4xf32, #tpu.memory_space<vmem>>, %arg16: memref<18x32x8xf32, #tpu.memory_space<vmem>>) attributes {dimension_semantics = [#tpu.dimension_semantics<parallel>], iteration_bounds = array<i64: 2>, scalar_prefetch = 0 : i64, scratch_operands = 3 : i64, tpu.core_type = #tpu.core_type<tc>, window_params = [{transform_indices = @transform_0, window_bounds = array<i64: 1, 8, 64>}, {transform_indices = @transform_1, window_bounds = array<i64: 1, 4, 256>}, {pipeline_mode = #tpu.pipeline_mode<synchronous>, transform_indices = @transform_2, window_bounds = array<i64: 4, 8>}, {pipeline_mode = #tpu.pipeline_mode<synchronous>, transform_indices = @transform_3, window_bounds = array<i64: 4, 1>}, {pipeline_mode = #tpu.pipeline_mode<synchronous>, transform_indices = @transform_4, window_bounds = array<i64: 64, 256>}, {pipeline_mode = #tpu.pipeline_mode<synchronous>, transform_indices = @transform_5, window_bounds = array<i64: 9, 4, 8>}, {pipeline_mode = #tpu.pipeline_mode<synchronous>, transform_indices = @transform_6, window_bounds = array<i64: 9, 4, 8>}, {pipeline_mode = #tpu.pipeline_mode<synchronous>, transform_indices = @transform_7, window_bounds = array<i64: 1, 8>}, {pipeline_mode = #tpu.pipeline_mode<synchronous>, transform_indices = @transform_8, window_bounds = array<i64: 1, 8>}, {pipeline_mode = #tpu.pipeline_mode<synchronous>, transform_indices = @transform_9, window_bounds = array<i64: 9, 8, 8>}, {pipeline_mode = #tpu.pipeline_mode<synchronous>, transform_indices = @transform_10, window_bounds = array<i64: 1, 8>}, {pipeline_mode = #tpu.pipeline_mode<synchronous>, transform_indices = @transform_11, window_bounds = array<i64: 1, 8>}, {transform_indices = @transform_12, window_bounds = array<i64: 1, 8, 256>}]} {
    %c0 = arith.constant 0 : index
    %c0_0 = arith.constant 0 : index
    %0 = vector.load %arg3[%c0, %c0_0] : memref<4x8xf32, #tpu.memory_space<vmem>>, vector<4x8xf32>
    %c0_1 = arith.constant 0 : index
    %c0_2 = arith.constant 0 : index
    %c0_3 = arith.constant 0 : index
    %1 = vector.load %arg1[%c0_1, %c0_2, %c0_3] : memref<1x8x64xf32, #tpu.memory_space<vmem>>, vector<1x8x64xf32>
    %2 = vector.shape_cast %1 : vector<1x8x64xf32> to vector<8x64xf32>
    %cst = arith.constant dense<0.000000e+00> : vector<4x64xf32>
    %3 = tpu.matmul %0, %2, %cst {dimension_numbers = #tpu.dot_dimension_numbers<[1], [0], [0], [1], [0, 0, 1, 1], [], []>} : vector<4x8xf32>, vector<8x64xf32>, vector<4x64xf32> -> vector<4x64xf32>
    %c0_4 = arith.constant 0 : index
    %c0_5 = arith.constant 0 : index
    %4 = vector.load %arg4[%c0_4, %c0_5] : memref<4x1xf32, #tpu.memory_space<vmem>>, vector<4x1xf32>
    %5 = vector.broadcast %4 : vector<4x1xf32> to vector<4x64xf32>
    %6 = arith.addf %3, %5 : vector<4x64xf32>
    %c0_6 = arith.constant 0 : index
    %c0_7 = arith.constant 0 : index
    %7 = vector.load %arg5[%c0_6, %c0_7] : memref<64x256xf32, #tpu.memory_space<vmem>>, vector<64x256xf32>
    %cst_8 = arith.constant dense<0.000000e+00> : vector<4x256xf32>
    %8 = tpu.matmul %6, %7, %cst_8 {dimension_numbers = #tpu.dot_dimension_numbers<[1], [0], [0], [1], [0, 0, 1, 1], [], []>} : vector<4x64xf32>, vector<64x256xf32>, vector<4x256xf32> -> vector<4x256xf32>
    %c0_9 = arith.constant 0 : index
    %c0_10 = arith.constant 0 : index
    %c0_11 = arith.constant 0 : index
    %9 = vector.load %arg2[%c0_9, %c0_10, %c0_11] : memref<1x4x256xf32, #tpu.memory_space<vmem>>, vector<1x4x256xf32>
    %10 = vector.shape_cast %9 : vector<1x4x256xf32> to vector<4x256xf32>
    %11 = tpu.transpose %10, [1, 0] : vector<4x256xf32> -> vector<256x4xf32>
    %12 = vector.shape_cast %11 : vector<256x4xf32> to vector<16x16x4xf32>
    %13 = tpu.transpose %8, [1, 0] : vector<4x256xf32> -> vector<256x4xf32>
    %14 = vector.shape_cast %13 : vector<256x4xf32> to vector<16x16x4xf32>
    %cst_12 = arith.constant 0.000000e+00 : f32
    %15 = vector.broadcast %cst_12 : f32 to vector<256x8xf32>
    %cst_13 = arith.constant 0.000000e+00 : f32
    %16 = vector.broadcast %cst_13 : f32 to vector<18x32x4xf32>
    %c0_14 = arith.constant 0 : index
    %c0_15 = arith.constant 0 : index
    %c0_16 = arith.constant 0 : index
    %17 = vector.load %arg14[%c0_14, %c0_15, %c0_16] : memref<18x32x4xf32, #tpu.memory_space<vmem>>, vector<18x32x4xf32>
    tpu.vector_store %arg14[%c0_14, %c0_15, %c0_16], %16 {strides = array<i32>} : memref<18x32x4xf32, #tpu.memory_space<vmem>>, vector<18x32x4xf32>,
    %c1 = arith.constant 1 : index
    %c8 = arith.constant 8 : index
    %c0_17 = arith.constant 0 : index
    %18 = vector.load %arg14[%c1, %c8, %c0_17] : memref<18x32x4xf32, #tpu.memory_space<vmem>>, vector<16x16x4xf32>
    tpu.vector_store %arg14[%c1, %c8, %c0_17], %12 {strides = array<i32>} : memref<18x32x4xf32, #tpu.memory_space<vmem>>, vector<16x16x4xf32>,
    %c0_18 = arith.constant 0 : index
    %c7 = arith.constant 7 : index
    %c0_19 = arith.constant 0 : index
    %19 = vector.load %arg14[%c0_18, %c7, %c0_19] : memref<18x32x4xf32, #tpu.memory_space<vmem>>, vector<16x16x4xf32>
    %20 = vector.shape_cast %19 : vector<16x16x4xf32> to vector<256x4xf32>
    %c0_20 = arith.constant 0 : index
    %c0_21 = arith.constant 0 : index
    %c0_22 = arith.constant 0 : index
    %21 = vector.load %arg6[%c0_20, %c0_21, %c0_22] : memref<9x4x8xf32, #tpu.memory_space<vmem>>, vector<1x4x8xf32>
    %22 = vector.shape_cast %21 : vector<1x4x8xf32> to vector<4x8xf32>
    %cst_23 = arith.constant dense<0.000000e+00> : vector<256x8xf32>
    %23 = tpu.matmul %20, %22, %cst_23 {dimension_numbers = #tpu.dot_dimension_numbers<[1], [0], [0], [1], [0, 0, 1, 1], [], []>} : vector<256x4xf32>, vector<4x8xf32>, vector<256x8xf32> -> vector<256x8xf32>
    %24 = arith.addf %15, %23 : vector<256x8xf32>
    %c0_24 = arith.constant 0 : index
    %c8_25 = arith.constant 8 : index
    %c0_26 = arith.constant 0 : index
    %25 = vector.load %arg14[%c0_24, %c8_25, %c0_26] : memref<18x32x4xf32, #tpu.memory_space<vmem>>, vector<16x16x4xf32>
    %26 = vector.shape_cast %25 : vector<16x16x4xf32> to vector<256x4xf32>
    %c1_27 = arith.constant 1 : index
    %c0_28 = arith.constant 0 : index
    %c0_29 = arith.constant 0 : index
    %27 = vector.load %arg6[%c1_27, %c0_28, %c0_29] : memref<9x4x8xf32, #tpu.memory_space<vmem>>, vector<1x4x8xf32>
    %28 = vector.shape_cast %27 : vector<1x4x8xf32> to vector<4x8xf32>
    %cst_30 = arith.constant dense<0.000000e+00> : vector<256x8xf32>
    %29 = tpu.matmul %26, %28, %cst_30 {dimension_numbers = #tpu.dot_dimension_numbers<[1], [0], [0], [1], [0, 0, 1, 1], [], []>} : vector<256x4xf32>, vector<4x8xf32>, vector<256x8xf32> -> vector<256x8xf32>
    %30 = arith.addf %24, %29 : vector<256x8xf32>
    %c0_31 = arith.constant 0 : index
    %c9 = arith.constant 9 : index
    %c0_32 = arith.constant 0 : index
    %31 = vector.load %arg14[%c0_31, %c9, %c0_32] : memref<18x32x4xf32, #tpu.memory_space<vmem>>, vector<16x16x4xf32>
    %32 = vector.shape_cast %31 : vector<16x16x4xf32> to vector<256x4xf32>
    %c2 = arith.constant 2 : index
    %c0_33 = arith.constant 0 : index
    %c0_34 = arith.constant 0 : index
    %33 = vector.load %arg6[%c2, %c0_33, %c0_34] : memref<9x4x8xf32, #tpu.memory_space<vmem>>, vector<1x4x8xf32>
    %34 = vector.shape_cast %33 : vector<1x4x8xf32> to vector<4x8xf32>
    %cst_35 = arith.constant dense<0.000000e+00> : vector<256x8xf32>
    %35 = tpu.matmul %32, %34, %cst_35 {dimension_numbers = #tpu.dot_dimension_numbers<[1], [0], [0], [1], [0, 0, 1, 1], [], []>} : vector<256x4xf32>, vector<4x8xf32>, vector<256x8xf32> -> vector<256x8xf32>
    %36 = arith.addf %30, %35 : vector<256x8xf32>
    %c1_36 = arith.constant 1 : index
    %c7_37 = arith.constant 7 : index
    %c0_38 = arith.constant 0 : index
    %37 = vector.load %arg14[%c1_36, %c7_37, %c0_38] : memref<18x32x4xf32, #tpu.memory_space<vmem>>, vector<16x16x4xf32>
    %38 = vector.shape_cast %37 : vector<16x16x4xf32> to vector<256x4xf32>
    %c3 = arith.constant 3 : index
    %c0_39 = arith.constant 0 : index
    %c0_40 = arith.constant 0 : index
    %39 = vector.load %arg6[%c3, %c0_39, %c0_40] : memref<9x4x8xf32, #tpu.memory_space<vmem>>, vector<1x4x8xf32>
    %40 = vector.shape_cast %39 : vector<1x4x8xf32> to vector<4x8xf32>
    %cst_41 = arith.constant dense<0.000000e+00> : vector<256x8xf32>
    %41 = tpu.matmul %38, %40, %cst_41 {dimension_numbers = #tpu.dot_dimension_numbers<[1], [0], [0], [1], [0, 0, 1, 1], [], []>} : vector<256x4xf32>, vector<4x8xf32>, vector<256x8xf32> -> vector<256x8xf32>
    %42 = arith.addf %36, %41 : vector<256x8xf32>
    %c1_42 = arith.constant 1 : index
    %c8_43 = arith.constant 8 : index
    %c0_44 = arith.constant 0 : index
    %43 = vector.load %arg14[%c1_42, %c8_43, %c0_44] : memref<18x32x4xf32, #tpu.memory_space<vmem>>, vector<16x16x4xf32>
    %44 = vector.shape_cast %43 : vector<16x16x4xf32> to vector<256x4xf32>
    %c4 = arith.constant 4 : index
    %c0_45 = arith.constant 0 : index
    %c0_46 = arith.constant 0 : index
    %45 = vector.load %arg6[%c4, %c0_45, %c0_46] : memref<9x4x8xf32, #tpu.memory_space<vmem>>, vector<1x4x8xf32>
    %46 = vector.shape_cast %45 : vector<1x4x8xf32> to vector<4x8xf32>
    %cst_47 = arith.constant dense<0.000000e+00> : vector<256x8xf32>
    %47 = tpu.matmul %44, %46, %cst_47 {dimension_numbers = #tpu.dot_dimension_numbers<[1], [0], [0], [1], [0, 0, 1, 1], [], []>} : vector<256x4xf32>, vector<4x8xf32>, vector<256x8xf32> -> vector<256x8xf32>
    %48 = arith.addf %42, %47 : vector<256x8xf32>
    %c1_48 = arith.constant 1 : index
    %c9_49 = arith.constant 9 : index
    %c0_50 = arith.constant 0 : index
    %49 = vector.load %arg14[%c1_48, %c9_49, %c0_50] : memref<18x32x4xf32, #tpu.memory_space<vmem>>, vector<16x16x4xf32>
    %50 = vector.shape_cast %49 : vector<16x16x4xf32> to vector<256x4xf32>
    %c5 = arith.constant 5 : index
    %c0_51 = arith.constant 0 : index
    %c0_52 = arith.constant 0 : index
    %51 = vector.load %arg6[%c5, %c0_51, %c0_52] : memref<9x4x8xf32, #tpu.memory_space<vmem>>, vector<1x4x8xf32>
    %52 = vector.shape_cast %51 : vector<1x4x8xf32> to vector<4x8xf32>
    %cst_53 = arith.constant dense<0.000000e+00> : vector<256x8xf32>
    %53 = tpu.matmul %50, %52, %cst_53 {dimension_numbers = #tpu.dot_dimension_numbers<[1], [0], [0], [1], [0, 0, 1, 1], [], []>} : vector<256x4xf32>, vector<4x8xf32>, vector<256x8xf32> -> vector<256x8xf32>
    %54 = arith.addf %48, %53 : vector<256x8xf32>
    %c2_54 = arith.constant 2 : index
    %c7_55 = arith.constant 7 : index
    %c0_56 = arith.constant 0 : index
    %55 = vector.load %arg14[%c2_54, %c7_55, %c0_56] : memref<18x32x4xf32, #tpu.memory_space<vmem>>, vector<16x16x4xf32>
    %56 = vector.shape_cast %55 : vector<16x16x4xf32> to vector<256x4xf32>
    %c6 = arith.constant 6 : index
    %c0_57 = arith.constant 0 : index
    %c0_58 = arith.constant 0 : index
    %57 = vector.load %arg6[%c6, %c0_57, %c0_58] : memref<9x4x8xf32, #tpu.memory_space<vmem>>, vector<1x4x8xf32>
    %58 = vector.shape_cast %57 : vector<1x4x8xf32> to vector<4x8xf32>
    %cst_59 = arith.constant dense<0.000000e+00> : vector<256x8xf32>
    %59 = tpu.matmul %56, %58, %cst_59 {dimension_numbers = #tpu.dot_dimension_numbers<[1], [0], [0], [1], [0, 0, 1, 1], [], []>} : vector<256x4xf32>, vector<4x8xf32>, vector<256x8xf32> -> vector<256x8xf32>
    %60 = arith.addf %54, %59 : vector<256x8xf32>
    %c2_60 = arith.constant 2 : index
    %c8_61 = arith.constant 8 : index
    %c0_62 = arith.constant 0 : index
    %61 = vector.load %arg14[%c2_60, %c8_61, %c0_62] : memref<18x32x4xf32, #tpu.memory_space<vmem>>, vector<16x16x4xf32>
    %62 = vector.shape_cast %61 : vector<16x16x4xf32> to vector<256x4xf32>
    %c7_63 = arith.constant 7 : index
    %c0_64 = arith.constant 0 : index
    %c0_65 = arith.constant 0 : index
    %63 = vector.load %arg6[%c7_63, %c0_64, %c0_65] : memref<9x4x8xf32, #tpu.memory_space<vmem>>, vector<1x4x8xf32>
    %64 = vector.shape_cast %63 : vector<1x4x8xf32> to vector<4x8xf32>
    %cst_66 = arith.constant dense<0.000000e+00> : vector<256x8xf32>
    %65 = tpu.matmul %62, %64, %cst_66 {dimension_numbers = #tpu.dot_dimension_numbers<[1], [0], [0], [1], [0, 0, 1, 1], [], []>} : vector<256x4xf32>, vector<4x8xf32>, vector<256x8xf32> -> vector<256x8xf32>
    %66 = arith.addf %60, %65 : vector<256x8xf32>
    %c2_67 = arith.constant 2 : index
    %c9_68 = arith.constant 9 : index
    %c0_69 = arith.constant 0 : index
    %67 = vector.load %arg14[%c2_67, %c9_68, %c0_69] : memref<18x32x4xf32, #tpu.memory_space<vmem>>, vector<16x16x4xf32>
    %68 = vector.shape_cast %67 : vector<16x16x4xf32> to vector<256x4xf32>
    %c8_70 = arith.constant 8 : index
    %c0_71 = arith.constant 0 : index
    %c0_72 = arith.constant 0 : index
    %69 = vector.load %arg6[%c8_70, %c0_71, %c0_72] : memref<9x4x8xf32, #tpu.memory_space<vmem>>, vector<1x4x8xf32>
    %70 = vector.shape_cast %69 : vector<1x4x8xf32> to vector<4x8xf32>
    %cst_73 = arith.constant dense<0.000000e+00> : vector<256x8xf32>
    %71 = tpu.matmul %68, %70, %cst_73 {dimension_numbers = #tpu.dot_dimension_numbers<[1], [0], [0], [1], [0, 0, 1, 1], [], []>} : vector<256x4xf32>, vector<4x8xf32>, vector<256x8xf32> -> vector<256x8xf32>
    %72 = arith.addf %66, %71 : vector<256x8xf32>
    %cst_74 = arith.constant 0.000000e+00 : f32
    %73 = vector.broadcast %cst_74 : f32 to vector<18x32x4xf32>
    %c0_75 = arith.constant 0 : index
    %c0_76 = arith.constant 0 : index
    %c0_77 = arith.constant 0 : index
    %74 = vector.load %arg15[%c0_75, %c0_76, %c0_77] : memref<18x32x4xf32, #tpu.memory_space<vmem>>, vector<18x32x4xf32>
    tpu.vector_store %arg15[%c0_75, %c0_76, %c0_77], %73 {strides = array<i32>} : memref<18x32x4xf32, #tpu.memory_space<vmem>>, vector<18x32x4xf32>,
    %c1_78 = arith.constant 1 : index
    %c8_79 = arith.constant 8 : index
    %c0_80 = arith.constant 0 : index
    %75 = vector.load %arg15[%c1_78, %c8_79, %c0_80] : memref<18x32x4xf32, #tpu.memory_space<vmem>>, vector<16x16x4xf32>
    tpu.vector_store %arg15[%c1_78, %c8_79, %c0_80], %14 {strides = array<i32>} : memref<18x32x4xf32, #tpu.memory_space<vmem>>, vector<16x16x4xf32>,
    %c0_81 = arith.constant 0 : index
    %c7_82 = arith.constant 7 : index
    %c0_83 = arith.constant 0 : index
    %76 = vector.load %arg15[%c0_81, %c7_82, %c0_83] : memref<18x32x4xf32, #tpu.memory_space<vmem>>, vector<16x16x4xf32>
    %77 = vector.shape_cast %76 : vector<16x16x4xf32> to vector<256x4xf32>
    %c0_84 = arith.constant 0 : index
    %c0_85 = arith.constant 0 : index
    %c0_86 = arith.constant 0 : index
    %78 = vector.load %arg7[%c0_84, %c0_85, %c0_86] : memref<9x4x8xf32, #tpu.memory_space<vmem>>, vector<1x4x8xf32>
    %79 = vector.shape_cast %78 : vector<1x4x8xf32> to vector<4x8xf32>
    %cst_87 = arith.constant dense<0.000000e+00> : vector<256x8xf32>
    %80 = tpu.matmul %77, %79, %cst_87 {dimension_numbers = #tpu.dot_dimension_numbers<[1], [0], [0], [1], [0, 0, 1, 1], [], []>} : vector<256x4xf32>, vector<4x8xf32>, vector<256x8xf32> -> vector<256x8xf32>
    %81 = arith.addf %72, %80 : vector<256x8xf32>
    %c0_88 = arith.constant 0 : index
    %c8_89 = arith.constant 8 : index
    %c0_90 = arith.constant 0 : index
    %82 = vector.load %arg15[%c0_88, %c8_89, %c0_90] : memref<18x32x4xf32, #tpu.memory_space<vmem>>, vector<16x16x4xf32>
    %83 = vector.shape_cast %82 : vector<16x16x4xf32> to vector<256x4xf32>
    %c1_91 = arith.constant 1 : index
    %c0_92 = arith.constant 0 : index
    %c0_93 = arith.constant 0 : index
    %84 = vector.load %arg7[%c1_91, %c0_92, %c0_93] : memref<9x4x8xf32, #tpu.memory_space<vmem>>, vector<1x4x8xf32>
    %85 = vector.shape_cast %84 : vector<1x4x8xf32> to vector<4x8xf32>
    %cst_94 = arith.constant dense<0.000000e+00> : vector<256x8xf32>
    %86 = tpu.matmul %83, %85, %cst_94 {dimension_numbers = #tpu.dot_dimension_numbers<[1], [0], [0], [1], [0, 0, 1, 1], [], []>} : vector<256x4xf32>, vector<4x8xf32>, vector<256x8xf32> -> vector<256x8xf32>
    %87 = arith.addf %81, %86 : vector<256x8xf32>
    %c0_95 = arith.constant 0 : index
    %c9_96 = arith.constant 9 : index
    %c0_97 = arith.constant 0 : index
    %88 = vector.load %arg15[%c0_95, %c9_96, %c0_97] : memref<18x32x4xf32, #tpu.memory_space<vmem>>, vector<16x16x4xf32>
    %89 = vector.shape_cast %88 : vector<16x16x4xf32> to vector<256x4xf32>
    %c2_98 = arith.constant 2 : index
    %c0_99 = arith.constant 0 : index
    %c0_100 = arith.constant 0 : index
    %90 = vector.load %arg7[%c2_98, %c0_99, %c0_100] : memref<9x4x8xf32, #tpu.memory_space<vmem>>, vector<1x4x8xf32>
    %91 = vector.shape_cast %90 : vector<1x4x8xf32> to vector<4x8xf32>
    %cst_101 = arith.constant dense<0.000000e+00> : vector<256x8xf32>
    %92 = tpu.matmul %89, %91, %cst_101 {dimension_numbers = #tpu.dot_dimension_numbers<[1], [0], [0], [1], [0, 0, 1, 1], [], []>} : vector<256x4xf32>, vector<4x8xf32>, vector<256x8xf32> -> vector<256x8xf32>
    %93 = arith.addf %87, %92 : vector<256x8xf32>
    %c1_102 = arith.constant 1 : index
    %c7_103 = arith.constant 7 : index
    %c0_104 = arith.constant 0 : index
    %94 = vector.load %arg15[%c1_102, %c7_103, %c0_104] : memref<18x32x4xf32, #tpu.memory_space<vmem>>, vector<16x16x4xf32>
    %95 = vector.shape_cast %94 : vector<16x16x4xf32> to vector<256x4xf32>
    %c3_105 = arith.constant 3 : index
    %c0_106 = arith.constant 0 : index
    %c0_107 = arith.constant 0 : index
    %96 = vector.load %arg7[%c3_105, %c0_106, %c0_107] : memref<9x4x8xf32, #tpu.memory_space<vmem>>, vector<1x4x8xf32>
    %97 = vector.shape_cast %96 : vector<1x4x8xf32> to vector<4x8xf32>
    %cst_108 = arith.constant dense<0.000000e+00> : vector<256x8xf32>
    %98 = tpu.matmul %95, %97, %cst_108 {dimension_numbers = #tpu.dot_dimension_numbers<[1], [0], [0], [1], [0, 0, 1, 1], [], []>} : vector<256x4xf32>, vector<4x8xf32>, vector<256x8xf32> -> vector<256x8xf32>
    %99 = arith.addf %93, %98 : vector<256x8xf32>
    %c1_109 = arith.constant 1 : index
    %c8_110 = arith.constant 8 : index
    %c0_111 = arith.constant 0 : index
    %100 = vector.load %arg15[%c1_109, %c8_110, %c0_111] : memref<18x32x4xf32, #tpu.memory_space<vmem>>, vector<16x16x4xf32>
    %101 = vector.shape_cast %100 : vector<16x16x4xf32> to vector<256x4xf32>
    %c4_112 = arith.constant 4 : index
    %c0_113 = arith.constant 0 : index
    %c0_114 = arith.constant 0 : index
    %102 = vector.load %arg7[%c4_112, %c0_113, %c0_114] : memref<9x4x8xf32, #tpu.memory_space<vmem>>, vector<1x4x8xf32>
    %103 = vector.shape_cast %102 : vector<1x4x8xf32> to vector<4x8xf32>
    %cst_115 = arith.constant dense<0.000000e+00> : vector<256x8xf32>
    %104 = tpu.matmul %101, %103, %cst_115 {dimension_numbers = #tpu.dot_dimension_numbers<[1], [0], [0], [1], [0, 0, 1, 1], [], []>} : vector<256x4xf32>, vector<4x8xf32>, vector<256x8xf32> -> vector<256x8xf32>
    %105 = arith.addf %99, %104 : vector<256x8xf32>
    %c1_116 = arith.constant 1 : index
    %c9_117 = arith.constant 9 : index
    %c0_118 = arith.constant 0 : index
    %106 = vector.load %arg15[%c1_116, %c9_117, %c0_118] : memref<18x32x4xf32, #tpu.memory_space<vmem>>, vector<16x16x4xf32>
    %107 = vector.shape_cast %106 : vector<16x16x4xf32> to vector<256x4xf32>
    %c5_119 = arith.constant 5 : index
    %c0_120 = arith.constant 0 : index
    %c0_121 = arith.constant 0 : index
    %108 = vector.load %arg7[%c5_119, %c0_120, %c0_121] : memref<9x4x8xf32, #tpu.memory_space<vmem>>, vector<1x4x8xf32>
    %109 = vector.shape_cast %108 : vector<1x4x8xf32> to vector<4x8xf32>
    %cst_122 = arith.constant dense<0.000000e+00> : vector<256x8xf32>
    %110 = tpu.matmul %107, %109, %cst_122 {dimension_numbers = #tpu.dot_dimension_numbers<[1], [0], [0], [1], [0, 0, 1, 1], [], []>} : vector<256x4xf32>, vector<4x8xf32>, vector<256x8xf32> -> vector<256x8xf32>
    %111 = arith.addf %105, %110 : vector<256x8xf32>
    %c2_123 = arith.constant 2 : index
    %c7_124 = arith.constant 7 : index
    %c0_125 = arith.constant 0 : index
    %112 = vector.load %arg15[%c2_123, %c7_124, %c0_125] : memref<18x32x4xf32, #tpu.memory_space<vmem>>, vector<16x16x4xf32>
    %113 = vector.shape_cast %112 : vector<16x16x4xf32> to vector<256x4xf32>
    %c6_126 = arith.constant 6 : index
    %c0_127 = arith.constant 0 : index
    %c0_128 = arith.constant 0 : index
    %114 = vector.load %arg7[%c6_126, %c0_127, %c0_128] : memref<9x4x8xf32, #tpu.memory_space<vmem>>, vector<1x4x8xf32>
    %115 = vector.shape_cast %114 : vector<1x4x8xf32> to vector<4x8xf32>
    %cst_129 = arith.constant dense<0.000000e+00> : vector<256x8xf32>
    %116 = tpu.matmul %113, %115, %cst_129 {dimension_numbers = #tpu.dot_dimension_numbers<[1], [0], [0], [1], [0, 0, 1, 1], [], []>} : vector<256x4xf32>, vector<4x8xf32>, vector<256x8xf32> -> vector<256x8xf32>
    %117 = arith.addf %111, %116 : vector<256x8xf32>
    %c2_130 = arith.constant 2 : index
    %c8_131 = arith.constant 8 : index
    %c0_132 = arith.constant 0 : index
    %118 = vector.load %arg15[%c2_130, %c8_131, %c0_132] : memref<18x32x4xf32, #tpu.memory_space<vmem>>, vector<16x16x4xf32>
    %119 = vector.shape_cast %118 : vector<16x16x4xf32> to vector<256x4xf32>
    %c7_133 = arith.constant 7 : index
    %c0_134 = arith.constant 0 : index
    %c0_135 = arith.constant 0 : index
    %120 = vector.load %arg7[%c7_133, %c0_134, %c0_135] : memref<9x4x8xf32, #tpu.memory_space<vmem>>, vector<1x4x8xf32>
    %121 = vector.shape_cast %120 : vector<1x4x8xf32> to vector<4x8xf32>
    %cst_136 = arith.constant dense<0.000000e+00> : vector<256x8xf32>
    %122 = tpu.matmul %119, %121, %cst_136 {dimension_numbers = #tpu.dot_dimension_numbers<[1], [0], [0], [1], [0, 0, 1, 1], [], []>} : vector<256x4xf32>, vector<4x8xf32>, vector<256x8xf32> -> vector<256x8xf32>
    %123 = arith.addf %117, %122 : vector<256x8xf32>
    %c2_137 = arith.constant 2 : index
    %c9_138 = arith.constant 9 : index
    %c0_139 = arith.constant 0 : index
    %124 = vector.load %arg15[%c2_137, %c9_138, %c0_139] : memref<18x32x4xf32, #tpu.memory_space<vmem>>, vector<16x16x4xf32>
    %125 = vector.shape_cast %124 : vector<16x16x4xf32> to vector<256x4xf32>
    %c8_140 = arith.constant 8 : index
    %c0_141 = arith.constant 0 : index
    %c0_142 = arith.constant 0 : index
    %126 = vector.load %arg7[%c8_140, %c0_141, %c0_142] : memref<9x4x8xf32, #tpu.memory_space<vmem>>, vector<1x4x8xf32>
    %127 = vector.shape_cast %126 : vector<1x4x8xf32> to vector<4x8xf32>
    %cst_143 = arith.constant dense<0.000000e+00> : vector<256x8xf32>
    %128 = tpu.matmul %125, %127, %cst_143 {dimension_numbers = #tpu.dot_dimension_numbers<[1], [0], [0], [1], [0, 0, 1, 1], [], []>} : vector<256x4xf32>, vector<4x8xf32>, vector<256x8xf32> -> vector<256x8xf32>
    %129 = arith.addf %123, %128 : vector<256x8xf32>
    %c0_144 = arith.constant 0 : index
    %c0_145 = arith.constant 0 : index
    %130 = vector.load %arg8[%c0_144, %c0_145] : memref<1x8xf32, #tpu.memory_space<vmem>>, vector<1x8xf32>
    %131 = vector.broadcast %130 : vector<1x8xf32> to vector<256x8xf32>
    %132 = arith.mulf %129, %131 : vector<256x8xf32>
    %c0_146 = arith.constant 0 : index
    %c0_147 = arith.constant 0 : index
    %133 = vector.load %arg9[%c0_146, %c0_147] : memref<1x8xf32, #tpu.memory_space<vmem>>, vector<1x8xf32>
    %134 = vector.broadcast %133 : vector<1x8xf32> to vector<256x8xf32>
    %135 = arith.addf %132, %134 : vector<256x8xf32>
    %cst_148 = arith.constant 0.000000e+00 : f32
    %136 = vector.broadcast %cst_148 : f32 to vector<256x8xf32>
    %137 = arith.cmpf ogt, %135, %136 : vector<256x8xf32>
    %cst_149 = arith.constant 0.00999999977 : f32
    %138 = vector.broadcast %cst_149 : f32 to vector<256x8xf32>
    %139 = arith.mulf %138, %135 : vector<256x8xf32>
    %140 = arith.select %137, %135, %139 : vector<256x8xi1>, vector<256x8xf32>
    %cst_150 = arith.constant 0.000000e+00 : f32
    %141 = vector.broadcast %cst_150 : f32 to vector<256x8xf32>
    %142 = vector.shape_cast %140 : vector<256x8xf32> to vector<16x16x8xf32>
    %cst_151 = arith.constant 0.000000e+00 : f32
    %143 = vector.broadcast %cst_151 : f32 to vector<18x32x8xf32>
    %c0_152 = arith.constant 0 : index
    %c0_153 = arith.constant 0 : index
    %c0_154 = arith.constant 0 : index
    %144 = vector.load %arg16[%c0_152, %c0_153, %c0_154] : memref<18x32x8xf32, #tpu.memory_space<vmem>>, vector<18x32x8xf32>
    tpu.vector_store %arg16[%c0_152, %c0_153, %c0_154], %143 {strides = array<i32>} : memref<18x32x8xf32, #tpu.memory_space<vmem>>, vector<18x32x8xf32>,
    %c1_155 = arith.constant 1 : index
    %c8_156 = arith.constant 8 : index
    %c0_157 = arith.constant 0 : index
    %145 = vector.load %arg16[%c1_155, %c8_156, %c0_157] : memref<18x32x8xf32, #tpu.memory_space<vmem>>, vector<16x16x8xf32>
    tpu.vector_store %arg16[%c1_155, %c8_156, %c0_157], %142 {strides = array<i32>} : memref<18x32x8xf32, #tpu.memory_space<vmem>>, vector<16x16x8xf32>,
    %c0_158 = arith.constant 0 : index
    %c7_159 = arith.constant 7 : index
    %c0_160 = arith.constant 0 : index
    %146 = vector.load %arg16[%c0_158, %c7_159, %c0_160] : memref<18x32x8xf32, #tpu.memory_space<vmem>>, vector<16x16x8xf32>
    %147 = vector.shape_cast %146 : vector<16x16x8xf32> to vector<256x8xf32>
    %c0_161 = arith.constant 0 : index
    %c0_162 = arith.constant 0 : index
    %c0_163 = arith.constant 0 : index
    %148 = vector.load %arg10[%c0_161, %c0_162, %c0_163] : memref<9x8x8xf32, #tpu.memory_space<vmem>>, vector<1x8x8xf32>
    %149 = vector.shape_cast %148 : vector<1x8x8xf32> to vector<8x8xf32>
    %cst_164 = arith.constant dense<0.000000e+00> : vector<256x8xf32>
    %150 = tpu.matmul %147, %149, %cst_164 {dimension_numbers = #tpu.dot_dimension_numbers<[1], [0], [0], [1], [0, 0, 1, 1], [], []>} : vector<256x8xf32>, vector<8x8xf32>, vector<256x8xf32> -> vector<256x8xf32>
    %151 = arith.addf %141, %150 : vector<256x8xf32>
    %c0_165 = arith.constant 0 : index
    %c8_166 = arith.constant 8 : index
    %c0_167 = arith.constant 0 : index
    %152 = vector.load %arg16[%c0_165, %c8_166, %c0_167] : memref<18x32x8xf32, #tpu.memory_space<vmem>>, vector<16x16x8xf32>
    %153 = vector.shape_cast %152 : vector<16x16x8xf32> to vector<256x8xf32>
    %c1_168 = arith.constant 1 : index
    %c0_169 = arith.constant 0 : index
    %c0_170 = arith.constant 0 : index
    %154 = vector.load %arg10[%c1_168, %c0_169, %c0_170] : memref<9x8x8xf32, #tpu.memory_space<vmem>>, vector<1x8x8xf32>
    %155 = vector.shape_cast %154 : vector<1x8x8xf32> to vector<8x8xf32>
    %cst_171 = arith.constant dense<0.000000e+00> : vector<256x8xf32>
    %156 = tpu.matmul %153, %155, %cst_171 {dimension_numbers = #tpu.dot_dimension_numbers<[1], [0], [0], [1], [0, 0, 1, 1], [], []>} : vector<256x8xf32>, vector<8x8xf32>, vector<256x8xf32> -> vector<256x8xf32>
    %157 = arith.addf %151, %156 : vector<256x8xf32>
    %c0_172 = arith.constant 0 : index
    %c9_173 = arith.constant 9 : index
    %c0_174 = arith.constant 0 : index
    %158 = vector.load %arg16[%c0_172, %c9_173, %c0_174] : memref<18x32x8xf32, #tpu.memory_space<vmem>>, vector<16x16x8xf32>
    %159 = vector.shape_cast %158 : vector<16x16x8xf32> to vector<256x8xf32>
    %c2_175 = arith.constant 2 : index
    %c0_176 = arith.constant 0 : index
    %c0_177 = arith.constant 0 : index
    %160 = vector.load %arg10[%c2_175, %c0_176, %c0_177] : memref<9x8x8xf32, #tpu.memory_space<vmem>>, vector<1x8x8xf32>
    %161 = vector.shape_cast %160 : vector<1x8x8xf32> to vector<8x8xf32>
    %cst_178 = arith.constant dense<0.000000e+00> : vector<256x8xf32>
    %162 = tpu.matmul %159, %161, %cst_178 {dimension_numbers = #tpu.dot_dimension_numbers<[1], [0], [0], [1], [0, 0, 1, 1], [], []>} : vector<256x8xf32>, vector<8x8xf32>, vector<256x8xf32> -> vector<256x8xf32>
    %163 = arith.addf %157, %162 : vector<256x8xf32>
    %c1_179 = arith.constant 1 : index
    %c7_180 = arith.constant 7 : index
    %c0_181 = arith.constant 0 : index
    %164 = vector.load %arg16[%c1_179, %c7_180, %c0_181] : memref<18x32x8xf32, #tpu.memory_space<vmem>>, vector<16x16x8xf32>
    %165 = vector.shape_cast %164 : vector<16x16x8xf32> to vector<256x8xf32>
    %c3_182 = arith.constant 3 : index
    %c0_183 = arith.constant 0 : index
    %c0_184 = arith.constant 0 : index
    %166 = vector.load %arg10[%c3_182, %c0_183, %c0_184] : memref<9x8x8xf32, #tpu.memory_space<vmem>>, vector<1x8x8xf32>
    %167 = vector.shape_cast %166 : vector<1x8x8xf32> to vector<8x8xf32>
    %cst_185 = arith.constant dense<0.000000e+00> : vector<256x8xf32>
    %168 = tpu.matmul %165, %167, %cst_185 {dimension_numbers = #tpu.dot_dimension_numbers<[1], [0], [0], [1], [0, 0, 1, 1], [], []>} : vector<256x8xf32>, vector<8x8xf32>, vector<256x8xf32> -> vector<256x8xf32>
    %169 = arith.addf %163, %168 : vector<256x8xf32>
    %c1_186 = arith.constant 1 : index
    %c8_187 = arith.constant 8 : index
    %c0_188 = arith.constant 0 : index
    %170 = vector.load %arg16[%c1_186, %c8_187, %c0_188] : memref<18x32x8xf32, #tpu.memory_space<vmem>>, vector<16x16x8xf32>
    %171 = vector.shape_cast %170 : vector<16x16x8xf32> to vector<256x8xf32>
    %c4_189 = arith.constant 4 : index
    %c0_190 = arith.constant 0 : index
    %c0_191 = arith.constant 0 : index
    %172 = vector.load %arg10[%c4_189, %c0_190, %c0_191] : memref<9x8x8xf32, #tpu.memory_space<vmem>>, vector<1x8x8xf32>
    %173 = vector.shape_cast %172 : vector<1x8x8xf32> to vector<8x8xf32>
    %cst_192 = arith.constant dense<0.000000e+00> : vector<256x8xf32>
    %174 = tpu.matmul %171, %173, %cst_192 {dimension_numbers = #tpu.dot_dimension_numbers<[1], [0], [0], [1], [0, 0, 1, 1], [], []>} : vector<256x8xf32>, vector<8x8xf32>, vector<256x8xf32> -> vector<256x8xf32>
    %175 = arith.addf %169, %174 : vector<256x8xf32>
    %c1_193 = arith.constant 1 : index
    %c9_194 = arith.constant 9 : index
    %c0_195 = arith.constant 0 : index
    %176 = vector.load %arg16[%c1_193, %c9_194, %c0_195] : memref<18x32x8xf32, #tpu.memory_space<vmem>>, vector<16x16x8xf32>
    %177 = vector.shape_cast %176 : vector<16x16x8xf32> to vector<256x8xf32>
    %c5_196 = arith.constant 5 : index
    %c0_197 = arith.constant 0 : index
    %c0_198 = arith.constant 0 : index
    %178 = vector.load %arg10[%c5_196, %c0_197, %c0_198] : memref<9x8x8xf32, #tpu.memory_space<vmem>>, vector<1x8x8xf32>
    %179 = vector.shape_cast %178 : vector<1x8x8xf32> to vector<8x8xf32>
    %cst_199 = arith.constant dense<0.000000e+00> : vector<256x8xf32>
    %180 = tpu.matmul %177, %179, %cst_199 {dimension_numbers = #tpu.dot_dimension_numbers<[1], [0], [0], [1], [0, 0, 1, 1], [], []>} : vector<256x8xf32>, vector<8x8xf32>, vector<256x8xf32> -> vector<256x8xf32>
    %181 = arith.addf %175, %180 : vector<256x8xf32>
    %c2_200 = arith.constant 2 : index
    %c7_201 = arith.constant 7 : index
    %c0_202 = arith.constant 0 : index
    %182 = vector.load %arg16[%c2_200, %c7_201, %c0_202] : memref<18x32x8xf32, #tpu.memory_space<vmem>>, vector<16x16x8xf32>
    %183 = vector.shape_cast %182 : vector<16x16x8xf32> to vector<256x8xf32>
    %c6_203 = arith.constant 6 : index
    %c0_204 = arith.constant 0 : index
    %c0_205 = arith.constant 0 : index
    %184 = vector.load %arg10[%c6_203, %c0_204, %c0_205] : memref<9x8x8xf32, #tpu.memory_space<vmem>>, vector<1x8x8xf32>
    %185 = vector.shape_cast %184 : vector<1x8x8xf32> to vector<8x8xf32>
    %cst_206 = arith.constant dense<0.000000e+00> : vector<256x8xf32>
    %186 = tpu.matmul %183, %185, %cst_206 {dimension_numbers = #tpu.dot_dimension_numbers<[1], [0], [0], [1], [0, 0, 1, 1], [], []>} : vector<256x8xf32>, vector<8x8xf32>, vector<256x8xf32> -> vector<256x8xf32>
    %187 = arith.addf %181, %186 : vector<256x8xf32>
    %c2_207 = arith.constant 2 : index
    %c8_208 = arith.constant 8 : index
    %c0_209 = arith.constant 0 : index
    %188 = vector.load %arg16[%c2_207, %c8_208, %c0_209] : memref<18x32x8xf32, #tpu.memory_space<vmem>>, vector<16x16x8xf32>
    %189 = vector.shape_cast %188 : vector<16x16x8xf32> to vector<256x8xf32>
    %c7_210 = arith.constant 7 : index
    %c0_211 = arith.constant 0 : index
    %c0_212 = arith.constant 0 : index
    %190 = vector.load %arg10[%c7_210, %c0_211, %c0_212] : memref<9x8x8xf32, #tpu.memory_space<vmem>>, vector<1x8x8xf32>
    %191 = vector.shape_cast %190 : vector<1x8x8xf32> to vector<8x8xf32>
    %cst_213 = arith.constant dense<0.000000e+00> : vector<256x8xf32>
    %192 = tpu.matmul %189, %191, %cst_213 {dimension_numbers = #tpu.dot_dimension_numbers<[1], [0], [0], [1], [0, 0, 1, 1], [], []>} : vector<256x8xf32>, vector<8x8xf32>, vector<256x8xf32> -> vector<256x8xf32>
    %193 = arith.addf %187, %192 : vector<256x8xf32>
    %c2_214 = arith.constant 2 : index
    %c9_215 = arith.constant 9 : index
    %c0_216 = arith.constant 0 : index
    %194 = vector.load %arg16[%c2_214, %c9_215, %c0_216] : memref<18x32x8xf32, #tpu.memory_space<vmem>>, vector<16x16x8xf32>
    %195 = vector.shape_cast %194 : vector<16x16x8xf32> to vector<256x8xf32>
    %c8_217 = arith.constant 8 : index
    %c0_218 = arith.constant 0 : index
    %c0_219 = arith.constant 0 : index
    %196 = vector.load %arg10[%c8_217, %c0_218, %c0_219] : memref<9x8x8xf32, #tpu.memory_space<vmem>>, vector<1x8x8xf32>
    %197 = vector.shape_cast %196 : vector<1x8x8xf32> to vector<8x8xf32>
    %cst_220 = arith.constant dense<0.000000e+00> : vector<256x8xf32>
    %198 = tpu.matmul %195, %197, %cst_220 {dimension_numbers = #tpu.dot_dimension_numbers<[1], [0], [0], [1], [0, 0, 1, 1], [], []>} : vector<256x8xf32>, vector<8x8xf32>, vector<256x8xf32> -> vector<256x8xf32>
    %199 = arith.addf %193, %198 : vector<256x8xf32>
    %c0_221 = arith.constant 0 : index
    %c0_222 = arith.constant 0 : index
    %200 = vector.load %arg11[%c0_221, %c0_222] : memref<1x8xf32, #tpu.memory_space<vmem>>, vector<1x8xf32>
    %201 = vector.broadcast %200 : vector<1x8xf32> to vector<256x8xf32>
    %202 = arith.mulf %199, %201 : vector<256x8xf32>
    %c0_223 = arith.constant 0 : index
    %c0_224 = arith.constant 0 : index
    %203 = vector.load %arg12[%c0_223, %c0_224] : memref<1x8xf32, #tpu.memory_space<vmem>>, vector<1x8xf32>
    %204 = vector.broadcast %203 : vector<1x8xf32> to vector<256x8xf32>
    %205 = arith.addf %202, %204 : vector<256x8xf32>
    %cst_225 = arith.constant 0.000000e+00 : f32
    %206 = vector.broadcast %cst_225 : f32 to vector<256x8xf32>
    %207 = arith.cmpf ogt, %205, %206 : vector<256x8xf32>
    %cst_226 = arith.constant 0.00999999977 : f32
    %208 = vector.broadcast %cst_226 : f32 to vector<256x8xf32>
    %209 = arith.mulf %208, %205 : vector<256x8xf32>
    %210 = arith.select %207, %205, %209 : vector<256x8xi1>, vector<256x8xf32>
    %211 = tpu.transpose %210, [1, 0] : vector<256x8xf32> -> vector<8x256xf32>
    %c0_227 = arith.constant 0 : index
    %c0_228 = arith.constant 0 : index
    %c0_229 = arith.constant 0 : index
    %212 = vector.load %arg13[%c0_227, %c0_228, %c0_229] : memref<1x8x256xf32, #tpu.memory_space<vmem>>, vector<1x8x256xf32>
    %213 = vector.shape_cast %212 : vector<1x8x256xf32> to vector<8x256xf32>
    %214 = vector.shape_cast %211 : vector<8x256xf32> to vector<1x8x256xf32>
    tpu.vector_store %arg13[%c0_227, %c0_228, %c0_229], %214 {strides = array<i32>} : memref<1x8x256xf32, #tpu.memory_space<vmem>>, vector<1x8x256xf32>,
    return
  }
  func.func @transform_0(%arg0: i32) -> (i32, i32, i32) {
    %c0_i32 = arith.constant 0 : i32
    %c0_i32_0 = arith.constant 0 : i32
    %c0_i32_1 = arith.constant 0 : i32
    return %arg0, %c0_i32, %c0_i32_0 : i32, i32, i32
  }
  func.func @transform_1(%arg0: i32) -> (i32, i32, i32) {
    %c0_i32 = arith.constant 0 : i32
    %c0_i32_0 = arith.constant 0 : i32
    %c0_i32_1 = arith.constant 0 : i32
    return %arg0, %c0_i32, %c0_i32_0 : i32, i32, i32
  }
  func.func @transform_2(%arg0: i32) -> (i32, i32) {
    %c0_i32 = arith.constant 0 : i32
    %c0_i32_0 = arith.constant 0 : i32
    %c0_i32_1 = arith.constant 0 : i32
    return %c0_i32, %c0_i32_0 : i32, i32
  }
  func.func @transform_3(%arg0: i32) -> (i32, i32) {
    %c0_i32 = arith.constant 0 : i32
    %c0_i32_0 = arith.constant 0 : i32
    %c0_i32_1 = arith.constant 0 : i32
    return %c0_i32, %c0_i32_0 : i32, i32
  }
  func.func @transform_4(%arg0: i32) -> (i32, i32) {
    %c0_i32 = arith.constant 0 : i32
    %c0_i32_0 = arith.constant 0 : i32
    %c0_i32_1 = arith.constant 0 : i32
    return %c0_i32, %c0_i32_0 : i32, i32
  }
  func.func @transform_5(%arg0: i32) -> (i32, i32, i32) {
    %c0_i32 = arith.constant 0 : i32
    %c0_i32_0 = arith.constant 0 : i32
    %c0_i32_1 = arith.constant 0 : i32
    %c0_i32_2 = arith.constant 0 : i32
    return %c0_i32, %c0_i32_0, %c0_i32_1 : i32, i32, i32
  }
  func.func @transform_6(%arg0: i32) -> (i32, i32, i32) {
    %c0_i32 = arith.constant 0 : i32
    %c0_i32_0 = arith.constant 0 : i32
    %c0_i32_1 = arith.constant 0 : i32
    %c0_i32_2 = arith.constant 0 : i32
    return %c0_i32, %c0_i32_0, %c0_i32_1 : i32, i32, i32
  }
  func.func @transform_7(%arg0: i32) -> (i32, i32) {
    %c0_i32 = arith.constant 0 : i32
    %c0_i32_0 = arith.constant 0 : i32
    %c0_i32_1 = arith.constant 0 : i32
    return %c0_i32, %c0_i32_0 : i32, i32
  }
  func.func @transform_8(%arg0: i32) -> (i32, i32) {
    %c0_i32 = arith.constant 0 : i32
    %c0_i32_0 = arith.constant 0 : i32
    %c0_i32_1 = arith.constant 0 : i32
    return %c0_i32, %c0_i32_0 : i32, i32
  }
  func.func @transform_9(%arg0: i32) -> (i32, i32, i32) {
    %c0_i32 = arith.constant 0 : i32
    %c0_i32_0 = arith.constant 0 : i32
    %c0_i32_1 = arith.constant 0 : i32
    %c0_i32_2 = arith.constant 0 : i32
    return %c0_i32, %c0_i32_0, %c0_i32_1 : i32, i32, i32
  }
  func.func @transform_10(%arg0: i32) -> (i32, i32) {
    %c0_i32 = arith.constant 0 : i32
    %c0_i32_0 = arith.constant 0 : i32
    %c0_i32_1 = arith.constant 0 : i32
    return %c0_i32, %c0_i32_0 : i32, i32
  }
  func.func @transform_11(%arg0: i32) -> (i32, i32) {
    %c0_i32 = arith.constant 0 : i32
    %c0_i32_0 = arith.constant 0 : i32
    %c0_i32_1 = arith.constant 0 : i32
    return %c0_i32, %c0_i32_0 : i32, i32
  }
  func.func @transform_12(%arg0: i32) -> (i32, i32, i32) {
    %c0_i32 = arith.constant 0 : i32
    %c0_i32_0 = arith.constant 0 : i32
    %c0_i32_1 = arith.constant 0 : i32
    return %arg0, %c0_i32, %c0_i32_0 : i32, i32, i32
  }
}

</mosaic_0001>

<bundles_post_ra>
// kernel: up_block_forward.1
= control target key start
LH: loop header
LB: loop body
LE: loop exit
PB: predicated region body
PF: predicated region fallthrough
CT: control target
= control target key end

     0   :  { %s15989_s21 = smov 0   ;;  %s19297_s0 = inlined_call_operand.vmem [shape: f32[2,8,64], index: 0, kind: input, shape index: {}]   ;;  %s19298_s1 = inlined_call_operand.vmem [shape: f32[2,4,256], index: 1, kind: input, shape index: {}]   ;;  %s19299_s2 = inlined_call_operand.vmem [shape: f32[4,8], index: 2, kind: input, shape index: {}]   ;;  %s19300_s3 = inlined_call_operand.vmem [shape: f32[4,1], index: 3, kind: input, shape index: {}]   ;;  %s19301_s4 = inlined_call_operand.vmem [shape: f32[64,256], index: 4, kind: input, shape index: {}]   ;;  %s19302_s5 = inlined_call_operand.vmem [shape: f32[9,4,8], index: 5, kind: input, shape index: {}]   ;;  %s19303_s6 = inlined_call_operand.vmem [shape: f32[9,4,8], index: 6, kind: input, shape index: {}]   ;;  %s19304_s7 = inlined_call_operand.vmem [shape: f32[1,8], index: 7, kind: input, shape index: {}]   ;;  %s19305_s8 = inlined_call_operand.vmem [shape: f32[1,8], index: 8, kind: input, shape index: {}]   ;;  %s19306_s9 = inlined_call_operand.vmem [shape: f32[9,8,8], index: 9, kind: input, shape index: {}]   ;;  %s19307_s10 = inlined_call_operand.vmem [shape: f32[1,8], index: 10, kind: input, shape index: {}]   ;;  %s19308_s11 = inlined_call_operand.vmem [shape: f32[1,8], index: 11, kind: input, shape index: {}]   ;;  %s19309_s12 = inlined_call_operand.vmem [shape: f32[2,8,256], index: 12, kind: output, shape index: {}]  }
   0x1 LB: > { %s11909_s22 = sadd.s32 4294967295, %s15919_s21   ;;  %p11913_p0 = scmp.ge.s32.totalorder %s15919_s21, 1  ;;  %s15919_s21 = sphi %s15989_s21, %s22_s21  }
   0x2   : > { %p371_p1 = scmp.lt.s32.totalorder %s15919_s21, 3 }
   0x4   : > { %p372_p2 = pnand %p11913_p0, %p371_p1 }
   0x6   : > { %375 = sbr.rel (%p372_p2) target bundleno = 2288 (0x8f0), region = 68 }
   0xd   : > { %p15999_p3 = scmp.lt.s32.totalorder %s11909_s22, 1  ;;  %vm439_vm0 = vcmask 64512   ;;  %v15921_v0 = vmov 0.0   ;;  %vm15922_vm1 = vmmov 0   ;;  %vm736_vm2 = vcmask 31744   ;;  %v514_v8 = vld [vmem:[%s19301_s4 + $0x8] sm:$0xff] }
   0xe   : > { %13728 = vmatprep.subr.mxu0 %v15921_v0  ;;  %13730 = vmatprep.mubr.msk.f32.mxu0 %vm15922_vm1, %v15921_v0  ;;  %8078 = vst.msk [vmem:[#allocation4] sm:$0xff] %vm439_vm0, %v15921_v0  ;;  %8079 = vst.msk [vmem:[#allocation4 + $0x8] sm:$0xff] %vm439_vm0, %v15921_v0  ;;  %v431_v1 = vld [vmem:[%s19299_s2] sm:$0xf]  ;;  %vm1005_vm3 = vcmask 1043456   ;;  %v15923_v6 = vmov 0  }
   0xf   : > { %8080 = vst.msk [vmem:[#allocation4 + $0x10] sm:$0xff] %vm439_vm0, %v15921_v0  ;;  %8081 = vst.msk [vmem:[#allocation4 + $0x18] sm:$0xff] %vm439_vm0, %v15921_v0  ;;  %s19774_s22 = smov (!%p15999_p3, %s11909_s22), 1  ;;  %597 = vmatprep.mubr.f32.mxu1 %v15921_v0  ;;  %v16458_v5 = vld [vmem:[%s19302_s5 + $0x10] sm:$0xf]  ;;  %v516_v9 = vld [vmem:[%s19301_s4 + $0x18] sm:$0xff] }
  0x10   : > { %8082 = vst.msk [vmem:[#allocation4 + $0x20] sm:$0xff] %vm439_vm0, %v15921_v0  ;;  %8083 = vst.msk [vmem:[#allocation4 + $0x28] sm:$0xff] %vm439_vm0, %v15921_v0  ;;  %s11914_s24 = sshll.u32 %s19774_s22, 3  ;;  %v12090_v7 = vld [vmem:[%s19302_s5 + $0x14] sm:$0xf]  ;;  %v15083_v10 = vpack.c.bf16 %v516_v9, %v514_v8  ;;  %v513_v11 = vld [vmem:[%s19301_s4] sm:$0xff] }
  0x11   : > { %8084 = vst.msk [vmem:[#allocation4 + $0x30] sm:$0xff] %vm439_vm0, %v15921_v0  ;;  %8085 = vst.msk [vmem:[#allocation4 + $0x38] sm:$0xff] %vm439_vm0, %v15921_v0  ;;  %s425_s27 = scalar_lea.vmem %s19298_s1, %s11914_s24  ;;  %s420_s30 = scalar_lea.vmem %s19297_s0, %s11914_s24  ;;  %v515_v12 = vld [vmem:[%s19301_s4 + $0x10] sm:$0xff]  ;;  %v518_v14 = vld [vmem:[%s19301_s4 + $0x28] sm:$0xff]  ;;  %vm529_vm4 = vcmask 523264  }
  0x12   : > { %8086 = vst.msk [vmem:[#allocation4 + $0x40] sm:$0xff] %vm439_vm0, %v15921_v0  ;;  %8087 = vst.msk [vmem:[#allocation4 + $0x48] sm:$0xff] %vm439_vm0, %v15921_v0  ;;  %v604_v2 = vld [vmem:[%s425_s27] sm:$0xff]  ;;  %v15085_v13 = vpack.c.bf16 %v515_v12, %v513_v11  ;;  %15084 = vmatprep.subr.bf16.mxu1 %v15083_v10  ;;  %v520_v15 = vld [vmem:[%s19301_s4 + $0x38] sm:$0xff]  ;;  %s12834_s15 = sshll.u32 %s19774_s22, 4 }
  0x13   : > { %8088 = vst.msk [vmem:[#allocation4 + $0x50] sm:$0xff] %vm439_vm0, %v15921_v0  ;;  %8089 = vst.msk [vmem:[#allocation4 + $0x58] sm:$0xff] %vm439_vm0, %v15921_v0  ;;  %v432_v3 = vld [vmem:[%s420_s30] sm:$0xff]  ;;  %608 = vxpose.xlu0.b32.start.end [1/1] (short) %v604_v2, 128  ;;  %v606_v4 = vcombine.high %v604_v2, %v604_v2  ;;  %v15087_v16 = vpack.c.bf16 %v520_v15, %v518_v14  ;;  %v519_v18 = vld [vmem:[%s19301_s4 + $0x30] sm:$0xff]  ;;  %s430_s18 = scalar_lea.vmem %s19309_s12, %s12834_s15 }
  0x14   : > { %8090 = vst.msk [vmem:[#allocation4 + $0x60] sm:$0xff] %vm439_vm0, %v15921_v0  ;;  %8091 = vst.msk [vmem:[#allocation4 + $0x68] sm:$0xff] %vm439_vm0, %v15921_v0  ;;  %13729 = vmatpush3.msra.mxu0 %v432_v3  ;;  %15086 = vmatpush1.bf16.msra.mxu1 %v15085_v13  ;;  %v517_v17 = vld [vmem:[%s19301_s4 + $0x20] sm:$0xff]  ;;  %v522_v20 = vld [vmem:[%s19301_s4 + $0x48] sm:$0xff] }
  0x15   : > { %8092 = vst.msk [vmem:[#allocation4 + $0x70] sm:$0xff] %vm439_vm0, %v15921_v0  ;;  %8093 = vst.msk [vmem:[#allocation4 + $0x78] sm:$0xff] %vm439_vm0, %v15921_v0  ;;  %13731 = vmatmul.mubr.msk.f32.vlgmr.msra.gmra.mrb[0].mxu0 %vm439_vm0, %v431_v1  ;;  %640 = vxpose.xlu1.b32.start.end [1/1] (short) %v606_v4, 128  ;;  %v15089_v19 = vpack.c.bf16 %v519_v18, %v517_v17  ;;  %v524_v21 = vld [vmem:[%s19301_s4 + $0x58] sm:$0xff]  ;;  %v521_v23 = vld [vmem:[%s19301_s4 + $0x40] sm:$0xff] }
  0x16   : > { %8094 = vst.msk [vmem:[#allocation4 + $0x80] sm:$0xff] %vm439_vm0, %v15921_v0  ;;  %8095 = vst.msk [vmem:[#allocation4 + $0x88] sm:$0xff] %vm439_vm0, %v15921_v0  ;;  %13933 = vmatprep.subr.msk.mxu0 %vm1005_vm3, %v16458_v5  ;;  %15088 = vmatprep.subr.bf16.mxu1 %v15087_v16  ;;  %v15091_v22 = vpack.c.bf16 %v524_v21, %v522_v20  ;;  %v523_v24 = vld [vmem:[%s19301_s4 + $0x50] sm:$0xff]  ;;  %v526_v26 = vld [vmem:[%s19301_s4 + $0x68] sm:$0xff] }
  0x17   : > { %8096 = vst.msk [vmem:[#allocation4 + $0x90] sm:$0xff] %vm439_vm0, %v15921_v0  ;;  %8097 = vst.msk [vmem:[#allocation4 + $0x98] sm:$0xff] %vm439_vm0, %v15921_v0  ;;  %13934 = vmatpush3.msk.msra.mxu0 %vm1005_vm3, %v16458_v5  ;;  %v15093_v25 = vpack.c.bf16 %v523_v24, %v521_v23  ;;  %v528_v27 = vld [vmem:[%s19301_s4 + $0x78] sm:$0xff]  ;;  %v525_v29 = vld [vmem:[%s19301_s4 + $0x60] sm:$0xff] }
  0x18   : > { %8098 = vst.msk [vmem:[#allocation4 + $0xa0] sm:$0xff] %vm439_vm0, %v15921_v0  ;;  %8099 = vst.msk [vmem:[#allocation4 + $0xa8] sm:$0xff] %vm439_vm0, %v15921_v0  ;;  %13983 = vmatprep.subr.msk.mxu0 %vm1005_vm3, %v12090_v7  ;;  %15090 = vmatpush1.bf16.msra.mxu1 %v15089_v19  ;;  %v15095_v28 = vpack.c.bf16 %v528_v27, %v526_v26  ;;  %v527_v30 = vld [vmem:[%s19301_s4 + $0x70] sm:$0xff]  ;;  %v433_v31 = vld [vmem:[%s19300_s3] sm:$0xf] }
  0x19   : > { %8100 = vst.msk [vmem:[#allocation4 + $0xb0] sm:$0xff] %vm439_vm0, %v15921_v0  ;;  %8101 = vst.msk [vmem:[#allocation4 + $0xb8] sm:$0xff] %vm439_vm0, %v15921_v0  ;;  %15092 = vmatprep.subr.bf16.mxu1 %v15091_v22  ;;  %v15097_v32 = vpack.c.bf16 %v527_v30, %v525_v29  ;;  %v16522_v33 = vld [vmem:[%s19302_s5 + $0x4] sm:$0xf]  ;;  %v16546_v44 = vld [vmem:[%s19302_s5 + $0x18] sm:$0xf] }
  0x1a   : > { %8102 = vst.msk [vmem:[#allocation4 + $0xc0] sm:$0xff] %vm439_vm0, %v15921_v0  ;;  %8103 = vst.msk [vmem:[#allocation4 + $0xc8] sm:$0xff] %vm439_vm0, %v15921_v0  ;;  %v16655_v26 = vld [vmem:[%s19302_s5 + $0x1c] sm:$0xf] }
  0x1b   : > { %8104 = vst.msk [vmem:[#allocation4 + $0xd0] sm:$0xff] %vm439_vm0, %v15921_v0  ;;  %8105 = vst.msk [vmem:[#allocation4 + $0xd8] sm:$0xff] %vm439_vm0, %v15921_v0 }
  0x1c   : > { %8106 = vst.msk [vmem:[#allocation4 + $0xe0] sm:$0xff] %vm439_vm0, %v15921_v0  ;;  %8107 = vst.msk [vmem:[#allocation4 + $0xe8] sm:$0xff] %vm439_vm0, %v15921_v0  ;;  %15094 = vmatpush1.bf16.msra.mxu1 %v15093_v25 }
  0x1d   : > { %8108 = vst.msk [vmem:[#allocation4 + $0xf0] sm:$0xff] %vm439_vm0, %v15921_v0  ;;  %8109 = vst.msk [vmem:[#allocation4 + $0xf8] sm:$0xff] %vm439_vm0, %v15921_v0  ;;  %15096 = vmatprep.subr.bf16.mxu1 %v15095_v28 }
  0x1e   : > { %8110 = vst.msk [vmem:[#allocation4 + $0x100] sm:$0xff] %vm439_vm0, %v15921_v0  ;;  %8111 = vst.msk [vmem:[#allocation4 + $0x108] sm:$0xff] %vm439_vm0, %v15921_v0 }
  0x1f   : > { %8112 = vst.msk [vmem:[#allocation4 + $0x110] sm:$0xff] %vm439_vm0, %v15921_v0  ;;  %8113 = vst.msk [vmem:[#allocation4 + $0x118] sm:$0xff] %vm439_vm0, %v15921_v0 }
  0x20   : > { %8114 = vst.msk [vmem:[#allocation4 + $0x120] sm:$0xff] %vm439_vm0, %v15921_v0  ;;  %8115 = vst.msk [vmem:[#allocation4 + $0x128] sm:$0xff] %vm439_vm0, %v15921_v0  ;;  %15098 = vmatpush1.bf16.msra.mxu1 %v15097_v32 }
  0x21   : > { %8116 = vst.msk [vmem:[#allocation4 + $0x130] sm:$0xff] %vm439_vm0, %v15921_v0  ;;  %8117 = vst.msk [vmem:[#allocation4 + $0x138] sm:$0xff] %vm439_vm0, %v15921_v0  ;;  %13733 = vmatprep.subr.msk.mxu1 %vm1005_vm3, %v16522_v33 }
  0x22   : > { %8118 = vst.msk [vmem:[#allocation4 + $0x140] sm:$0xff] %vm439_vm0, %v15921_v0  ;;  %8119 = vst.msk [vmem:[#allocation4 + $0x148] sm:$0xff] %vm439_vm0, %v15921_v0 }
  0x23   : > { %8120 = vst.msk [vmem:[#allocation4 + $0x150] sm:$0xff] %vm439_vm0, %v15921_v0  ;;  %8121 = vst.msk [vmem:[#allocation4 + $0x158] sm:$0xff] %vm439_vm0, %v15921_v0 }
  0x24   : > { %8122 = vst.msk [vmem:[#allocation4 + $0x160] sm:$0xff] %vm439_vm0, %v15921_v0  ;;  %8123 = vst.msk [vmem:[#allocation4 + $0x168] sm:$0xff] %vm439_vm0, %v15921_v0 }
  0x25   : > { %8124 = vst.msk [vmem:[#allocation4 + $0x170] sm:$0xff] %vm439_vm0, %v15921_v0  ;;  %8125 = vst.msk [vmem:[#allocation4 + $0x178] sm:$0xff] %vm439_vm0, %v15921_v0 }
  0x26   : > { %8126 = vst.msk [vmem:[#allocation4 + $0x180] sm:$0xff] %vm439_vm0, %v15921_v0  ;;  %8127 = vst.msk [vmem:[#allocation4 + $0x188] sm:$0xff] %vm439_vm0, %v15921_v0 }
  0x27   : > { %8128 = vst.msk [vmem:[#allocation4 + $0x190] sm:$0xff] %vm439_vm0, %v15921_v0  ;;  %8129 = vst.msk [vmem:[#allocation4 + $0x198] sm:$0xff] %vm439_vm0, %v15921_v0 }
  0x28   : > { %8130 = vst.msk [vmem:[#allocation4 + $0x1a0] sm:$0xff] %vm439_vm0, %v15921_v0  ;;  %8131 = vst.msk [vmem:[#allocation4 + $0x1a8] sm:$0xff] %vm439_vm0, %v15921_v0 }
  0x29   : > { %8132 = vst.msk [vmem:[#allocation4 + $0x1b0] sm:$0xff] %vm439_vm0, %v15921_v0  ;;  %8133 = vst.msk [vmem:[#allocation4 + $0x1b8] sm:$0xff] %vm439_vm0, %v15921_v0 }
  0x2a   : > { %8134 = vst.msk [vmem:[#allocation4 + $0x1c0] sm:$0xff] %vm439_vm0, %v15921_v0  ;;  %8135 = vst.msk [vmem:[#allocation4 + $0x1c8] sm:$0xff] %vm439_vm0, %v15921_v0 }
  0x2b   : > { %8136 = vst.msk [vmem:[#allocation4 + $0x1d0] sm:$0xff] %vm439_vm0, %v15921_v0  ;;  %8137 = vst.msk [vmem:[#allocation4 + $0x1d8] sm:$0xff] %vm439_vm0, %v15921_v0 }
  0x2c   : > { %8138 = vst.msk [vmem:[#allocation4 + $0x1e0] sm:$0xff] %vm439_vm0, %v15921_v0  ;;  %8139 = vst.msk [vmem:[#allocation4 + $0x1e8] sm:$0xff] %vm439_vm0, %v15921_v0 }
  0x2d   : > { %8140 = vst.msk [vmem:[#allocation4 + $0x1f0] sm:$0xff] %vm439_vm0, %v15921_v0  ;;  %8141 = vst.msk [vmem:[#allocation4 + $0x1f8] sm:$0xff] %vm439_vm0, %v15921_v0 }
  0x2e   : > { %8142 = vst.msk [vmem:[#allocation4 + $0x200] sm:$0xff] %vm439_vm0, %v15921_v0  ;;  %8143 = vst.msk [vmem:[#allocation4 + $0x208] sm:$0xff] %vm439_vm0, %v15921_v0 }
  0x2f   : > { %8144 = vst.msk [vmem:[#allocation4 + $0x210] sm:$0xff] %vm439_vm0, %v15921_v0  ;;  %8145 = vst.msk [vmem:[#allocation4 + $0x218] sm:$0xff] %vm439_vm0, %v15921_v0 }
  0x30   : > { %8146 = vst.msk [vmem:[#allocation4 + $0x220] sm:$0xff] %vm439_vm0, %v15921_v0  ;;  %8147 = vst.msk [vmem:[#allocation4 + $0x228] sm:$0xff] %vm439_vm0, %v15921_v0 }
  0x31   : > { %8148 = vst.msk [vmem:[#allocation4 + $0x230] sm:$0xff] %vm439_vm0, %v15921_v0  ;;  %8149 = vst.msk [vmem:[#allocation4 + $0x238] sm:$0xff] %vm439_vm0, %v15921_v0 }
  0x32   : > { %742 = vst.msk [vmem:[#allocation2 + $0x28] sm:$0xff] %vm736_vm2, %v15921_v0  ;;  %737 = vst.msk [vmem:[#allocation2] sm:$0xff] %vm736_vm2, %v15921_v0 }
  0x33   : > { %738 = vst.msk [vmem:[#allocation2 + $0x8] sm:$0xff] %vm736_vm2, %v15921_v0  ;;  %739 = vst.msk [vmem:[#allocation2 + $0x10] sm:$0xff] %vm736_vm2, %v15921_v0 }
  0x34   : > { %740 = vst.msk [vmem:[#allocation2 + $0x18] sm:$0xff] %vm736_vm2, %v15921_v0  ;;  %741 = vst.msk [vmem:[#allocation2 + $0x20] sm:$0xff] %vm736_vm2, %v15921_v0 }
  0x35   : > { %743 = vst.msk [vmem:[#allocation2 + $0x30] sm:$0xff] %vm736_vm2, %v15921_v0  ;;  %744 = vst.msk [vmem:[#allocation2 + $0x38] sm:$0xff] %vm736_vm2, %v15921_v0 }
  0x36   : > { %745 = vst.msk [vmem:[#allocation2 + $0x40] sm:$0xff] %vm736_vm2, %v15921_v0  ;;  %746 = vst.msk [vmem:[#allocation2 + $0x48] sm:$0xff] %vm736_vm2, %v15921_v0 }
  0x37   : > { %747 = vst.msk [vmem:[#allocation2 + $0x50] sm:$0xff] %vm736_vm2, %v15921_v0  ;;  %748 = vst.msk [vmem:[#allocation2 + $0x58] sm:$0xff] %vm736_vm2, %v15921_v0 }
  0x38   : > { %749 = vst.msk [vmem:[#allocation2 + $0x60] sm:$0xff] %vm736_vm2, %v15921_v0  ;;  %750 = vst.msk [vmem:[#allocation2 + $0x68] sm:$0xff] %vm736_vm2, %v15921_v0 }
  0x39   : > { %751 = vst.msk [vmem:[#allocation2 + $0x70] sm:$0xff] %vm736_vm2, %v15921_v0  ;;  %752 = vst.msk [vmem:[#allocation2 + $0x78] sm:$0xff] %vm736_vm2, %v15921_v0 }
  0x3a   : > { %753 = vst.msk [vmem:[#allocation2 + $0x80] sm:$0xff] %vm736_vm2, %v15921_v0  ;;  %754 = vst.msk [vmem:[#allocation2 + $0x88] sm:$0xff] %vm736_vm2, %v15921_v0 }
  0x3b   : > { %755 = vst.msk [vmem:[#allocation2 + $0x90] sm:$0xff] %vm736_vm2, %v15921_v0  ;;  %756 = vst.msk [vmem:[#allocation2 + $0x98] sm:$0xff] %vm736_vm2, %v15921_v0 }
  0x3c   : > { %757 = vst.msk [vmem:[#allocation2 + $0xa0] sm:$0xff] %vm736_vm2, %v15921_v0  ;;  %758 = vst.msk [vmem:[#allocation2 + $0xa8] sm:$0xff] %vm736_vm2, %v15921_v0  ;;  %15912 = vset.pattern.permute.xlu0 %v15923_v6 }
  0x3d   : > { %759 = vst.msk [vmem:[#allocation2 + $0xb0] sm:$0xff] %vm736_vm2, %v15921_v0  ;;  %760 = vst.msk [vmem:[#allocation2 + $0xb8] sm:$0xff] %vm736_vm2, %v15921_v0 }
  0x3e   : > { %761 = vst.msk [vmem:[#allocation2 + $0xc0] sm:$0xff] %vm736_vm2, %v15921_v0  ;;  %762 = vst.msk [vmem:[#allocation2 + $0xc8] sm:$0xff] %vm736_vm2, %v15921_v0 }
  0x3f   : > { %763 = vst.msk [vmem:[#allocation2 + $0xd0] sm:$0xff] %vm736_vm2, %v15921_v0  ;;  %764 = vst.msk [vmem:[#allocation2 + $0xd8] sm:$0xff] %vm736_vm2, %v15921_v0 }
  0x40   : > { %765 = vst.msk [vmem:[#allocation2 + $0xe0] sm:$0xff] %vm736_vm2, %v15921_v0  ;;  %766 = vst.msk [vmem:[#allocation2 + $0xe8] sm:$0xff] %vm736_vm2, %v15921_v0 }
  0x41   : > { %767 = vst.msk [vmem:[#allocation2 + $0xf0] sm:$0xff] %vm736_vm2, %v15921_v0  ;;  %768 = vst.msk [vmem:[#allocation2 + $0xf8] sm:$0xff] %vm736_vm2, %v15921_v0 }
  0x42   : > { %769 = vst.msk [vmem:[#allocation2 + $0x100] sm:$0xff] %vm736_vm2, %v15921_v0  ;;  %770 = vst.msk [vmem:[#allocation2 + $0x108] sm:$0xff] %vm736_vm2, %v15921_v0 }
  0x43   : > { %771 = vst.msk [vmem:[#allocation2 + $0x110] sm:$0xff] %vm736_vm2, %v15921_v0  ;;  %772 = vst.msk [vmem:[#allocation2 + $0x118] sm:$0xff] %vm736_vm2, %v15921_v0 }
  0x44   : > { %773 = vst.msk [vmem:[#allocation2 + $0x120] sm:$0xff] %vm736_vm2, %v15921_v0  ;;  %774 = vst.msk [vmem:[#allocation2 + $0x128] sm:$0xff] %vm736_vm2, %v15921_v0 }
  0x45   : > { %775 = vst.msk [vmem:[#allocation2 + $0x130] sm:$0xff] %vm736_vm2, %v15921_v0  ;;  %776 = vst.msk [vmem:[#allocation2 + $0x138] sm:$0xff] %vm736_vm2, %v15921_v0 }
  0x46   : > { %777 = vst.msk [vmem:[#allocation2 + $0x140] sm:$0xff] %vm736_vm2, %v15921_v0  ;;  %778 = vst.msk [vmem:[#allocation2 + $0x148] sm:$0xff] %vm736_vm2, %v15921_v0 }
  0x47   : > { %779 = vst.msk [vmem:[#allocation2 + $0x150] sm:$0xff] %vm736_vm2, %v15921_v0  ;;  %780 = vst.msk [vmem:[#allocation2 + $0x158] sm:$0xff] %vm736_vm2, %v15921_v0 }
  0x48   : > { %781 = vst.msk [vmem:[#allocation2 + $0x160] sm:$0xff] %vm736_vm2, %v15921_v0  ;;  %782 = vst.msk [vmem:[#allocation2 + $0x168] sm:$0xff] %vm736_vm2, %v15921_v0 }
  0x49   : > { %783 = vst.msk [vmem:[#allocation2 + $0x170] sm:$0xff] %vm736_vm2, %v15921_v0  ;;  %784 = vst.msk [vmem:[#allocation2 + $0x178] sm:$0xff] %vm736_vm2, %v15921_v0 }
  0x4a   : > { %785 = vst.msk [vmem:[#allocation2 + $0x180] sm:$0xff] %vm736_vm2, %v15921_v0  ;;  %786 = vst.msk [vmem:[#allocation2 + $0x188] sm:$0xff] %vm736_vm2, %v15921_v0 }
  0x4b   : > { %787 = vst.msk [vmem:[#allocation2 + $0x190] sm:$0xff] %vm736_vm2, %v15921_v0  ;;  %788 = vst.msk [vmem:[#allocation2 + $0x198] sm:$0xff] %vm736_vm2, %v15921_v0 }
  0x4c   : > { %789 = vst.msk [vmem:[#allocation2 + $0x1a0] sm:$0xff] %vm736_vm2, %v15921_v0  ;;  %790 = vst.msk [vmem:[#allocation2 + $0x1a8] sm:$0xff] %vm736_vm2, %v15921_v0 }
  0x4d   : > { %791 = vst.msk [vmem:[#allocation2 + $0x1b0] sm:$0xff] %vm736_vm2, %v15921_v0  ;;  %792 = vst.msk [vmem:[#allocation2 + $0x1b8] sm:$0xff] %vm736_vm2, %v15921_v0 }
  0x4e   : > { %793 = vst.msk [vmem:[#allocation2 + $0x1c0] sm:$0xff] %vm736_vm2, %v15921_v0  ;;  %794 = vst.msk [vmem:[#allocation2 + $0x1c8] sm:$0xff] %vm736_vm2, %v15921_v0 }
  0x4f   : > { %795 = vst.msk [vmem:[#allocation2 + $0x1d0] sm:$0xff] %vm736_vm2, %v15921_v0  ;;  %796 = vst.msk [vmem:[#allocation2 + $0x1d8] sm:$0xff] %vm736_vm2, %v15921_v0 }
  0x50   : > { %797 = vst.msk [vmem:[#allocation2 + $0x1e0] sm:$0xff] %vm736_vm2, %v15921_v0  ;;  %798 = vst.msk [vmem:[#allocation2 + $0x1e8] sm:$0xff] %vm736_vm2, %v15921_v0 }
  0x51   : > { %799 = vst.msk [vmem:[#allocation2 + $0x1f0] sm:$0xff] %vm736_vm2, %v15921_v0  ;;  %800 = vst.msk [vmem:[#allocation2 + $0x1f8] sm:$0xff] %vm736_vm2, %v15921_v0 }
  0x52   : > { %801 = vst.msk [vmem:[#allocation2 + $0x200] sm:$0xff] %vm736_vm2, %v15921_v0  ;;  %802 = vst.msk [vmem:[#allocation2 + $0x208] sm:$0xff] %vm736_vm2, %v15921_v0 }
  0x53   : > { %803 = vst.msk [vmem:[#allocation2 + $0x210] sm:$0xff] %vm736_vm2, %v15921_v0  ;;  %804 = vst.msk [vmem:[#allocation2 + $0x218] sm:$0xff] %vm736_vm2, %v15921_v0 }
  0x54   : > { %805 = vst.msk [vmem:[#allocation2 + $0x220] sm:$0xff] %vm736_vm2, %v15921_v0  ;;  %806 = vst.msk [vmem:[#allocation2 + $0x228] sm:$0xff] %vm736_vm2, %v15921_v0 }
  0x55   : > { %807 = vst.msk [vmem:[#allocation2 + $0x230] sm:$0xff] %vm736_vm2, %v15921_v0  ;;  %808 = vst.msk [vmem:[#allocation2 + $0x238] sm:$0xff] %vm736_vm2, %v15921_v0 }
  0x56   : > { %4289 = vst.msk [vmem:[#allocation3] sm:$0xff] %vm736_vm2, %v15921_v0  ;;  %4290 = vst.msk [vmem:[#allocation3 + $0x8] sm:$0xff] %vm736_vm2, %v15921_v0 }
  0x57   : > { %4291 = vst.msk [vmem:[#allocation3 + $0x10] sm:$0xff] %vm736_vm2, %v15921_v0  ;;  %4292 = vst.msk [vmem:[#allocation3 + $0x18] sm:$0xff] %vm736_vm2, %v15921_v0 }
  0x58   : > { %4293 = vst.msk [vmem:[#allocation3 + $0x20] sm:$0xff] %vm736_vm2, %v15921_v0  ;;  %4294 = vst.msk [vmem:[#allocation3 + $0x28] sm:$0xff] %vm736_vm2, %v15921_v0 }
  0x59   : > { %4295 = vst.msk [vmem:[#allocation3 + $0x30] sm:$0xff] %vm736_vm2, %v15921_v0  ;;  %4296 = vst.msk [vmem:[#allocation3 + $0x38] sm:$0xff] %vm736_vm2, %v15921_v0 }
  0x5a   : > { %4297 = vst.msk [vmem:[#allocation3 + $0x40] sm:$0xff] %vm736_vm2, %v15921_v0  ;;  %4298 = vst.msk [vmem:[#allocation3 + $0x48] sm:$0xff] %vm736_vm2, %v15921_v0 }
  0x5b   : > { %4299 = vst.msk [vmem:[#allocation3 + $0x50] sm:$0xff] %vm736_vm2, %v15921_v0  ;;  %4300 = vst.msk [vmem:[#allocation3 + $0x58] sm:$0xff] %vm736_vm2, %v15921_v0 }
  0x5c   : > { %4301 = vst.msk [vmem:[#allocation3 + $0x60] sm:$0xff] %vm736_vm2, %v15921_v0  ;;  %4302 = vst.msk [vmem:[#allocation3 + $0x68] sm:$0xff] %vm736_vm2, %v15921_v0 }
  0x5d   : > { %4303 = vst.msk [vmem:[#allocation3 + $0x70] sm:$0xff] %vm736_vm2, %v15921_v0  ;;  %4304 = vst.msk [vmem:[#allocation3 + $0x78] sm:$0xff] %vm736_vm2, %v15921_v0 }
  0x5e   : > { %4305 = vst.msk [vmem:[#allocation3 + $0x80] sm:$0xff] %vm736_vm2, %v15921_v0  ;;  %4306 = vst.msk [vmem:[#allocation3 + $0x88] sm:$0xff] %vm736_vm2, %v15921_v0 }
  0x5f   : > { %4307 = vst.msk [vmem:[#allocation3 + $0x90] sm:$0xff] %vm736_vm2, %v15921_v0  ;;  %4308 = vst.msk [vmem:[#allocation3 + $0x98] sm:$0xff] %vm736_vm2, %v15921_v0 }
  0x60   : > { %4309 = vst.msk [vmem:[#allocation3 + $0xa0] sm:$0xff] %vm736_vm2, %v15921_v0  ;;  %4310 = vst.msk [vmem:[#allocation3 + $0xa8] sm:$0xff] %vm736_vm2, %v15921_v0 }
  0x61   : > { %4311 = vst.msk [vmem:[#allocation3 + $0xb0] sm:$0xff] %vm736_vm2, %v15921_v0  ;;  %4312 = vst.msk [vmem:[#allocation3 + $0xb8] sm:$0xff] %vm736_vm2, %v15921_v0 }
  0x62   : > { %4313 = vst.msk [vmem:[#allocation3 + $0xc0] sm:$0xff] %vm736_vm2, %v15921_v0  ;;  %4314 = vst.msk [vmem:[#allocation3 + $0xc8] sm:$0xff] %vm736_vm2, %v15921_v0 }
  0x63   : > { %4315 = vst.msk [vmem:[#allocation3 + $0xd0] sm:$0xff] %vm736_vm2, %v15921_v0  ;;  %4316 = vst.msk [vmem:[#allocation3 + $0xd8] sm:$0xff] %vm736_vm2, %v15921_v0 }
  0x64   : > { %4317 = vst.msk [vmem:[#allocation3 + $0xe0] sm:$0xff] %vm736_vm2, %v15921_v0  ;;  %4318 = vst.msk [vmem:[#allocation3 + $0xe8] sm:$0xff] %vm736_vm2, %v15921_v0 }
  0x65   : > { %4319 = vst.msk [vmem:[#allocation3 + $0xf0] sm:$0xff] %vm736_vm2, %v15921_v0  ;;  %4320 = vst.msk [vmem:[#allocation3 + $0xf8] sm:$0xff] %vm736_vm2, %v15921_v0 }
  0x66   : > { %4321 = vst.msk [vmem:[#allocation3 + $0x100] sm:$0xff] %vm736_vm2, %v15921_v0  ;;  %4322 = vst.msk [vmem:[#allocation3 + $0x108] sm:$0xff] %vm736_vm2, %v15921_v0 }
  0x67   : > { %4323 = vst.msk [vmem:[#allocation3 + $0x110] sm:$0xff] %vm736_vm2, %v15921_v0  ;;  %4324 = vst.msk [vmem:[#allocation3 + $0x118] sm:$0xff] %vm736_vm2, %v15921_v0 }
  0x68   : > { %4325 = vst.msk [vmem:[#allocation3 + $0x120] sm:$0xff] %vm736_vm2, %v15921_v0  ;;  %4326 = vst.msk [vmem:[#allocation3 + $0x128] sm:$0xff] %vm736_vm2, %v15921_v0 }
  0x69   : > { %4327 = vst.msk [vmem:[#allocation3 + $0x130] sm:$0xff] %vm736_vm2, %v15921_v0  ;;  %4328 = vst.msk [vmem:[#allocation3 + $0x138] sm:$0xff] %vm736_vm2, %v15921_v0 }
  0x6a   : > { %4329 = vst.msk [vmem:[#allocation3 + $0x140] sm:$0xff] %vm736_vm2, %v15921_v0  ;;  %4330 = vst.msk [vmem:[#allocation3 + $0x148] sm:$0xff] %vm736_vm2, %v15921_v0 }
  0x6b   : > { %4331 = vst.msk [vmem:[#allocation3 + $0x150] sm:$0xff] %vm736_vm2, %v15921_v0  ;;  %4332 = vst.msk [vmem:[#allocation3 + $0x158] sm:$0xff] %vm736_vm2, %v15921_v0 }
  0x6c   : > { %4333 = vst.msk [vmem:[#allocation3 + $0x160] sm:$0xff] %vm736_vm2, %v15921_v0  ;;  %4334 = vst.msk [vmem:[#allocation3 + $0x168] sm:$0xff] %vm736_vm2, %v15921_v0 }
  0x6d   : > { %4335 = vst.msk [vmem:[#allocation3 + $0x170] sm:$0xff] %vm736_vm2, %v15921_v0  ;;  %4336 = vst.msk [vmem:[#allocation3 + $0x178] sm:$0xff] %vm736_vm2, %v15921_v0 }
  0x6e   : > { %4337 = vst.msk [vmem:[#allocation3 + $0x180] sm:$0xff] %vm736_vm2, %v15921_v0  ;;  %4338 = vst.msk [vmem:[#allocation3 + $0x188] sm:$0xff] %vm736_vm2, %v15921_v0 }
  0x6f   : > { %4339 = vst.msk [vmem:[#allocation3 + $0x190] sm:$0xff] %vm736_vm2, %v15921_v0  ;;  %4340 = vst.msk [vmem:[#allocation3 + $0x198] sm:$0xff] %vm736_vm2, %v15921_v0 }
  0x70   : > { %4341 = vst.msk [vmem:[#allocation3 + $0x1a0] sm:$0xff] %vm736_vm2, %v15921_v0  ;;  %4342 = vst.msk [vmem:[#allocation3 + $0x1a8] sm:$0xff] %vm736_vm2, %v15921_v0 }
  0x71   : > { %4343 = vst.msk [vmem:[#allocation3 + $0x1b0] sm:$0xff] %vm736_vm2, %v15921_v0  ;;  %4344 = vst.msk [vmem:[#allocation3 + $0x1b8] sm:$0xff] %vm736_vm2, %v15921_v0 }
  0x72   : > { %4345 = vst.msk [vmem:[#allocation3 + $0x1c0] sm:$0xff] %vm736_vm2, %v15921_v0  ;;  %4346 = vst.msk [vmem:[#allocation3 + $0x1c8] sm:$0xff] %vm736_vm2, %v15921_v0 }
  0x73   : > { %4347 = vst.msk [vmem:[#allocation3 + $0x1d0] sm:$0xff] %vm736_vm2, %v15921_v0  ;;  %4348 = vst.msk [vmem:[#allocation3 + $0x1d8] sm:$0xff] %vm736_vm2, %v15921_v0 }
  0x74   : > { %4349 = vst.msk [vmem:[#allocation3 + $0x1e0] sm:$0xff] %vm736_vm2, %v15921_v0  ;;  %4350 = vst.msk [vmem:[#allocation3 + $0x1e8] sm:$0xff] %vm736_vm2, %v15921_v0 }
  0x75   : > { %4351 = vst.msk [vmem:[#allocation3 + $0x1f0] sm:$0xff] %vm736_vm2, %v15921_v0  ;;  %4352 = vst.msk [vmem:[#allocation3 + $0x1f8] sm:$0xff] %vm736_vm2, %v15921_v0 }
  0x76   : > { %4353 = vst.msk [vmem:[#allocation3 + $0x200] sm:$0xff] %vm736_vm2, %v15921_v0  ;;  %4354 = vst.msk [vmem:[#allocation3 + $0x208] sm:$0xff] %vm736_vm2, %v15921_v0 }
  0x77   : > { %4355 = vst.msk [vmem:[#allocation3 + $0x210] sm:$0xff] %vm736_vm2, %v15921_v0  ;;  %4356 = vst.msk [vmem:[#allocation3 + $0x218] sm:$0xff] %vm736_vm2, %v15921_v0 }
  0x78   : > { %4357 = vst.msk [vmem:[#allocation3 + $0x220] sm:$0xff] %vm736_vm2, %v15921_v0  ;;  %4358 = vst.msk [vmem:[#allocation3 + $0x228] sm:$0xff] %vm736_vm2, %v15921_v0  ;;  %436 = vperm.xlu0 %15912, %v433_v31  }
  0x79   : > { %4359 = vst.msk [vmem:[#allocation3 + $0x230] sm:$0xff] %vm736_vm2, %v15921_v0  ;;  %4360 = vst.msk [vmem:[#allocation3 + $0x238] sm:$0xff] %vm736_vm2, %v15921_v0 }
  0x93   : > { %v624_v34 = vpop.trf.xlu0 }
  0x94   : > { %810 = vst.msk [vmem:[#allocation2 + $0x28] sm:$0xff] %vm736_vm2, %v624_v34 }
  0x95   : > { %v656_v35 = vpop.trf.xlu1 }
  0x96   : > { %826 = vst.msk [vmem:[#allocation2 + $0x128] sm:$0xff] %vm736_vm2, %v656_v35 }
  0x97   : > { %v625_v36 = vpop.trf.xlu0 }
  0x98   : > { %811 = vst.msk [vmem:[#allocation2 + $0x30] sm:$0xff] %vm736_vm2, %v625_v36 }
  0x99   : > { %v657_v37 = vpop.trf.xlu1 }
  0x9a   : > { %827 = vst.msk [vmem:[#allocation2 + $0x130] sm:$0xff] %vm736_vm2, %v657_v37 }
  0x9b   : > { %v626_v38 = vpop.trf.xlu0  ;;  %v16530_v39 = vld [vmem:[#allocation2 + $0x28] sm:$0xff] }
  0x9c   : > { %812 = vst.msk [vmem:[#allocation2 + $0x48] sm:$0xff] %vm736_vm2, %v626_v38  ;;  %13935 = vmatprep.mubr.msk.f32.mxu0 %vm736_vm2, %v16530_v39 }
  0x9d   : > { %v658_v40 = vpop.trf.xlu1  ;;  %v16626_v19 = vld [vmem:[#allocation2 + $0x128] sm:$0xff] }
  0x9e   : > { %828 = vst.msk [vmem:[#allocation2 + $0x148] sm:$0xff] %vm736_vm2, %v658_v40 }
  0x9f   : > { %v627_v41 = vpop.trf.xlu0  ;;  %v16536_v42 = vld [vmem:[#allocation2 + $0x30] sm:$0xff] }
  0xa0   : > { %813 = vst.msk [vmem:[#allocation2 + $0x50] sm:$0xff] %vm736_vm2, %v627_v41  ;;  %13936 = vmatmul.mubr.msk.f32.vlgmr.msra.gmra.mrb[2].mxu0 %vm736_vm2, %v16536_v42  ;;  %v16646_v24 = vld [vmem:[#allocation2 + $0x29] sm:$0xff]  ;;  %v16650_v25 = vld [vmem:[#allocation2 + $0x31] sm:$0xff] }
  0xa1   : > { %v659_v43 = vpop.trf.xlu1  ;;  %13984 = vmatpush3.msk.msra.mxu0 %vm1005_vm3, %v12090_v7  ;;  %v16634_v21 = vld [vmem:[#allocation2 + $0x130] sm:$0xff] }
  0xa2   : > { %829 = vst.msk [vmem:[#allocation2 + $0x150] sm:$0xff] %vm736_vm2, %v659_v43  ;;  %14033 = vmatprep.subr.msk.mxu0 %vm1005_vm3, %v16546_v44 }
  0xa3   : > { %v628_v45 = vpop.trf.xlu0  ;;  %v16548_v46 = vld [vmem:[#allocation2 + $0x48] sm:$0xff] }
  0xa4   : > { %814 = vst.msk [vmem:[#allocation2 + $0x68] sm:$0xff] %vm736_vm2, %v628_v45  ;;  %13938 = vmatprep.mubr.msk.f32.mxu0 %vm736_vm2, %v16548_v46  ;;  %v875_v45 = vld [vmem:[#allocation2 + $0x8] sm:$0xff] }
  0xa5   : > { %v660_v47 = vpop.trf.xlu1  ;;  %v16636_v22 = vld [vmem:[#allocation2 + $0x148] sm:$0xff] }
  0xa6   : > { %830 = vst.msk [vmem:[#allocation2 + $0x168] sm:$0xff] %vm736_vm2, %v660_v47  ;;  %v874_v47 = vld [vmem:[%s19302_s5] sm:$0xf] }
  0xa7   : > { %v629_v48 = vpop.trf.xlu0  ;;  %v16556_v49 = vld [vmem:[#allocation2 + $0x50] sm:$0xff] }
  0xa8   : > { %815 = vst.msk [vmem:[#allocation2 + $0x70] sm:$0xff] %vm736_vm2, %v629_v48  ;;  %13939 = vmatmul.mubr.msk.f32.gmra.mrb[4].mxu0 %vm736_vm2, %v16556_v49  ;;  %v16659_v27 = vld [vmem:[#allocation2 + $0x49] sm:$0xff]  ;;  %v16667_v28 = vld [vmem:[#allocation2 + $0x51] sm:$0xff] }
  0xa9   : > { %v661_v50 = vpop.trf.xlu1  ;;  %v16642_v23 = vld [vmem:[#allocation2 + $0x150] sm:$0xff] }
  0xaa   : > { %831 = vst.msk [vmem:[#allocation2 + $0x170] sm:$0xff] %vm736_vm2, %v661_v50  ;;  %v876_v50 = vld [vmem:[#allocation2 + $0x10] sm:$0xff] }
  0xab   : > { %v630_v51 = vpop.trf.xlu0  ;;  %v16562_v52 = vld [vmem:[#allocation2 + $0x68] sm:$0xff] }
  0xac   : > { %816 = vst.msk [vmem:[#allocation2 + $0x88] sm:$0xff] %vm736_vm2, %v630_v51  ;;  %13941 = vmatprep.mubr.msk.f32.mxu0 %vm736_vm2, %v16562_v52 }
  0xad   : > { %v662_v53 = vpop.trf.xlu1 }
  0xae   : > { %832 = vst.msk [vmem:[#allocation2 + $0x188] sm:$0xff] %vm736_vm2, %v662_v53  ;;  %v16725_v53 = vld [vmem:[%s19302_s5 + $0x8] sm:$0xf] }
  0xaf   : > { %v631_v54 = vpop.trf.xlu0  ;;  %v16568_v55 = vld [vmem:[#allocation2 + $0x70] sm:$0xff] }
  0xb0   : > { %817 = vst.msk [vmem:[#allocation2 + $0x90] sm:$0xff] %vm736_vm2, %v631_v54  ;;  %13942 = vmatmul.mubr.msk.f32.gmra.mrb[6].mxu0 %vm736_vm2, %v16568_v55  ;;  %v16671_v30 = vld [vmem:[#allocation2 + $0x69] sm:$0xff]  ;;  %v16675_v32 = vld [vmem:[#allocation2 + $0x71] sm:$0xff] }
  0xb1   : > { %v663_v56 = vpop.trf.xlu1 }
  0xb2   : > { %833 = vst.msk [vmem:[#allocation2 + $0x190] sm:$0xff] %vm736_vm2, %v663_v56  ;;  %v16741_v56 = vld [vmem:[#allocation2 + $0x131] sm:$0xff] }
  0xb3   : > { %v632_v57 = vpop.trf.xlu0  ;;  %v16574_v58 = vld [vmem:[#allocation2 + $0x88] sm:$0xff]  ;;  %19485 = vst [vmem:[#allocation10_spill] sm:$0xff] %v16741_v56 }
  0xb4   : > { %818 = vst.msk [vmem:[#allocation2 + $0xa8] sm:$0xff] %vm736_vm2, %v632_v57  ;;  %13944 = vmatprep.mubr.msk.f32.mxu0 %vm736_vm2, %v16574_v58  ;;  %v16745_v57 = vld [vmem:[#allocation2 + $0x149] sm:$0xff] }
  0xb5   : > { %v664_v59 = vpop.trf.xlu1  ;;  %19486 = vst [vmem:[#allocation11_spill] sm:$0xff] %v16745_v57 }
  0xb6   : > { %834 = vst.msk [vmem:[#allocation2 + $0x1a8] sm:$0xff] %vm736_vm2, %v664_v59  ;;  %v16757_v59 = vld [vmem:[#allocation2 + $0x169] sm:$0xff] }
  0xb7   : > { %v633_v60 = vpop.trf.xlu0  ;;  %v16580_v61 = vld [vmem:[#allocation2 + $0x90] sm:$0xff]  ;;  %19488 = vst [vmem:[#allocation13_spill] sm:$0xff] %v16757_v59 }
  0xb8   : > { %819 = vst.msk [vmem:[#allocation2 + $0xb0] sm:$0xff] %vm736_vm2, %v633_v60  ;;  %13945 = vmatmul.mubr.msk.f32.gmra.mrb[8].mxu0 %vm736_vm2, %v16580_v61  ;;  %v16679_v34 = vld [vmem:[#allocation2 + $0x89] sm:$0xff]  ;;  %v16683_v35 = vld [vmem:[#allocation2 + $0x91] sm:$0xff] }
  0xb9   : > { %v665_v62 = vpop.trf.xlu1  ;;  %v16769_v60 = vld [vmem:[#allocation2 + $0x189] sm:$0xff] }
  0xba   : > { %835 = vst.msk [vmem:[#allocation2 + $0x1b0] sm:$0xff] %vm736_vm2, %v665_v62  ;;  %19490 = vst [vmem:[#allocation15_spill] sm:$0xff] %v16769_v60  ;;  %v16777_v62 = vld [vmem:[#allocation2 + $0x191] sm:$0xff] }
  0xbb   : > { %v634_v63 = vpop.trf.xlu0  ;;  %v16586_v0 = vld [vmem:[#allocation2 + $0xa8] sm:$0xff]  ;;  %19491 = vst [vmem:[#allocation16_spill] sm:$0xff] %v16777_v62 }
  0xbc   : > { %820 = vst.msk [vmem:[#allocation2 + $0xc8] sm:$0xff] %vm736_vm2, %v634_v63  ;;  %13947 = vmatprep.mubr.msk.f32.mxu0 %vm736_vm2, %v16586_v0 }
  0xbd   : > { %v666_v1 = vpop.trf.xlu1 }
  0xbe   : > { %836 = vst.msk [vmem:[#allocation2 + $0x1c8] sm:$0xff] %vm736_vm2, %v666_v1 }
  0xbf   : > { %v635_v2 = vpop.trf.xlu0  ;;  %v16592_v3 = vld [vmem:[#allocation2 + $0xb0] sm:$0xff] }
  0xc0   : > { %821 = vst.msk [vmem:[#allocation2 + $0xd0] sm:$0xff] %vm736_vm2, %v635_v2  ;;  %13948 = vmatmul.mubr.msk.f32.gmra.mrb[10].mxu0 %vm736_vm2, %v16592_v3  ;;  %v16687_v36 = vld [vmem:[#allocation2 + $0xa9] sm:$0xff]  ;;  %v16691_v37 = vld [vmem:[#allocation2 + $0xb1] sm:$0xff] }
  0xc1   : > { %v667_v4 = vpop.trf.xlu1  ;;  %v16781_v63 = vld [vmem:[#allocation2 + $0x1a9] sm:$0xff]  ;;  %v16789_v1 = vld [vmem:[#allocation2 + $0x1b1] sm:$0xff] }
  0xc2   : > { %837 = vst.msk [vmem:[#allocation2 + $0x1d0] sm:$0xff] %vm736_vm2, %v667_v4  ;;  %19492 = vst [vmem:[#allocation17_spill] sm:$0xff] %v16781_v63 }
  0xc3   : > { %v636_v6 = vpop.trf.xlu0  ;;  %v16598_v7 = vld [vmem:[#allocation2 + $0xc8] sm:$0xff]  ;;  %19493 = vst [vmem:[#allocation18_spill] sm:$0xff] %v16789_v1 }
  0xc4   : > { %822 = vst.msk [vmem:[#allocation2 + $0xe8] sm:$0xff] %vm736_vm2, %v636_v6  ;;  %13950 = vmatprep.mubr.msk.f32.mxu0 %vm736_vm2, %v16598_v7 }
  0xc5   : > { %v668_v8 = vpop.trf.xlu1 }
  0xc6   : > { %838 = vst.msk [vmem:[#allocation2 + $0x1e8] sm:$0xff] %vm736_vm2, %v668_v8 }
  0xc7   : > { %v637_v9 = vpop.trf.xlu0  ;;  %v16604_v10 = vld [vmem:[#allocation2 + $0xd0] sm:$0xff] }
  0xc8   : > { %823 = vst.msk [vmem:[#allocation2 + $0xf0] sm:$0xff] %vm736_vm2, %v637_v9  ;;  %13951 = vmatmul.mubr.msk.f32.gmra.mrb[12].mxu0 %vm736_vm2, %v16604_v10  ;;  %v16695_v38 = vld [vmem:[#allocation2 + $0xc9] sm:$0xff]  ;;  %v16699_v41 = vld [vmem:[#allocation2 + $0xd1] sm:$0xff] }
  0xc9   : > { %v669_v11 = vpop.trf.xlu1  ;;  %v16793_v2 = vld [vmem:[#allocation2 + $0x1c9] sm:$0xff]  ;;  %v16801_v4 = vld [vmem:[#allocation2 + $0x1d1] sm:$0xff] }
  0xca   : > { %839 = vst.msk [vmem:[#allocation2 + $0x1f0] sm:$0xff] %vm736_vm2, %v669_v11  ;;  %19494 = vst [vmem:[#allocation19_spill] sm:$0xff] %v16793_v2 }
  0xcb   : > { %v638_v12 = vpop.trf.xlu0  ;;  %v16610_v13 = vld [vmem:[#allocation2 + $0xe8] sm:$0xff]  ;;  %19495 = vst [vmem:[#allocation20_spill] sm:$0xff] %v16801_v4 }
  0xcc   : > { %824 = vst.msk [vmem:[#allocation2 + $0x108] sm:$0xff] %vm736_vm2, %v638_v12  ;;  %13953 = vmatprep.mubr.msk.f32.mxu0 %vm736_vm2, %v16610_v13  ;;  %v16833_v12 = vld [vmem:[#allocation2 + $0x47] sm:$0xff] }
  0xcd   : > { %v670_v14 = vpop.trf.xlu1  ;;  %19500 = vst [vmem:[#allocation25_spill] sm:$0xff] %v16833_v12 }
  0xce   : > { %840 = vst.msk [vmem:[#allocation2 + $0x208] sm:$0xff] %vm736_vm2, %v670_v14  ;;  %v16839_v14 = vld [vmem:[#allocation2 + $0x4f] sm:$0xff] }
  0xcf   : > { %v639_v15 = vpop.trf.xlu0  ;;  %v16616_v16 = vld [vmem:[#allocation2 + $0xf0] sm:$0xff]  ;;  %19501 = vst [vmem:[#allocation26_spill] sm:$0xff] %v16839_v14 }
  0xd0   : > { %825 = vst.msk [vmem:[#allocation2 + $0x110] sm:$0xff] %vm736_vm2, %v639_v15  ;;  %13954 = vmatmul.mubr.msk.f32.gmra.mrb[14].mxu0 %vm736_vm2, %v16616_v16  ;;  %v16710_v48 = vld [vmem:[#allocation2 + $0xf1] sm:$0xff]  ;;  %v16846_v15 = vld [vmem:[%s19302_s5 + $0x20] sm:$0xf] }
  0xd1   : > { %v671_v17 = vpop.trf.xlu1  ;;  %19481 = vst [vmem:[#allocation6_spill] sm:$0xff] %v16710_v48  ;;  %v16805_v6 = vld [vmem:[#allocation2 + $0x1e9] sm:$0xff]  ;;  %v16813_v8 = vld [vmem:[#allocation2 + $0x1f1] sm:$0xff] }
  0xd2   : > { %841 = vst.msk [vmem:[#allocation2 + $0x210] sm:$0xff] %vm736_vm2, %v671_v17  ;;  %19496 = vst [vmem:[#allocation21_spill] sm:$0xff] %v16805_v6  ;;  %v16850_v17 = vld [vmem:[#allocation2 + $0x67] sm:$0xff] }
  0xd3   : > { %v16622_v18 = vld [vmem:[#allocation2 + $0x108] sm:$0xff]  ;;  %19497 = vst [vmem:[#allocation22_spill] sm:$0xff] %v16813_v8  ;;  %19502 = vst [vmem:[#allocation27_spill] sm:$0xff] %v16850_v17 }
  0xd4   : > { %13956 = vmatprep.mubr.msk.f32.mxu0 %vm736_vm2, %v16622_v18 }
  0xd7   : > { %v16628_v20 = vld [vmem:[#allocation2 + $0x110] sm:$0xff] }
  0xd8   : > { %13957 = vmatmul.mubr.msk.f32.gmra.mrb[16].mxu0 %vm736_vm2, %v16628_v20  ;;  %v16717_v51 = vld [vmem:[#allocation2 + $0x109] sm:$0xff]  ;;  %v16732_v54 = vld [vmem:[#allocation2 + $0x111] sm:$0xff] }
  0xd9   : > { %13959 = vmatprep.mubr.msk.f32.mxu0 %vm736_vm2, %v16626_v19  ;;  %19482 = vst [vmem:[#allocation7_spill] sm:$0xff] %v16717_v51  ;;  %19484 = vst [vmem:[#allocation9_spill] sm:$0xff] %v16732_v54  ;;  %v16817_v9 = vld [vmem:[#allocation2 + $0x209] sm:$0xff]  ;;  %v16825_v11 = vld [vmem:[#allocation2 + $0x211] sm:$0xff] }
  0xda   : > { %19498 = vst [vmem:[#allocation23_spill] sm:$0xff] %v16817_v9  ;;  %19499 = vst [vmem:[#allocation24_spill] sm:$0xff] %v16825_v11 }
  0xdc   : > { %13960 = vmatmul.mubr.msk.f32.gmra.mrb[18].mxu0 %vm736_vm2, %v16634_v21 }
  0xdd   : > { %13962 = vmatprep.mubr.msk.f32.mxu0 %vm736_vm2, %v16636_v22 }
  0xe0   : > { %13963 = vmatmul.mubr.msk.f32.gmra.mrb[20].mxu0 %vm736_vm2, %v16642_v23 }
  0xe1   : > { %13985 = vmatprep.mubr.msk.f32.mxu0 %vm736_vm2, %v16646_v24 }
  0xe4   : > { %13986 = vmatmul.mubr.msk.f32.vlgmr.msra.gmra.mrb[2].mxu0 %vm736_vm2, %v16650_v25 }
  0xe5   : > { %13988 = vmatprep.mubr.msk.f32.mxu0 %vm736_vm2, %v16659_v27  ;;  %14034 = vmatpush3.msk.msra.mxu0 %vm1005_vm3, %v16546_v44  ;;  %v16703_v44 = vld [vmem:[#allocation2 + $0xe9] sm:$0xff] }
  0xe6   : > { %14083 = vmatprep.subr.msk.mxu0 %vm1005_vm3, %v16655_v26  ;;  %19480 = vst [vmem:[#allocation5_spill] sm:$0xff] %v16703_v44 }
  0xe8   : > { %v509_v29 = vpop.f32.mrb[0].mxu0  ;;  %13989 = vmatmul.mubr.msk.f32.gmra.mrb[4].mxu0 %vm736_vm2, %v16667_v28 }
  0xe9   : > { %v13732_v31 = vpop.f32.mrb[1].mxu0  ;;  %13991 = vmatprep.mubr.msk.f32.mxu0 %vm736_vm2, %v16671_v30 }
  0xea   : > { %v16862_v31 = vld [vmem:[#allocation2 + $0x6f] sm:$0xff] }
  0xeb   : > { %19503 = vst [vmem:[#allocation28_spill] sm:$0xff] %v16862_v31 }
  0xec   : > { %13992 = vmatmul.mubr.msk.f32.gmra.mrb[6].mxu0 %vm736_vm2, %v16675_v32 }
  0xed   : > { %13994 = vmatprep.mubr.msk.f32.mxu0 %vm736_vm2, %v16679_v34 }
  0xf0   : > { %13995 = vmatmul.mubr.msk.f32.gmra.mrb[8].mxu0 %vm736_vm2, %v16683_v35 }
  0xf1   : > { %13997 = vmatprep.mubr.msk.f32.mxu0 %vm736_vm2, %v16687_v36 }
  0xf4   : > { %13998 = vmatmul.mubr.msk.f32.gmra.mrb[10].mxu0 %vm736_vm2, %v16691_v37 }
  0xf5   : > { %14000 = vmatprep.mubr.msk.f32.mxu0 %vm736_vm2, %v16695_v38 }
  0xf7   : > { %v437_v40 = vpop.permute.xlu0 %436 }
  0xf8   : > { %v510_v43 = vadd.f32 %v509_v29, %v437_v40  ;;  %14001 = vmatmul.mubr.msk.f32.gmra.mrb[12].mxu0 %vm736_vm2, %v16699_v41  ;;  %v16852_v29 = vld [vmem:[#allocation2 + $0x168] sm:$0xff]  ;;  %v16866_v40 = vld [vmem:[#allocation2 + $0x170] sm:$0xff] }
  0xf9   : > { %14003 = vmatprep.mubr.msk.f32.mxu0 %vm736_vm2, %v16703_v44  ;;  %v16989_v44 = vld [vmem:[#allocation2 + $0x187] sm:$0xff] }
  0xfa   : > { %11920 = vmatmul.mubr.msk.f32.vlgmr.msra.gmra.mrb[0].mxu1 %vm529_vm4, %v510_v43  ;;  %v16870_v43 = vld [vmem:[#allocation2 + $0x87] sm:$0xff] }
  0xfb   : > { %13734 = vmatpush3.msk.msra.mxu1 %vm1005_vm3, %v16522_v33  ;;  %13735 = vmatprep.mubr.msk.f32.mxu1 %vm736_vm2, %v875_v45  ;;  %v16728_v33 = vld [vmem:[#allocation2 + $0x129] sm:$0xff]  ;;  %19504 = vst [vmem:[#allocation29_spill] sm:$0xff] %v16870_v43 }
  0xfc   : > { %14004 = vmatmul.mubr.msk.f32.gmra.mrb[14].mxu0 %vm736_vm2, %v16710_v48  ;;  %13783 = vmatprep.subr.msk.mxu1 %vm1005_vm3, %v874_v47  ;;  %19483 = vst [vmem:[#allocation8_spill] sm:$0xff] %v16728_v33  ;;  %v16872_v45 = vld [vmem:[#allocation2 + $0x188] sm:$0xff] }
  0xfd   : > { %14006 = vmatprep.mubr.msk.f32.mxu0 %vm736_vm2, %v16717_v51  ;;  %v16954_v51 = vld [vmem:[%s19302_s5 + $0xc] sm:$0xf] }
  0xfe   : > { %13736 = vmatmul.mubr.msk.f32.vlgmr.msra.gmra.mrb[2].mxu1 %vm736_vm2, %v876_v50  ;;  %v16886_v50 = vld [vmem:[#allocation2 + $0xa7] sm:$0xff] }
  0xff   : > { %13738 = vmatprep.mubr.msk.f32.mxu1 %vm736_vm2, %v16530_v39  ;;  %13784 = vmatpush3.msk.msra.mxu1 %vm1005_vm3, %v874_v47  ;;  %v16753_v39 = vld [vmem:[#allocation2 + $0x151] sm:$0xff]  ;;  %19506 = vst [vmem:[#allocation31_spill] sm:$0xff] %v16886_v50  ;;  %v16957_v48 = vld [vmem:[#allocation2 + $0x27] sm:$0xff] }
 0x100   : > { %14007 = vmatmul.mubr.msk.f32.gmra.mrb[16].mxu0 %vm736_vm2, %v16732_v54  ;;  %13833 = vmatprep.subr.msk.mxu1 %vm1005_vm3, %v16725_v53  ;;  %19487 = vst [vmem:[#allocation12_spill] sm:$0xff] %v16753_v39  ;;  %v16882_v47 = vld [vmem:[#allocation2 + $0x190] sm:$0xff]  ;;  %19511 = vst [vmem:[#allocation36_spill] sm:$0xff] %v16957_v48 }
 0x101   : > { %14009 = vmatprep.mubr.msk.f32.mxu0 %vm736_vm2, %v16728_v33  ;;  %v843_v33 = vld [vmem:[#allocation2 + $0xf] sm:$0xff] }
 0x102   : > { %13739 = vmatmul.mubr.msk.f32.gmra.mrb[4].mxu1 %vm736_vm2, %v16536_v42  ;;  %v16765_v42 = vld [vmem:[#allocation2 + $0x171] sm:$0xff] }
 0x103   : > { %13741 = vmatprep.mubr.msk.f32.mxu1 %vm736_vm2, %v16548_v46  ;;  %19489 = vst [vmem:[#allocation14_spill] sm:$0xff] %v16765_v42  ;;  %v16949_v54 = vld [vmem:[#allocation2 + $0x12f] sm:$0xff] }
 0x104   : > { %14010 = vmatmul.mubr.msk.f32.gmra.mrb[18].mxu0 %vm736_vm2, %v16741_v56  ;;  %v16942_v56 = vld [vmem:[#allocation2 + $0x10f] sm:$0xff] }
 0x105   : > { %14012 = vmatprep.mubr.msk.f32.mxu0 %vm736_vm2, %v16745_v57  ;;  %v16940_v57 = vld [vmem:[#allocation2 + $0x127] sm:$0xff] }
 0x106   : > { %13742 = vmatmul.mubr.msk.f32.gmra.mrb[6].mxu1 %vm736_vm2, %v16556_v49 }
 0x107   : > { %13744 = vmatprep.mubr.msk.f32.mxu1 %vm736_vm2, %v16562_v52 }
 0x108   : > { %14013 = vmatmul.mubr.msk.f32.gmra.mrb[20].mxu0 %vm736_vm2, %v16753_v39  ;;  %v842_v39 = vld [vmem:[#allocation2 + $0x7] sm:$0xff] }
 0x109   : > { %14015 = vmatprep.mubr.msk.f32.mxu0 %vm736_vm2, %v16757_v59  ;;  %v16934_v59 = vld [vmem:[#allocation2 + $0x107] sm:$0xff] }
 0x10a   : > { %13745 = vmatmul.mubr.msk.f32.gmra.mrb[8].mxu1 %vm736_vm2, %v16568_v55 }
 0x10b   : > { %13747 = vmatprep.mubr.msk.f32.mxu1 %vm736_vm2, %v16574_v58 }
 0x10c   : > { %14016 = vmatmul.mubr.msk.f32.gmra.mrb[22].mxu0 %vm736_vm2, %v16765_v42  ;;  %v16930_v42 = vld [vmem:[#allocation2 + $0x1f0] sm:$0xff] }
 0x10d   : > { %14018 = vmatprep.mubr.msk.f32.mxu0 %vm736_vm2, %v16769_v60  ;;  %v16926_v60 = vld [vmem:[#allocation2 + $0xef] sm:$0xff]  ;;  %19510 = vst [vmem:[#allocation35_spill] sm:$0xff] %v16930_v42 }
 0x10e   : > { %13748 = vmatmul.mubr.msk.f32.gmra.mrb[10].mxu1 %vm736_vm2, %v16580_v61 }
 0x10f   : > { %13750 = vmatprep.mubr.msk.f32.mxu1 %vm736_vm2, %v16586_v0 }
 0x110   : > { %14019 = vmatmul.mubr.msk.f32.gmra.mrb[24].mxu0 %vm736_vm2, %v16777_v62  ;;  %v16920_v62 = vld [vmem:[#allocation2 + $0x1e8] sm:$0xff] }
 0x111   : > { %14021 = vmatprep.mubr.msk.f32.mxu0 %vm736_vm2, %v16781_v63  ;;  %v16918_v63 = vld [vmem:[#allocation2 + $0xe7] sm:$0xff] }
 0x112   : > { %13751 = vmatmul.mubr.msk.f32.gmra.mrb[12].mxu1 %vm736_vm2, %v16592_v3  ;;  %19509 = vst [vmem:[#allocation34_spill] sm:$0xff] %v16918_v63 }
 0x113   : > { %13753 = vmatprep.mubr.msk.f32.mxu1 %vm736_vm2, %v16598_v7 }
 0x114   : > { %14022 = vmatmul.mubr.msk.f32.gmra.mrb[26].mxu0 %vm736_vm2, %v16789_v1  ;;  %v16914_v1 = vld [vmem:[#allocation2 + $0x1d0] sm:$0xff] }
 0x115   : > { %14024 = vmatprep.mubr.msk.f32.mxu0 %vm736_vm2, %v16793_v2  ;;  %v16910_v2 = vld [vmem:[#allocation2 + $0xcf] sm:$0xff] }
 0x116   : > { %13754 = vmatmul.mubr.msk.f32.gmra.mrb[14].mxu1 %vm736_vm2, %v16604_v10 }
 0x117   : > { %13756 = vmatprep.mubr.msk.f32.mxu1 %vm736_vm2, %v16610_v13 }
 0x118   : > { %14025 = vmatmul.mubr.msk.f32.gmra.mrb[28].mxu0 %vm736_vm2, %v16801_v4  ;;  %v16904_v4 = vld [vmem:[#allocation2 + $0x1c8] sm:$0xff] }
 0x119   : > { %14027 = vmatprep.mubr.msk.f32.mxu0 %vm736_vm2, %v16805_v6  ;;  %v16902_v6 = vld [vmem:[#allocation2 + $0xc7] sm:$0xff] }
 0x11a   : > { %13757 = vmatmul.mubr.msk.f32.gmra.mrb[16].mxu1 %vm736_vm2, %v16616_v16  ;;  %19508 = vst [vmem:[#allocation33_spill] sm:$0xff] %v16902_v6 }
 0x11b   : > { %13759 = vmatprep.mubr.msk.f32.mxu1 %vm736_vm2, %v16622_v18 }
 0x11c   : > { %14028 = vmatmul.mubr.msk.f32.gmra.mrb[30].mxu0 %vm736_vm2, %v16813_v8  ;;  %v16898_v8 = vld [vmem:[#allocation2 + $0x1b0] sm:$0xff] }
 0x11d   : > { %14030 = vmatprep.mubr.msk.f32.mxu0 %vm736_vm2, %v16817_v9  ;;  %v16894_v9 = vld [vmem:[#allocation2 + $0xaf] sm:$0xff] }
 0x11e   : > { %13760 = vmatmul.mubr.msk.f32.gmra.mrb[18].mxu1 %vm736_vm2, %v16628_v20  ;;  %19507 = vst [vmem:[#allocation32_spill] sm:$0xff] %v16894_v9 }
 0x11f   : > { %13762 = vmatprep.mubr.msk.f32.mxu1 %vm736_vm2, %v16626_v19 }
 0x120   : > { %14031 = vmatmul.mubr.msk.f32.gmra.mrb[32].mxu0 %vm736_vm2, %v16825_v11  ;;  %v16888_v11 = vld [vmem:[#allocation2 + $0x1a8] sm:$0xff] }
 0x121   : > { %14035 = vmatprep.mubr.msk.f32.mxu0 %vm736_vm2, %v16833_v12 }
 0x122   : > { %13763 = vmatmul.mubr.msk.f32.gmra.mrb[20].mxu1 %vm736_vm2, %v16634_v21 }
 0x123   : > { %13765 = vmatprep.mubr.msk.f32.mxu1 %vm736_vm2, %v16636_v22 }
 0x124   : > { %14036 = vmatmul.mubr.msk.f32.vlgmr.msra.gmra.mrb[2].mxu0 %vm736_vm2, %v16839_v14 }
 0x125   : > { %14038 = vmatprep.mubr.msk.f32.mxu0 %vm736_vm2, %v16850_v17  ;;  %14084 = vmatpush3.msk.msra.mxu0 %vm1005_vm3, %v16655_v26  ;;  %v16878_v26 = vld [vmem:[#allocation2 + $0x8f] sm:$0xff] }
 0x126   : > { %13766 = vmatmul.mubr.msk.f32.gmra.mrb[22].mxu1 %vm736_vm2, %v16642_v23  ;;  %14133 = vmatprep.subr.msk.mxu0 %vm1005_vm3, %v16846_v15  ;;  %19505 = vst [vmem:[#allocation30_spill] sm:$0xff] %v16878_v26 }
 0x127   : > { %13768 = vmatprep.mubr.msk.f32.mxu1 %vm736_vm2, %v16852_v29 }
 0x128   : > { %14039 = vmatmul.mubr.msk.f32.gmra.mrb[4].mxu0 %vm736_vm2, %v16862_v31 }
 0x129   : > { %14041 = vmatprep.mubr.msk.f32.mxu0 %vm736_vm2, %v16870_v43 }
 0x12a   : > { %13769 = vmatmul.mubr.msk.f32.gmra.mrb[24].mxu1 %vm736_vm2, %v16866_v40 }
 0x12b   : > { %13771 = vmatprep.mubr.msk.f32.mxu1 %vm736_vm2, %v16872_v45 }
 0x12c   : > { %14042 = vmatmul.mubr.msk.f32.gmra.mrb[6].mxu0 %vm736_vm2, %v16878_v26 }
 0x12d   : > { %14044 = vmatprep.mubr.msk.f32.mxu0 %vm736_vm2, %v16886_v50 }
 0x12e   : > { %13772 = vmatmul.mubr.msk.f32.gmra.mrb[26].mxu1 %vm736_vm2, %v16882_v47 }
 0x12f   : > { %13774 = vmatprep.mubr.msk.f32.mxu1 %vm736_vm2, %v16888_v11 }
 0x130   : > { %14045 = vmatmul.mubr.msk.f32.gmra.mrb[8].mxu0 %vm736_vm2, %v16894_v9 }
 0x131   : > { %14047 = vmatprep.mubr.msk.f32.mxu0 %vm736_vm2, %v16902_v6 }
 0x132   : > { %13775 = vmatmul.mubr.msk.f32.gmra.mrb[28].mxu1 %vm736_vm2, %v16898_v8 }
 0x133   : > { %13777 = vmatprep.mubr.msk.f32.mxu1 %vm736_vm2, %v16904_v4 }
 0x134   : > { %14048 = vmatmul.mubr.msk.f32.gmra.mrb[10].mxu0 %vm736_vm2, %v16910_v2 }
 0x135   : > { %14050 = vmatprep.mubr.msk.f32.mxu0 %vm736_vm2, %v16918_v63 }
 0x136   : > { %13778 = vmatmul.mubr.msk.f32.gmra.mrb[30].mxu1 %vm736_vm2, %v16914_v1 }
 0x137   : > { %13780 = vmatprep.mubr.msk.f32.mxu1 %vm736_vm2, %v16920_v62 }
 0x138   : > { %14051 = vmatmul.mubr.msk.f32.gmra.mrb[12].mxu0 %vm736_vm2, %v16926_v60 }
 0x139   : > { %14053 = vmatprep.mubr.msk.f32.mxu0 %vm736_vm2, %v16934_v59 }
 0x13a   : > { %13781 = vmatmul.mubr.msk.f32.gmra.mrb[32].mxu1 %vm736_vm2, %v16930_v42  ;;  %v16959_v42 = vld [vmem:[#allocation2 + $0x147] sm:$0xff] }
 0x13b   : > { %13785 = vmatprep.mubr.msk.f32.mxu1 %vm736_vm2, %v842_v39  ;;  %v16969_v39 = vld [vmem:[#allocation2 + $0x2f] sm:$0xff] }
 0x13c   : > { %14054 = vmatmul.mubr.msk.f32.gmra.mrb[14].mxu0 %vm736_vm2, %v16942_v56  ;;  %19512 = vst [vmem:[#allocation37_spill] sm:$0xff] %v16969_v39 }
 0x13d   : > { %14056 = vmatprep.mubr.msk.f32.mxu0 %vm736_vm2, %v16940_v57 }
 0x13e   : > { %13786 = vmatmul.mubr.msk.f32.vlgmr.msra.gmra.mrb[2].mxu1 %vm736_vm2, %v843_v33  ;;  %v16973_v33 = vld [vmem:[#allocation2 + $0x14f] sm:$0xff] }
 0x13f   : > { %13788 = vmatprep.mubr.msk.f32.mxu1 %vm736_vm2, %v16957_v48  ;;  %13834 = vmatpush3.msk.msra.mxu1 %vm1005_vm3, %v16725_v53  ;;  %v16977_v48 = vld [vmem:[#allocation2 + $0x167] sm:$0xff]  ;;  %v16985_v53 = vld [vmem:[#allocation2 + $0x16f] sm:$0xff] }
 0x140   : > { %14057 = vmatmul.mubr.msk.f32.gmra.mrb[16].mxu0 %vm736_vm2, %v16949_v54  ;;  %13883 = vmatprep.subr.msk.mxu1 %vm1005_vm3, %v16954_v51 }
 0x141   : > { %14059 = vmatprep.mubr.msk.f32.mxu0 %vm736_vm2, %v16959_v42 }
 0x142   : > { %13789 = vmatmul.mubr.msk.f32.gmra.mrb[4].mxu1 %vm736_vm2, %v16969_v39  ;;  %v17001_v39 = vld [vmem:[#allocation2 + $0x1a7] sm:$0xff] }
 0x143   : > { %13791 = vmatprep.mubr.msk.f32.mxu1 %vm736_vm2, %v16833_v12  ;;  %v16997_v12 = vld [vmem:[#allocation2 + $0x18f] sm:$0xff] }
 0x144   : > { %14060 = vmatmul.mubr.msk.f32.gmra.mrb[18].mxu0 %vm736_vm2, %v16973_v33 }
 0x145   : > { %14062 = vmatprep.mubr.msk.f32.mxu0 %vm736_vm2, %v16977_v48 }
 0x146   : > { %13792 = vmatmul.mubr.msk.f32.gmra.mrb[6].mxu1 %vm736_vm2, %v16839_v14  ;;  %v17013_v14 = vld [vmem:[#allocation2 + $0x1c7] sm:$0xff] }
 0x147   : > { %13794 = vmatprep.mubr.msk.f32.mxu1 %vm736_vm2, %v16850_v17  ;;  %v17009_v17 = vld [vmem:[#allocation2 + $0x1af] sm:$0xff] }
 0x148   : > { %14063 = vmatmul.mubr.msk.f32.gmra.mrb[20].mxu0 %vm736_vm2, %v16985_v53 }
 0x149   : > { %14065 = vmatprep.mubr.msk.f32.mxu0 %vm736_vm2, %v16989_v44 }
 0x14a   : > { %13795 = vmatmul.mubr.msk.f32.gmra.mrb[8].mxu1 %vm736_vm2, %v16862_v31  ;;  %v17025_v31 = vld [vmem:[#allocation2 + $0x1e7] sm:$0xff] }
 0x14b   : > { %13797 = vmatprep.mubr.msk.f32.mxu1 %vm736_vm2, %v16870_v43  ;;  %v17021_v43 = vld [vmem:[#allocation2 + $0x1cf] sm:$0xff] }
 0x14c   : > { %14066 = vmatmul.mubr.msk.f32.gmra.mrb[22].mxu0 %vm736_vm2, %v16997_v12 }
 0x14d   : > { %14068 = vmatprep.mubr.msk.f32.mxu0 %vm736_vm2, %v17001_v39 }
 0x14e   : > { %13798 = vmatmul.mubr.msk.f32.gmra.mrb[10].mxu1 %vm736_vm2, %v16878_v26  ;;  %v17037_v26 = vld [vmem:[#allocation2 + $0x207] sm:$0xff] }
 0x14f   : > { %13800 = vmatprep.mubr.msk.f32.mxu1 %vm736_vm2, %v16886_v50  ;;  %v17033_v50 = vld [vmem:[#allocation2 + $0x1ef] sm:$0xff] }
 0x150   : > { %14069 = vmatmul.mubr.msk.f32.gmra.mrb[24].mxu0 %vm736_vm2, %v17009_v17 }
 0x151   : > { %14071 = vmatprep.mubr.msk.f32.mxu0 %vm736_vm2, %v17013_v14 }
 0x152   : > { %13801 = vmatmul.mubr.msk.f32.gmra.mrb[12].mxu1 %vm736_vm2, %v16894_v9  ;;  %v3149_v9 = vld [vmem:[#allocation2 + $0x227] sm:$0xff] }
 0x153   : > { %13803 = vmatprep.mubr.msk.f32.mxu1 %vm736_vm2, %v16902_v6  ;;  %v17045_v6 = vld [vmem:[#allocation2 + $0x20f] sm:$0xff] }
 0x154   : > { %14072 = vmatmul.mubr.msk.f32.gmra.mrb[26].mxu0 %vm736_vm2, %v17021_v43 }
 0x155   : > { %14074 = vmatprep.mubr.msk.f32.mxu0 %vm736_vm2, %v17025_v31 }
 0x156   : > { %13804 = vmatmul.mubr.msk.f32.gmra.mrb[14].mxu1 %vm736_vm2, %v16910_v2 }
 0x157   : > { %13806 = vmatprep.mubr.msk.f32.mxu1 %vm736_vm2, %v16918_v63  ;;  %v3150_v63 = vld [vmem:[#allocation2 + $0x22f] sm:$0xff] }
 0x158   : > { %14075 = vmatmul.mubr.msk.f32.gmra.mrb[28].mxu0 %vm736_vm2, %v17033_v50 }
 0x159   : > { %14077 = vmatprep.mubr.msk.f32.mxu0 %vm736_vm2, %v17037_v26 }
 0x15a   : > { %13807 = vmatmul.mubr.msk.f32.gmra.mrb[16].mxu1 %vm736_vm2, %v16926_v60 }
 0x15b   : > { %13809 = vmatprep.mubr.msk.f32.mxu1 %vm736_vm2, %v16934_v59 }
 0x15c   : > { %14078 = vmatmul.mubr.msk.f32.gmra.mrb[30].mxu0 %vm736_vm2, %v17045_v6 }
 0x15d   : > { %14080 = vmatprep.mubr.msk.f32.mxu0 %vm736_vm2, %v3149_v9  ;;  %v19539_v9 = vld [vmem:[#allocation30_spill] sm:$0xff] }
 0x15e   : > { %13810 = vmatmul.mubr.msk.f32.gmra.mrb[18].mxu1 %vm736_vm2, %v16942_v56 }
 0x15f   : > { %13812 = vmatprep.mubr.msk.f32.mxu1 %vm736_vm2, %v16940_v57 }
 0x160   : > { %14081 = vmatmul.mubr.msk.f32.gmra.mrb[32].mxu0 %vm736_vm2, %v3150_v63  ;;  %v19537_v63 = vld [vmem:[#allocation28_spill] sm:$0xff] }
 0x161   : > { %14085 = vmatprep.mubr.msk.f32.mxu0 %vm736_vm2, %v16548_v46  ;;  %v1558_v46 = vld [vmem:[#allocation2 + $0x9] sm:$0xff] }
 0x162   : > { %13813 = vmatmul.mubr.msk.f32.gmra.mrb[20].mxu1 %vm736_vm2, %v16949_v54 }
 0x163   : > { %13815 = vmatprep.mubr.msk.f32.mxu1 %vm736_vm2, %v16959_v42 }
 0x164   : > { %14086 = vmatmul.mubr.msk.f32.vlgmr.msra.gmra.mrb[2].mxu0 %vm736_vm2, %v16556_v49  ;;  %v1559_v49 = vld [vmem:[#allocation2 + $0x11] sm:$0xff] }
 0x165   : > { %14088 = vmatprep.mubr.msk.f32.mxu0 %vm736_vm2, %v16562_v52  ;;  %14134 = vmatpush3.msk.msra.mxu0 %vm1005_vm3, %v16846_v15  ;;  %v4426_v52 = vld [vmem:[%s19303_s6] sm:$0xf]  ;;  %v19540_v15 = vld [vmem:[#allocation31_spill] sm:$0xff] }
 0x166   : > { %13816 = vmatmul.mubr.msk.f32.gmra.mrb[22].mxu1 %vm736_vm2, %v16973_v33  ;;  %14183 = vmatprep.subr.msk.mxu0 %vm1005_vm3, %v4426_v52 }
 0x167   : > { %13818 = vmatprep.mubr.msk.f32.mxu1 %vm736_vm2, %v16977_v48 }
 0x168   : > { %14089 = vmatmul.mubr.msk.f32.gmra.mrb[4].mxu0 %vm736_vm2, %v16568_v55  ;;  %v17175_v55 = vld [vmem:[#allocation2 + $0x208] sm:$0xff] }
 0x169   : > { %14091 = vmatprep.mubr.msk.f32.mxu0 %vm736_vm2, %v16574_v58  ;;  %v19513_v58 = vld [vmem:[#allocation5_spill] sm:$0xff] }
 0x16a   : > { %13819 = vmatmul.mubr.msk.f32.gmra.mrb[24].mxu1 %vm736_vm2, %v16985_v53 }
 0x16b   : > { %13821 = vmatprep.mubr.msk.f32.mxu1 %vm736_vm2, %v16989_v44 }
 0x16c   : > { %14092 = vmatmul.mubr.msk.f32.gmra.mrb[6].mxu0 %vm736_vm2, %v16580_v61  ;;  %v19514_v61 = vld [vmem:[#allocation35_spill] sm:$0xff] }
 0x16d   : > { %14094 = vmatprep.mubr.msk.f32.mxu0 %vm736_vm2, %v16586_v0  ;;  %v17183_v0 = vld [vmem:[#allocation2 + $0x210] sm:$0xff] }
 0x16e   : > { %13822 = vmatmul.mubr.msk.f32.gmra.mrb[26].mxu1 %vm736_vm2, %v16997_v12 }
 0x16f   : > { %13824 = vmatprep.mubr.msk.f32.mxu1 %vm736_vm2, %v17001_v39 }
 0x170   : > { %14095 = vmatmul.mubr.msk.f32.gmra.mrb[8].mxu0 %vm736_vm2, %v16592_v3  ;;  %v19515_v3 = vld [vmem:[#allocation6_spill] sm:$0xff] }
 0x171   : > { %14097 = vmatprep.mubr.msk.f32.mxu0 %vm736_vm2, %v16598_v7  ;;  %v3539_v7 = vld [vmem:[#allocation2 + $0x228] sm:$0xff] }
 0x172   : > { %13825 = vmatmul.mubr.msk.f32.gmra.mrb[28].mxu1 %vm736_vm2, %v17009_v17 }
 0x173   : > { %13827 = vmatprep.mubr.msk.f32.mxu1 %vm736_vm2, %v17013_v14 }
 0x174   : > { %14098 = vmatmul.mubr.msk.f32.gmra.mrb[10].mxu0 %vm736_vm2, %v16604_v10  ;;  %v19516_v10 = vld [vmem:[#allocation7_spill] sm:$0xff] }
 0x175   : > { %14100 = vmatprep.mubr.msk.f32.mxu0 %vm736_vm2, %v16610_v13  ;;  %v3540_v13 = vld [vmem:[#allocation2 + $0x230] sm:$0xff] }
 0x176   : > { %13828 = vmatmul.mubr.msk.f32.gmra.mrb[30].mxu1 %vm736_vm2, %v17021_v43 }
 0x177   : > { %13830 = vmatprep.mubr.msk.f32.mxu1 %vm736_vm2, %v17025_v31 }
 0x178   : > { %14101 = vmatmul.mubr.msk.f32.gmra.mrb[12].mxu0 %vm736_vm2, %v16616_v16  ;;  %v19517_v16 = vld [vmem:[#allocation9_spill] sm:$0xff] }
 0x179   : > { %14103 = vmatprep.mubr.msk.f32.mxu0 %vm736_vm2, %v16622_v18  ;;  %v19518_v18 = vld [vmem:[#allocation8_spill] sm:$0xff] }
 0x17a   : > { %13831 = vmatmul.mubr.msk.f32.gmra.mrb[32].mxu1 %vm736_vm2, %v17033_v50 }
 0x17b   : > { %13835 = vmatprep.mubr.msk.f32.mxu1 %vm736_vm2, %v1558_v46 }
 0x17c   : > { %14104 = vmatmul.mubr.msk.f32.gmra.mrb[14].mxu0 %vm736_vm2, %v16628_v20  ;;  %v19520_v20 = vld [vmem:[#allocation11_spill] sm:$0xff] }
 0x17d   : > { %14106 = vmatprep.mubr.msk.f32.mxu0 %vm736_vm2, %v16626_v19  ;;  %v19519_v19 = vld [vmem:[#allocation10_spill] sm:$0xff] }
 0x17e   : > { %13836 = vmatmul.mubr.msk.f32.vlgmr.msra.gmra.mrb[2].mxu1 %vm736_vm2, %v1559_v49  ;;  %v19541_v49 = vld [vmem:[#allocation32_spill] sm:$0xff] }
 0x17f   : > { %13838 = vmatprep.mubr.msk.f32.mxu1 %vm736_vm2, %v16646_v24  ;;  %13884 = vmatpush3.msk.msra.mxu1 %vm1005_vm3, %v16954_v51  ;;  %v19524_v24 = vld [vmem:[#allocation15_spill] sm:$0xff] }
 0x180   : > { %14107 = vmatmul.mubr.msk.f32.gmra.mrb[16].mxu0 %vm736_vm2, %v16634_v21  ;;  %15099 = vmatprep.subr.msk.mxu1 %vm1005_vm3, %v16458_v5  ;;  %v19521_v21 = vld [vmem:[#allocation12_spill] sm:$0xff]  ;;  %v19536_v51 = vld [vmem:[#allocation27_spill] sm:$0xff] }
 0x181   : > { %14109 = vmatprep.mubr.msk.f32.mxu0 %vm736_vm2, %v16636_v22  ;;  %v19522_v22 = vld [vmem:[#allocation13_spill] sm:$0xff] }
 0x182   : > { %13839 = vmatmul.mubr.msk.f32.gmra.mrb[4].mxu1 %vm736_vm2, %v16650_v25  ;;  %v19525_v25 = vld [vmem:[#allocation16_spill] sm:$0xff] }
 0x183   : > { %13841 = vmatprep.mubr.msk.f32.mxu1 %vm736_vm2, %v16659_v27 }
 0x184   : > { %14110 = vmatmul.mubr.msk.f32.gmra.mrb[18].mxu0 %vm736_vm2, %v16642_v23  ;;  %v19523_v23 = vld [vmem:[#allocation14_spill] sm:$0xff] }
 0x185   : > { %14112 = vmatprep.mubr.msk.f32.mxu0 %vm736_vm2, %v16852_v29 }
 0x186   : > { %13842 = vmatmul.mubr.msk.f32.gmra.mrb[6].mxu1 %vm736_vm2, %v16667_v28 }
 0x187   : > { %13844 = vmatprep.mubr.msk.f32.mxu1 %vm736_vm2, %v16671_v30 }
 0x188   : > { %14113 = vmatmul.mubr.msk.f32.gmra.mrb[20].mxu0 %vm736_vm2, %v16866_v40 }
 0x189   : > { %14115 = vmatprep.mubr.msk.f32.mxu0 %vm736_vm2, %v16872_v45 }
 0x18a   : > { %13845 = vmatmul.mubr.msk.f32.gmra.mrb[8].mxu1 %vm736_vm2, %v16675_v32 }
 0x18b   : > { %13847 = vmatprep.mubr.msk.f32.mxu1 %vm736_vm2, %v16679_v34 }
 0x18c   : > { %14116 = vmatmul.mubr.msk.f32.gmra.mrb[22].mxu0 %vm736_vm2, %v16882_v47 }
 0x18d   : > { %14118 = vmatprep.mubr.msk.f32.mxu0 %vm736_vm2, %v16888_v11 }
 0x18e   : > { %13848 = vmatmul.mubr.msk.f32.gmra.mrb[10].mxu1 %vm736_vm2, %v16683_v35 }
 0x18f   : > { %13850 = vmatprep.mubr.msk.f32.mxu1 %vm736_vm2, %v16687_v36 }
 0x190   : > { %14119 = vmatmul.mubr.msk.f32.gmra.mrb[24].mxu0 %vm736_vm2, %v16898_v8 }
 0x191   : > { %14121 = vmatprep.mubr.msk.f32.mxu0 %vm736_vm2, %v16904_v4 }
 0x192   : > { %13851 = vmatmul.mubr.msk.f32.gmra.mrb[12].mxu1 %vm736_vm2, %v16691_v37 }
 0x193   : > { %13853 = vmatprep.mubr.msk.f32.mxu1 %vm736_vm2, %v16695_v38 }
 0x194   : > { %14122 = vmatmul.mubr.msk.f32.gmra.mrb[26].mxu0 %vm736_vm2, %v16914_v1 }
 0x195   : > { %14124 = vmatprep.mubr.msk.f32.mxu0 %vm736_vm2, %v16920_v62 }
 0x196   : > { %13854 = vmatmul.mubr.msk.f32.gmra.mrb[14].mxu1 %vm736_vm2, %v16699_v41 }
 0x197   : > { %13856 = vmatprep.mubr.msk.f32.mxu1 %vm736_vm2, %v19513_v58 }
 0x198   : > { %14125 = vmatmul.mubr.msk.f32.gmra.mrb[28].mxu0 %vm736_vm2, %v19514_v61 }
 0x199   : > { %14127 = vmatprep.mubr.msk.f32.mxu0 %vm736_vm2, %v17175_v55 }
 0x19a   : > { %13857 = vmatmul.mubr.msk.f32.gmra.mrb[16].mxu1 %vm736_vm2, %v19515_v3 }
 0x19b   : > { %13859 = vmatprep.mubr.msk.f32.mxu1 %vm736_vm2, %v19516_v10 }
 0x19c   : > { %14128 = vmatmul.mubr.msk.f32.gmra.mrb[30].mxu0 %vm736_vm2, %v17183_v0 }
 0x19d   : > { %14130 = vmatprep.mubr.msk.f32.mxu0 %vm736_vm2, %v3539_v7  ;;  %v19544_v7 = vld [vmem:[#allocation23_spill] sm:$0xff] }
 0x19e   : > { %13860 = vmatmul.mubr.msk.f32.gmra.mrb[18].mxu1 %vm736_vm2, %v19517_v16 }
 0x19f   : > { %13862 = vmatprep.mubr.msk.f32.mxu1 %vm736_vm2, %v19518_v18 }
 0x1a0   : > { %14131 = vmatmul.mubr.msk.f32.gmra.mrb[32].mxu0 %vm736_vm2, %v3540_v13 }
 0x1a1   : > { %14135 = vmatprep.mubr.msk.f32.mxu0 %vm736_vm2, %v16659_v27  ;;  %v19526_v27 = vld [vmem:[#allocation17_spill] sm:$0xff] }
 0x1a2   : > { %13863 = vmatmul.mubr.msk.f32.gmra.mrb[20].mxu1 %vm736_vm2, %v19519_v19 }
 0x1a3   : > { %13865 = vmatprep.mubr.msk.f32.mxu1 %vm736_vm2, %v19520_v20 }
 0x1a4   : > { %14136 = vmatmul.mubr.msk.f32.vlgmr.msra.gmra.mrb[2].mxu0 %vm736_vm2, %v16667_v28  ;;  %v19527_v28 = vld [vmem:[#allocation18_spill] sm:$0xff] }
 0x1a5   : > { %14138 = vmatprep.mubr.msk.f32.mxu0 %vm736_vm2, %v16671_v30  ;;  %14184 = vmatpush3.msk.msra.mxu0 %vm1005_vm3, %v4426_v52  ;;  %v19528_v30 = vld [vmem:[#allocation19_spill] sm:$0xff] }
 0x1a6   : > { %13866 = vmatmul.mubr.msk.f32.gmra.mrb[22].mxu1 %vm736_vm2, %v19521_v21 }
 0x1a7   : > { %13868 = vmatprep.mubr.msk.f32.mxu1 %vm736_vm2, %v19522_v22 }
 0x1a8   : > { %14139 = vmatmul.mubr.msk.f32.gmra.mrb[4].mxu0 %vm736_vm2, %v16675_v32  ;;  %v19529_v32 = vld [vmem:[#allocation20_spill] sm:$0xff] }
 0x1a9   : > { %14141 = vmatprep.mubr.msk.f32.mxu0 %vm736_vm2, %v16679_v34  ;;  %v19530_v34 = vld [vmem:[#allocation21_spill] sm:$0xff] }
 0x1aa   : > { %13869 = vmatmul.mubr.msk.f32.gmra.mrb[24].mxu1 %vm736_vm2, %v19523_v23 }
 0x1ab   : > { %13871 = vmatprep.mubr.msk.f32.mxu1 %vm736_vm2, %v19524_v24 }
 0x1ac   : > { %14142 = vmatmul.mubr.msk.f32.gmra.mrb[6].mxu0 %vm736_vm2, %v16683_v35  ;;  %v19531_v35 = vld [vmem:[#allocation22_spill] sm:$0xff] }
 0x1ad   : > { %14144 = vmatprep.mubr.msk.f32.mxu0 %vm736_vm2, %v16687_v36  ;;  %v19532_v36 = vld [vmem:[#allocation36_spill] sm:$0xff] }
 0x1ae   : > { %13872 = vmatmul.mubr.msk.f32.gmra.mrb[26].mxu1 %vm736_vm2, %v19525_v25 }
 0x1af   : > { %13874 = vmatprep.mubr.msk.f32.mxu1 %vm736_vm2, %v19526_v27 }
 0x1b0   : > { %14145 = vmatmul.mubr.msk.f32.gmra.mrb[8].mxu0 %vm736_vm2, %v16691_v37  ;;  %v19533_v37 = vld [vmem:[#allocation37_spill] sm:$0xff] }
 0x1b1   : > { %14147 = vmatprep.mubr.msk.f32.mxu0 %vm736_vm2, %v16695_v38  ;;  %v19534_v38 = vld [vmem:[#allocation25_spill] sm:$0xff] }
 0x1b2   : > { %13875 = vmatmul.mubr.msk.f32.gmra.mrb[28].mxu1 %vm736_vm2, %v19527_v28 }
 0x1b3   : > { %13877 = vmatprep.mubr.msk.f32.mxu1 %vm736_vm2, %v19528_v30 }
 0x1b4   : > { %14148 = vmatmul.mubr.msk.f32.gmra.mrb[10].mxu0 %vm736_vm2, %v16699_v41  ;;  %v19535_v41 = vld [vmem:[#allocation26_spill] sm:$0xff] }
 0x1b5   : > { %14150 = vmatprep.mubr.msk.f32.mxu0 %vm736_vm2, %v19513_v58  ;;  %v19542_v58 = vld [vmem:[#allocation33_spill] sm:$0xff] }
 0x1b6   : > { %13878 = vmatmul.mubr.msk.f32.gmra.mrb[30].mxu1 %vm736_vm2, %v19529_v32 }
 0x1b7   : > { %13880 = vmatprep.mubr.msk.f32.mxu1 %vm736_vm2, %v19530_v34 }
 0x1b8   : > { %14151 = vmatmul.mubr.msk.f32.gmra.mrb[12].mxu0 %vm736_vm2, %v19515_v3  ;;  %v19543_v3 = vld [vmem:[#allocation34_spill] sm:$0xff] }
 0x1b9   : > { %14153 = vmatprep.mubr.msk.f32.mxu0 %vm736_vm2, %v19516_v10  ;;  %v19545_v10 = vld [vmem:[#allocation24_spill] sm:$0xff] }
 0x1ba   : > { %13881 = vmatmul.mubr.msk.f32.gmra.mrb[32].mxu1 %vm736_vm2, %v19531_v35 }
 0x1bb   : > { %13885 = vmatprep.mubr.msk.f32.mxu1 %vm736_vm2, %v19532_v36 }
 0x1bc   : > { %14154 = vmatmul.mubr.msk.f32.gmra.mrb[14].mxu0 %vm736_vm2, %v19517_v16 }
 0x1bd   : > { %14156 = vmatprep.mubr.msk.f32.mxu0 %vm736_vm2, %v19518_v18 }
 0x1be   : > { %13886 = vmatmul.mubr.msk.f32.vlgmr.msra.gmra.mrb[2].mxu1 %vm736_vm2, %v19533_v37 }
 0x1bf   : > { %13888 = vmatprep.mubr.msk.f32.mxu1 %vm736_vm2, %v19534_v38  ;;  %15100 = vmatpush3.msk.msra.mxu1 %vm1005_vm3, %v16458_v5  ;;  %v19538_v5 = vld [vmem:[#allocation29_spill] sm:$0xff] }
 0x1c0   : > { %14157 = vmatmul.mubr.msk.f32.gmra.mrb[16].mxu0 %vm736_vm2, %v19519_v19 }
 0x1c1   : > { %14159 = vmatprep.mubr.msk.f32.mxu0 %vm736_vm2, %v19520_v20 }
 0x1c2   : > { %13889 = vmatmul.mubr.msk.f32.gmra.mrb[4].mxu1 %vm736_vm2, %v19535_v41 }
 0x1c3   : > { %13891 = vmatprep.mubr.msk.f32.mxu1 %vm736_vm2, %v19536_v51 }
 0x1c4   : > { %14160 = vmatmul.mubr.msk.f32.gmra.mrb[18].mxu0 %vm736_vm2, %v19521_v21 }
 0x1c5   : > { %14162 = vmatprep.mubr.msk.f32.mxu0 %vm736_vm2, %v19522_v22 }
 0x1c6   : > { %13892 = vmatmul.mubr.msk.f32.gmra.mrb[6].mxu1 %vm736_vm2, %v19537_v63 }
 0x1c7   : > { %13894 = vmatprep.mubr.msk.f32.mxu1 %vm736_vm2, %v19538_v5 }
 0x1c8   : > { %14163 = vmatmul.mubr.msk.f32.gmra.mrb[20].mxu0 %vm736_vm2, %v19523_v23 }
 0x1c9   : > { %14165 = vmatprep.mubr.msk.f32.mxu0 %vm736_vm2, %v19524_v24 }
 0x1ca   : > { %13895 = vmatmul.mubr.msk.f32.gmra.mrb[8].mxu1 %vm736_vm2, %v19539_v9 }
 0x1cb   : > { %13897 = vmatprep.mubr.msk.f32.mxu1 %vm736_vm2, %v19540_v15 }
 0x1cc   : > { %14166 = vmatmul.mubr.msk.f32.gmra.mrb[22].mxu0 %vm736_vm2, %v19525_v25 }
 0x1cd   : > { %v599_v46 = vpop.f32.mrb[0].mxu1  ;;  %14168 = vmatprep.mubr.msk.f32.mxu0 %vm736_vm2, %v19526_v27 }
 0x1ce   : > { %13898 = vmatmul.mubr.msk.f32.gmra.mrb[10].mxu1 %vm736_vm2, %v19541_v49  ;;  %672 = vxpose.xlu1.b32.start.end [1/1] (short) %v599_v46, 128  ;;  %v601_v52 = vpop.f32.mrb[1].mxu1 }
 0x1cf   : > { %13900 = vmatprep.mubr.msk.f32.mxu1 %vm736_vm2, %v19542_v58 }
 0x1d0   : > { %14169 = vmatmul.mubr.msk.f32.gmra.mrb[24].mxu0 %vm736_vm2, %v19527_v28 }
 0x1d1   : > { %14171 = vmatprep.mubr.msk.f32.mxu0 %vm736_vm2, %v19528_v30 }
 0x1d2   : > { %13901 = vmatmul.mubr.msk.f32.gmra.mrb[12].mxu1 %vm736_vm2, %v16910_v2  ;;  %v3929_v2 = vld [vmem:[#allocation2 + $0x229] sm:$0xff] }
 0x1d3   : > { %13903 = vmatprep.mubr.msk.f32.mxu1 %vm736_vm2, %v19543_v3 }
 0x1d4   : > { %14172 = vmatmul.mubr.msk.f32.gmra.mrb[26].mxu0 %vm736_vm2, %v19529_v32 }
 0x1d5   : > { %14174 = vmatprep.mubr.msk.f32.mxu0 %vm736_vm2, %v19530_v34 }
 0x1d6   : > { %13904 = vmatmul.mubr.msk.f32.gmra.mrb[14].mxu1 %vm736_vm2, %v16926_v60  ;;  %v3930_v60 = vld [vmem:[#allocation2 + $0x231] sm:$0xff] }
 0x1d7   : > { %13906 = vmatprep.mubr.msk.f32.mxu1 %vm736_vm2, %v16934_v59  ;;  %v4394_v59 = vld [vmem:[#allocation3 + $0x7] sm:$0xff] }
 0x1d8   : > { %14175 = vmatmul.mubr.msk.f32.gmra.mrb[28].mxu0 %vm736_vm2, %v19531_v35 }
 0x1d9   : > { %14177 = vmatprep.mubr.msk.f32.mxu0 %vm736_vm2, %v19544_v7 }
 0x1da   : > { %13907 = vmatmul.mubr.msk.f32.gmra.mrb[16].mxu1 %vm736_vm2, %v16942_v56  ;;  %v4395_v56 = vld [vmem:[#allocation3 + $0xf] sm:$0xff] }
 0x1db   : > { %13909 = vmatprep.mubr.msk.f32.mxu1 %vm736_vm2, %v16940_v57 }
 0x1dc   : > { %14178 = vmatmul.mubr.msk.f32.gmra.mrb[30].mxu0 %vm736_vm2, %v19545_v10 }
 0x1dd   : > { %14180 = vmatprep.mubr.msk.f32.mxu0 %vm736_vm2, %v3929_v2 }
 0x1de   : > { %13910 = vmatmul.mubr.msk.f32.gmra.mrb[18].mxu1 %vm736_vm2, %v16949_v54 }
 0x1df   : > { %13912 = vmatprep.mubr.msk.f32.mxu1 %vm736_vm2, %v16959_v42 }
 0x1e0   : > { %14181 = vmatmul.mubr.msk.f32.gmra.mrb[32].mxu0 %vm736_vm2, %v3930_v60 }
 0x1e1   : > { %14185 = vmatprep.mubr.msk.f32.mxu0 %vm736_vm2, %v4394_v59 }
 0x1e2   : > { %13913 = vmatmul.mubr.msk.f32.gmra.mrb[20].mxu1 %vm736_vm2, %v16973_v33 }
 0x1e3   : > { %13915 = vmatprep.mubr.msk.f32.mxu1 %vm736_vm2, %v16977_v48  ;;  %v17386_v48 = vld [vmem:[%s19303_s6 + $0x8] sm:$0xf] }
 0x1e4   : > { %14186 = vmatmul.mubr.msk.f32.vlgmr.msra.gmra.mrb[2].mxu0 %vm736_vm2, %v4395_v56 }
 0x1e6   : > { %13916 = vmatmul.mubr.msk.f32.gmra.mrb[22].mxu1 %vm736_vm2, %v16985_v53 }
 0x1e7   : > { %13918 = vmatprep.mubr.msk.f32.mxu1 %vm736_vm2, %v16989_v44  ;;  %v12259_v44 = vld [vmem:[%s19303_s6 + $0x4] sm:$0xf] }
 0x1e8   : > { %14233 = vmatprep.subr.msk.mxu0 %vm1005_vm3, %v12259_v44 }
 0x1e9   : > { %14234 = vmatpush3.msk.msra.mxu0 %vm1005_vm3, %v12259_v44 }
 0x1ea   : > { %13919 = vmatmul.mubr.msk.f32.gmra.mrb[24].mxu1 %vm736_vm2, %v16997_v12  ;;  %14283 = vmatprep.subr.msk.mxu0 %vm1005_vm3, %v17386_v48 }
 0x1eb   : > { %13921 = vmatprep.mubr.msk.f32.mxu1 %vm736_vm2, %v17001_v39 }
 0x1ee   : > { %13922 = vmatmul.mubr.msk.f32.gmra.mrb[26].mxu1 %vm736_vm2, %v17009_v17 }
 0x1ef   : > { %13924 = vmatprep.mubr.msk.f32.mxu1 %vm736_vm2, %v17013_v14 }
 0x1f2   : > { %13925 = vmatmul.mubr.msk.f32.gmra.mrb[28].mxu1 %vm736_vm2, %v17021_v43 }
 0x1f3   : > { %13927 = vmatprep.mubr.msk.f32.mxu1 %vm736_vm2, %v17025_v31 }
 0x1f6   : > { %13928 = vmatmul.mubr.msk.f32.gmra.mrb[30].mxu1 %vm736_vm2, %v17033_v50 }
 0x1f7   : > { %13930 = vmatprep.mubr.msk.f32.mxu1 %vm736_vm2, %v17037_v26 }
 0x1fa   : > { %13931 = vmatmul.mubr.msk.f32.gmra.mrb[32].mxu1 %vm736_vm2, %v17045_v6 }
 0x1fb   : > { %13965 = vmatprep.mubr.msk.f32.mxu1 %vm736_vm2, %v16852_v29 }
 0x1fe   : > { %13966 = vmatmul.mubr.msk.f32.vlgmr.msra.gmra.mrb[22].mxu1 %vm736_vm2, %v16866_v40 }
 0x1ff   : > { %13968 = vmatprep.mubr.msk.f32.mxu1 %vm736_vm2, %v16872_v45 }
 0x202   : > { %13969 = vmatmul.mubr.msk.f32.gmra.mrb[24].mxu1 %vm736_vm2, %v16882_v47 }
 0x203   : > { %13971 = vmatprep.mubr.msk.f32.mxu1 %vm736_vm2, %v16888_v11 }
 0x206   : > { %13972 = vmatmul.mubr.msk.f32.gmra.mrb[26].mxu1 %vm736_vm2, %v16898_v8 }
 0x207   : > { %13974 = vmatprep.mubr.msk.f32.mxu1 %vm736_vm2, %v16904_v4 }
 0x20a   : > { %13975 = vmatmul.mubr.msk.f32.gmra.mrb[28].mxu1 %vm736_vm2, %v16914_v1 }
 0x20b   : > { %13977 = vmatprep.mubr.msk.f32.mxu1 %vm736_vm2, %v16920_v62  ;;  %704 = vxpose.xlu1.b32.start.end [1/1] (short) %v601_v52, 128 }
 0x20e   : > { %13978 = vmatmul.mubr.msk.f32.gmra.mrb[30].mxu1 %vm736_vm2, %v19514_v61 }
 0x20f   : > { %13980 = vmatprep.mubr.msk.f32.mxu1 %vm736_vm2, %v17175_v55 }
 0x212   : > { %13981 = vmatmul.mubr.msk.f32.gmra.mrb[32].mxu1 %vm736_vm2, %v17183_v0 }
 0x24e   : > { %v688_v54 = vpop.trf.xlu1 }
 0x24f   : > { %4362 = vst.msk [vmem:[#allocation3 + $0x28] sm:$0xff] %vm736_vm2, %v688_v54 }
 0x252   : > { %v689_v57 = vpop.trf.xlu1 }
 0x253   : > { %4363 = vst.msk [vmem:[#allocation3 + $0x30] sm:$0xff] %vm736_vm2, %v689_v57 }
 0x256   : > { %v690_v42 = vpop.trf.xlu1  ;;  %v17392_v62 = vld [vmem:[#allocation3 + $0x27] sm:$0xff] }
 0x257   : > { %4364 = vst.msk [vmem:[#allocation3 + $0x48] sm:$0xff] %vm736_vm2, %v690_v42  ;;  %14188 = vmatprep.mubr.msk.f32.mxu0 %vm736_vm2, %v17392_v62 }
 0x25a   : > { %v691_v1 = vpop.trf.xlu1  ;;  %v17397_v4 = vld [vmem:[#allocation3 + $0x2f] sm:$0xff] }
 0x25b   : > { %4365 = vst.msk [vmem:[#allocation3 + $0x50] sm:$0xff] %vm736_vm2, %v691_v1  ;;  %14189 = vmatmul.mubr.msk.f32.gmra.mrb[4].mxu0 %vm736_vm2, %v17397_v4 }
 0x25e   : > { %v692_v6 = vpop.trf.xlu1  ;;  %v17402_v8 = vld [vmem:[#allocation3 + $0x47] sm:$0xff] }
 0x25f   : > { %4366 = vst.msk [vmem:[#allocation3 + $0x68] sm:$0xff] %vm736_vm2, %v692_v6  ;;  %14191 = vmatprep.mubr.msk.f32.mxu0 %vm736_vm2, %v17402_v8 }
 0x262   : > { %v693_v11 = vpop.trf.xlu1  ;;  %v17407_v12 = vld [vmem:[#allocation3 + $0x4f] sm:$0xff] }
 0x263   : > { %4367 = vst.msk [vmem:[#allocation3 + $0x70] sm:$0xff] %vm736_vm2, %v693_v11  ;;  %14192 = vmatmul.mubr.msk.f32.gmra.mrb[6].mxu0 %vm736_vm2, %v17407_v12 }
 0x266   : > { %v694_v14 = vpop.trf.xlu1  ;;  %v17412_v17 = vld [vmem:[#allocation3 + $0x67] sm:$0xff] }
 0x267   : > { %4368 = vst.msk [vmem:[#allocation3 + $0x88] sm:$0xff] %vm736_vm2, %v694_v14  ;;  %14194 = vmatprep.mubr.msk.f32.mxu0 %vm736_vm2, %v17412_v17 }
 0x26a   : > { %v695_v29 = vpop.trf.xlu1  ;;  %v17417_v31 = vld [vmem:[#allocation3 + $0x6f] sm:$0xff] }
 0x26b   : > { %4369 = vst.msk [vmem:[#allocation3 + $0x90] sm:$0xff] %vm736_vm2, %v695_v29  ;;  %14195 = vmatmul.mubr.msk.f32.gmra.mrb[8].mxu0 %vm736_vm2, %v17417_v31 }
 0x26e   : > { %v696_v40 = vpop.trf.xlu1  ;;  %v17422_v43 = vld [vmem:[#allocation3 + $0x87] sm:$0xff] }
 0x26f   : > { %4370 = vst.msk [vmem:[#allocation3 + $0xa8] sm:$0xff] %vm736_vm2, %v696_v40  ;;  %14197 = vmatprep.mubr.msk.f32.mxu0 %vm736_vm2, %v17422_v43 }
 0x272   : > { %v697_v45 = vpop.trf.xlu1  ;;  %v17427_v26 = vld [vmem:[#allocation3 + $0x8f] sm:$0xff] }
 0x273   : > { %4371 = vst.msk [vmem:[#allocation3 + $0xb0] sm:$0xff] %vm736_vm2, %v697_v45  ;;  %14198 = vmatmul.mubr.msk.f32.gmra.mrb[10].mxu0 %vm736_vm2, %v17427_v26 }
 0x276   : > { %v698_v47 = vpop.trf.xlu1  ;;  %v17432_v50 = vld [vmem:[#allocation3 + $0xa7] sm:$0xff] }
 0x277   : > { %4372 = vst.msk [vmem:[#allocation3 + $0xc8] sm:$0xff] %vm736_vm2, %v698_v47  ;;  %14200 = vmatprep.mubr.msk.f32.mxu0 %vm736_vm2, %v17432_v50 }
 0x27a   : > { %v699_v39 = vpop.trf.xlu1  ;;  %v17437_v33 = vld [vmem:[#allocation3 + $0xaf] sm:$0xff] }
 0x27b   : > { %4373 = vst.msk [vmem:[#allocation3 + $0xd0] sm:$0xff] %vm736_vm2, %v699_v39  ;;  %14201 = vmatmul.mubr.msk.f32.gmra.mrb[12].mxu0 %vm736_vm2, %v17437_v33 }
 0x27e   : > { %v700_v53 = vpop.trf.xlu1  ;;  %v17442_v55 = vld [vmem:[#allocation3 + $0xc7] sm:$0xff] }
 0x27f   : > { %4374 = vst.msk [vmem:[#allocation3 + $0xe8] sm:$0xff] %vm736_vm2, %v700_v53  ;;  %14203 = vmatprep.mubr.msk.f32.mxu0 %vm736_vm2, %v17442_v55 }
 0x282   : > { %v701_v61 = vpop.trf.xlu1  ;;  %v17447_v0 = vld [vmem:[#allocation3 + $0xcf] sm:$0xff] }
 0x283   : > { %4375 = vst.msk [vmem:[#allocation3 + $0xf0] sm:$0xff] %vm736_vm2, %v701_v61  ;;  %14204 = vmatmul.mubr.msk.f32.gmra.mrb[14].mxu0 %vm736_vm2, %v17447_v0 }
 0x286   : > { %v702_v13 = vpop.trf.xlu1  ;;  %v17452_v16 = vld [vmem:[#allocation3 + $0xe7] sm:$0xff] }
 0x287   : > { %4376 = vst.msk [vmem:[#allocation3 + $0x108] sm:$0xff] %vm736_vm2, %v702_v13  ;;  %14206 = vmatprep.mubr.msk.f32.mxu0 %vm736_vm2, %v17452_v16 }
 0x28a   : > { %v703_v18 = vpop.trf.xlu1  ;;  %v17457_v19 = vld [vmem:[#allocation3 + $0xef] sm:$0xff] }
 0x28b   : > { %4377 = vst.msk [vmem:[#allocation3 + $0x110] sm:$0xff] %vm736_vm2, %v703_v18  ;;  %14207 = vmatmul.mubr.msk.f32.gmra.mrb[16].mxu0 %vm736_vm2, %v17457_v19 }
 0x28e   : > { %v720_v20 = vpop.trf.xlu1  ;;  %v17462_v21 = vld [vmem:[#allocation3 + $0x107] sm:$0xff] }
 0x28f   : > { %4378 = vst.msk [vmem:[#allocation3 + $0x128] sm:$0xff] %vm736_vm2, %v720_v20  ;;  %14209 = vmatprep.mubr.msk.f32.mxu0 %vm736_vm2, %v17462_v21  ;;  %v4783_v20 = vld [vmem:[#allocation3 + $0x8] sm:$0xff] }
 0x291   : > { %v17467_v22 = vpop.f32.mrb[2].mxu1 }
 0x292   : > { %19546 = vst [vmem:[#allocation5_spill] sm:$0xff] %v17467_v22  ;;  %v721_v23 = vpop.trf.xlu1  ;;  %v17469_v24 = vpop.f32.mrb[3].mxu1  ;;  %v17471_v25 = vld [vmem:[#allocation3 + $0x10f] sm:$0xff] }
 0x293   : > { %19547 = vst [vmem:[#allocation35_spill] sm:$0xff] %v17469_v24  ;;  %4379 = vst.msk [vmem:[#allocation3 + $0x130] sm:$0xff] %vm736_vm2, %v721_v23  ;;  %14210 = vmatmul.mubr.msk.f32.gmra.mrb[18].mxu0 %vm736_vm2, %v17471_v25  ;;  %v5174_v24 = vld [vmem:[#allocation3 + $0x11] sm:$0xff] }
 0x294   : > { %v17741_v22 = vld [vmem:[%s19303_s6 + $0x10] sm:$0xf] }
 0x295   : > { %v17476_v27 = vpop.f32.mrb[4].mxu1 }
 0x296   : > { %19548 = vst [vmem:[#allocation6_spill] sm:$0xff] %v17476_v27  ;;  %v722_v28 = vpop.trf.xlu1  ;;  %v17478_v30 = vpop.f32.mrb[5].mxu1  ;;  %v17480_v32 = vld [vmem:[#allocation3 + $0x127] sm:$0xff] }
 0x297   : > { %19549 = vst [vmem:[#allocation7_spill] sm:$0xff] %v17478_v30  ;;  %4380 = vst.msk [vmem:[#allocation3 + $0x148] sm:$0xff] %vm736_vm2, %v722_v28  ;;  %14212 = vmatprep.mubr.msk.f32.mxu0 %vm736_vm2, %v17480_v32  ;;  %v4784_v28 = vld [vmem:[#allocation3 + $0x10] sm:$0xff] }
 0x298   : > { %v5173_v30 = vld [vmem:[#allocation3 + $0x9] sm:$0xff] }
 0x299   : > { %v17485_v34 = vpop.f32.mrb[6].mxu1 }
 0x29a   : > { %19550 = vst [vmem:[#allocation9_spill] sm:$0xff] %v17485_v34  ;;  %v723_v35 = vpop.trf.xlu1  ;;  %v17487_v36 = vpop.f32.mrb[7].mxu1  ;;  %v17489_v37 = vld [vmem:[#allocation3 + $0x12f] sm:$0xff] }
 0x29b   : > { %19551 = vst [vmem:[#allocation8_spill] sm:$0xff] %v17487_v36  ;;  %4381 = vst.msk [vmem:[#allocation3 + $0x150] sm:$0xff] %vm736_vm2, %v723_v35  ;;  %14213 = vmatmul.mubr.msk.f32.gmra.mrb[20].mxu0 %vm736_vm2, %v17489_v37  ;;  %v17584_v35 = vld [vmem:[%s19303_s6 + $0xc] sm:$0xf] }
 0x29d   : > { %v17494_v38 = vpop.f32.mrb[8].mxu1 }
 0x29e   : > { %19552 = vst [vmem:[#allocation10_spill] sm:$0xff] %v17494_v38  ;;  %v724_v41 = vpop.trf.xlu1  ;;  %v17496_v51 = vpop.f32.mrb[9].mxu1  ;;  %v17498_v63 = vld [vmem:[#allocation3 + $0x147] sm:$0xff] }
 0x29f   : > { %19553 = vst [vmem:[#allocation11_spill] sm:$0xff] %v17496_v51  ;;  %4382 = vst.msk [vmem:[#allocation3 + $0x168] sm:$0xff] %vm736_vm2, %v724_v41  ;;  %14215 = vmatprep.mubr.msk.f32.mxu0 %vm736_vm2, %v17498_v63  ;;  %v17587_v41 = vld [vmem:[#allocation3 + $0x28] sm:$0xff] }
 0x2a1   : > { %v17503_v5 = vpop.f32.mrb[10].mxu1 }
 0x2a2   : > { %19554 = vst [vmem:[#allocation12_spill] sm:$0xff] %v17503_v5  ;;  %v725_v9 = vpop.trf.xlu1  ;;  %v17505_v15 = vpop.f32.mrb[11].mxu1  ;;  %v17507_v46 = vld [vmem:[#allocation3 + $0x14f] sm:$0xff] }
 0x2a3   : > { %19555 = vst [vmem:[#allocation13_spill] sm:$0xff] %v17505_v15  ;;  %4383 = vst.msk [vmem:[#allocation3 + $0x170] sm:$0xff] %vm736_vm2, %v725_v9  ;;  %14216 = vmatmul.mubr.msk.f32.gmra.mrb[22].mxu0 %vm736_vm2, %v17507_v46 }
 0x2a5   : > { %v17512_v49 = vpop.f32.mrb[12].mxu1 }
 0x2a6   : > { %19556 = vst [vmem:[#allocation14_spill] sm:$0xff] %v17512_v49  ;;  %v726_v52 = vpop.trf.xlu1  ;;  %v17514_v58 = vpop.f32.mrb[13].mxu1  ;;  %v17516_v3 = vld [vmem:[#allocation3 + $0x167] sm:$0xff] }
 0x2a7   : > { %19557 = vst [vmem:[#allocation15_spill] sm:$0xff] %v17514_v58  ;;  %4384 = vst.msk [vmem:[#allocation3 + $0x188] sm:$0xff] %vm736_vm2, %v726_v52  ;;  %14218 = vmatprep.mubr.msk.f32.mxu0 %vm736_vm2, %v17516_v3 }
 0x2a9   : > { %v17521_v7 = vpop.f32.mrb[14].mxu1 }
 0x2aa   : > { %19558 = vst [vmem:[#allocation16_spill] sm:$0xff] %v17521_v7  ;;  %v727_v2 = vpop.trf.xlu1  ;;  %v17523_v10 = vpop.f32.mrb[15].mxu1  ;;  %v17525_v60 = vld [vmem:[#allocation3 + $0x16f] sm:$0xff] }
 0x2ab   : > { %19559 = vst [vmem:[#allocation17_spill] sm:$0xff] %v17523_v10  ;;  %4385 = vst.msk [vmem:[#allocation3 + $0x190] sm:$0xff] %vm736_vm2, %v727_v2  ;;  %14219 = vmatmul.mubr.msk.f32.gmra.mrb[24].mxu0 %vm736_vm2, %v17525_v60  ;;  %v17599_v2 = vld [vmem:[#allocation3 + $0x30] sm:$0xff]  ;;  %v17695_v7 = vld [vmem:[#allocation3 + $0x168] sm:$0xff] }
 0x2ac   : > { %v17691_v10 = vld [vmem:[#allocation3 + $0x150] sm:$0xff] }
 0x2ad   : > { %v17530_v59 = vpop.f32.mrb[16].mxu1  ;;  %v17700_v49 = vld [vmem:[#allocation3 + $0x170] sm:$0xff] }
 0x2ae   : > { %19560 = vst [vmem:[#allocation18_spill] sm:$0xff] %v17530_v59  ;;  %v728_v56 = vpop.trf.xlu1  ;;  %v17532_v44 = vpop.f32.mrb[17].mxu1  ;;  %v17534_v54 = vld [vmem:[#allocation3 + $0x187] sm:$0xff] }
 0x2af   : > { %19561 = vst [vmem:[#allocation19_spill] sm:$0xff] %v17532_v44  ;;  %4386 = vst.msk [vmem:[#allocation3 + $0x1a8] sm:$0xff] %vm736_vm2, %v728_v56  ;;  %14221 = vmatprep.mubr.msk.f32.mxu0 %vm736_vm2, %v17534_v54  ;;  %v17603_v56 = vld [vmem:[#allocation3 + $0x48] sm:$0xff]  ;;  %v17683_v44 = vld [vmem:[#allocation3 + $0x130] sm:$0xff] }
 0x2b0   : > { %v17687_v59 = vld [vmem:[#allocation3 + $0x148] sm:$0xff] }
 0x2b1   : > { %v17539_v57 = vpop.f32.mrb[18].mxu1  ;;  %v17704_v15 = vld [vmem:[#allocation3 + $0x188] sm:$0xff] }
 0x2b2   : > { %19562 = vst [vmem:[#allocation20_spill] sm:$0xff] %v17539_v57  ;;  %v729_v42 = vpop.trf.xlu1  ;;  %v17541_v1 = vpop.f32.mrb[19].mxu1  ;;  %v17543_v6 = vld [vmem:[#allocation3 + $0x18f] sm:$0xff] }
 0x2b3   : > { %19563 = vst [vmem:[#allocation21_spill] sm:$0xff] %v17541_v1  ;;  %4387 = vst.msk [vmem:[#allocation3 + $0x1b0] sm:$0xff] %vm736_vm2, %v729_v42  ;;  %14222 = vmatmul.mubr.msk.f32.gmra.mrb[26].mxu0 %vm736_vm2, %v17543_v6  ;;  %v17659_v1 = vld [vmem:[#allocation3 + $0xd0] sm:$0xff]  ;;  %v17671_v57 = vld [vmem:[#allocation3 + $0x108] sm:$0xff] }
 0x2b4   : > { %v17709_v51 = vld [vmem:[#allocation3 + $0x190] sm:$0xff] }
 0x2b5   : > { %v17548_v11 = vpop.f32.mrb[20].mxu1  ;;  %19578 = vst [vmem:[#allocation24_spill] sm:$0xff] %v17709_v51 }
 0x2b6   : > { %19564 = vst [vmem:[#allocation22_spill] sm:$0xff] %v17548_v11  ;;  %v730_v14 = vpop.trf.xlu1  ;;  %v17550_v29 = vpop.f32.mrb[21].mxu1  ;;  %v17552_v40 = vld [vmem:[#allocation3 + $0x1a7] sm:$0xff] }
 0x2b7   : > { %19565 = vst [vmem:[#allocation36_spill] sm:$0xff] %v17550_v29  ;;  %4388 = vst.msk [vmem:[#allocation3 + $0x1c8] sm:$0xff] %vm736_vm2, %v730_v14  ;;  %14224 = vmatprep.mubr.msk.f32.mxu0 %vm736_vm2, %v17552_v40  ;;  %v17611_v14 = vld [vmem:[#allocation3 + $0x50] sm:$0xff]  ;;  %v17713_v38 = vld [vmem:[#allocation3 + $0x1a8] sm:$0xff] }
 0x2b8   : > { %v17647_v29 = vld [vmem:[#allocation3 + $0xb0] sm:$0xff]  ;;  %19579 = vst [vmem:[#allocation38_spill] sm:$0xff] %v17713_v38 }
 0x2ba   : > { %v731_v45 = vpop.trf.xlu1  ;;  %v17557_v47 = vld [vmem:[#allocation3 + $0x1af] sm:$0xff] }
 0x2bb   : > { %4389 = vst.msk [vmem:[#allocation3 + $0x1d0] sm:$0xff] %vm736_vm2, %v731_v45  ;;  %14225 = vmatmul.mubr.msk.f32.gmra.mrb[28].mxu0 %vm736_vm2, %v17557_v47  ;;  %v17615_v45 = vld [vmem:[#allocation3 + $0x68] sm:$0xff] }
 0x2be   : > { %v732_v39 = vpop.trf.xlu1  ;;  %v17562_v53 = vld [vmem:[#allocation3 + $0x1c7] sm:$0xff] }
 0x2bf   : > { %4390 = vst.msk [vmem:[#allocation3 + $0x1e8] sm:$0xff] %vm736_vm2, %v732_v39  ;;  %14227 = vmatprep.mubr.msk.f32.mxu0 %vm736_vm2, %v17562_v53  ;;  %v17721_v36 = vld [vmem:[#allocation3 + $0x1c8] sm:$0xff] }
 0x2c0   : > { %19581 = vst [vmem:[#allocation40_spill] sm:$0xff] %v17721_v36 }
 0x2c2   : > { %v733_v61 = vpop.trf.xlu1  ;;  %v17567_v13 = vld [vmem:[#allocation3 + $0x1cf] sm:$0xff] }
 0x2c3   : > { %4391 = vst.msk [vmem:[#allocation3 + $0x1f0] sm:$0xff] %vm736_vm2, %v733_v61  ;;  %14228 = vmatmul.mubr.msk.f32.gmra.mrb[30].mxu0 %vm736_vm2, %v17567_v13 }
 0x2c6   : > { %v17572_v18 = vld [vmem:[#allocation3 + $0x1e7] sm:$0xff]  ;;  %v734_v58 = vpop.trf.xlu1 }
 0x2c7   : > { %14230 = vmatprep.mubr.msk.f32.mxu0 %vm736_vm2, %v17572_v18  ;;  %4392 = vst.msk [vmem:[#allocation3 + $0x208] sm:$0xff] %vm736_vm2, %v734_v58  ;;  %v17717_v58 = vld [vmem:[#allocation3 + $0x1b0] sm:$0xff]  ;;  %v17729_v34 = vld [vmem:[#allocation3 + $0x1e8] sm:$0xff] }
 0x2c8   : > { %19580 = vst [vmem:[#allocation39_spill] sm:$0xff] %v17717_v58  ;;  %19583 = vst [vmem:[#allocation42_spill] sm:$0xff] %v17729_v34 }
 0x2ca   : > { %v17576_v23 = vld [vmem:[#allocation3 + $0x1ef] sm:$0xff]  ;;  %v735_v5 = vpop.trf.xlu1 }
 0x2cb   : > { %14231 = vmatmul.mubr.msk.f32.gmra.mrb[32].mxu0 %vm736_vm2, %v17576_v23  ;;  %4393 = vst.msk [vmem:[#allocation3 + $0x210] sm:$0xff] %vm736_vm2, %v735_v5  ;;  %v17725_v5 = vld [vmem:[#allocation3 + $0x1d0] sm:$0xff] }
 0x2cc   : > { %14235 = vmatprep.mubr.msk.f32.mxu0 %vm736_vm2, %v4783_v20  ;;  %v17623_v20 = vld [vmem:[#allocation3 + $0x70] sm:$0xff]  ;;  %19582 = vst [vmem:[#allocation41_spill] sm:$0xff] %v17725_v5 }
 0x2cd   : > { %v17733_v27 = vld [vmem:[#allocation3 + $0x1f0] sm:$0xff] }
 0x2ce   : > { %19584 = vst [vmem:[#allocation43_spill] sm:$0xff] %v17733_v27 }
 0x2cf   : > { %14236 = vmatmul.mubr.msk.f32.vlgmr.msra.gmra.mrb[2].mxu0 %vm736_vm2, %v4784_v28  ;;  %v17627_v28 = vld [vmem:[#allocation3 + $0x88] sm:$0xff] }
 0x2d0   : > { %14284 = vmatpush3.msk.msra.mxu0 %vm1005_vm3, %v17386_v48  ;;  %14238 = vmatprep.mubr.msk.f32.mxu0 %vm736_vm2, %v17587_v41 }
 0x2d1   : > { %v17593_v9 = vpop.f32.mrb[22].mxu1  ;;  %14333 = vmatprep.subr.msk.mxu0 %vm1005_vm3, %v17584_v35 }
 0x2d2   : > { %19566 = vst [vmem:[#allocation37_spill] sm:$0xff] %v17593_v9  ;;  %v17597_v52 = vpop.f32.mrb[23].mxu1 }
 0x2d3   : > { %19567 = vst [vmem:[#allocation25_spill] sm:$0xff] %v17597_v52  ;;  %14239 = vmatmul.mubr.msk.f32.gmra.mrb[4].mxu0 %vm736_vm2, %v17599_v2  ;;  %v17635_v52 = vld [vmem:[#allocation3 + $0x90] sm:$0xff] }
 0x2d4   : > { %14241 = vmatprep.mubr.msk.f32.mxu0 %vm736_vm2, %v17603_v56 }
 0x2d5   : > { %v17607_v48 = vpop.f32.mrb[24].mxu1 }
 0x2d6   : > { %19568 = vst [vmem:[#allocation26_spill] sm:$0xff] %v17607_v48  ;;  %v17609_v42 = vpop.f32.mrb[25].mxu1 }
 0x2d7   : > { %19569 = vst [vmem:[#allocation27_spill] sm:$0xff] %v17609_v42  ;;  %14242 = vmatmul.mubr.msk.f32.gmra.mrb[6].mxu0 %vm736_vm2, %v17611_v14 }
 0x2d8   : > { %14244 = vmatprep.mubr.msk.f32.mxu0 %vm736_vm2, %v17615_v45 }
 0x2d9   : > { %v17619_v39 = vpop.f32.mrb[26].mxu1 }
 0x2da   : > { %19570 = vst [vmem:[#allocation28_spill] sm:$0xff] %v17619_v39  ;;  %v17621_v61 = vpop.f32.mrb[27].mxu1 }
 0x2db   : > { %19571 = vst [vmem:[#allocation29_spill] sm:$0xff] %v17621_v61  ;;  %14245 = vmatmul.mubr.msk.f32.gmra.mrb[8].mxu0 %vm736_vm2, %v17623_v20  ;;  %v17639_v61 = vld [vmem:[#allocation3 + $0xa8] sm:$0xff] }
 0x2dc   : > { %14247 = vmatprep.mubr.msk.f32.mxu0 %vm736_vm2, %v17627_v28 }
 0x2dd   : > { %v17631_v42 = vpop.f32.mrb[28].mxu1 }
 0x2de   : > { %19572 = vst [vmem:[#allocation30_spill] sm:$0xff] %v17631_v42  ;;  %v17633_v48 = vpop.f32.mrb[29].mxu1 }
 0x2df   : > { %19573 = vst [vmem:[#allocation31_spill] sm:$0xff] %v17633_v48  ;;  %14248 = vmatmul.mubr.msk.f32.gmra.mrb[10].mxu0 %vm736_vm2, %v17635_v52  ;;  %v17651_v48 = vld [vmem:[#allocation3 + $0xc8] sm:$0xff] }
 0x2e0   : > { %14250 = vmatprep.mubr.msk.f32.mxu0 %vm736_vm2, %v17639_v61 }
 0x2e1   : > { %v17643_v39 = vpop.f32.mrb[30].mxu1 }
 0x2e2   : > { %19574 = vst [vmem:[#allocation32_spill] sm:$0xff] %v17643_v39  ;;  %v17645_v9 = vpop.f32.mrb[31].mxu1  ;;  %v17667_v39 = vld [vmem:[#allocation3 + $0xf0] sm:$0xff] }
 0x2e3   : > { %19575 = vst [vmem:[#allocation33_spill] sm:$0xff] %v17645_v9  ;;  %14251 = vmatmul.mubr.msk.f32.gmra.mrb[12].mxu0 %vm736_vm2, %v17647_v29  ;;  %v17663_v9 = vld [vmem:[#allocation3 + $0xe8] sm:$0xff] }
 0x2e4   : > { %14253 = vmatprep.mubr.msk.f32.mxu0 %vm736_vm2, %v17651_v48 }
 0x2e5   : > { %v17655_v42 = vpop.f32.mrb[32].mxu1 }
 0x2e6   : > { %19576 = vst [vmem:[#allocation34_spill] sm:$0xff] %v17655_v42  ;;  %v17657_v11 = vpop.f32.mrb[33].mxu1  ;;  %v17679_v42 = vld [vmem:[#allocation3 + $0x128] sm:$0xff] }
 0x2e7   : > { %19577 = vst [vmem:[#allocation23_spill] sm:$0xff] %v17657_v11  ;;  %14254 = vmatmul.mubr.msk.f32.gmra.mrb[14].mxu0 %vm736_vm2, %v17659_v1  ;;  %v17675_v11 = vld [vmem:[#allocation3 + $0x110] sm:$0xff] }
 0x2e8   : > { %14256 = vmatprep.mubr.msk.f32.mxu0 %vm736_vm2, %v17663_v9 }
 0x2eb   : > { %14257 = vmatmul.mubr.msk.f32.gmra.mrb[16].mxu0 %vm736_vm2, %v17667_v39 }
 0x2ec   : > { %14259 = vmatprep.mubr.msk.f32.mxu0 %vm736_vm2, %v17671_v57 }
 0x2ef   : > { %14260 = vmatmul.mubr.msk.f32.gmra.mrb[18].mxu0 %vm736_vm2, %v17675_v11 }
 0x2f0   : > { %14262 = vmatprep.mubr.msk.f32.mxu0 %vm736_vm2, %v17679_v42 }
 0x2f3   : > { %14263 = vmatmul.mubr.msk.f32.gmra.mrb[20].mxu0 %vm736_vm2, %v17683_v44 }
 0x2f4   : > { %14265 = vmatprep.mubr.msk.f32.mxu0 %vm736_vm2, %v17687_v59 }
 0x2f7   : > { %14266 = vmatmul.mubr.msk.f32.gmra.mrb[22].mxu0 %vm736_vm2, %v17691_v10 }
 0x2f8   : > { %14268 = vmatprep.mubr.msk.f32.mxu0 %vm736_vm2, %v17695_v7 }
 0x2fb   : > { %14269 = vmatmul.mubr.msk.f32.gmra.mrb[24].mxu0 %vm736_vm2, %v17700_v49 }
 0x2fc   : > { %14271 = vmatprep.mubr.msk.f32.mxu0 %vm736_vm2, %v17704_v15 }
 0x2ff   : > { %14272 = vmatmul.mubr.msk.f32.gmra.mrb[26].mxu0 %vm736_vm2, %v17709_v51 }
 0x300   : > { %14274 = vmatprep.mubr.msk.f32.mxu0 %vm736_vm2, %v17713_v38 }
 0x303   : > { %14275 = vmatmul.mubr.msk.f32.gmra.mrb[28].mxu0 %vm736_vm2, %v17717_v58 }
 0x304   : > { %14277 = vmatprep.mubr.msk.f32.mxu0 %vm736_vm2, %v17721_v36 }
 0x307   : > { %14278 = vmatmul.mubr.msk.f32.gmra.mrb[30].mxu0 %vm736_vm2, %v17725_v5  ;;  %v17744_v5 = vld [vmem:[#allocation3 + $0x29] sm:$0xff] }
 0x308   : > { %14280 = vmatprep.mubr.msk.f32.mxu0 %vm736_vm2, %v17729_v34  ;;  %19585 = vst [vmem:[#allocation44_spill] sm:$0xff] %v17744_v5 }
 0x30b   : > { %14281 = vmatmul.mubr.msk.f32.gmra.mrb[32].mxu0 %vm736_vm2, %v17733_v27  ;;  %v17756_v27 = vld [vmem:[#allocation3 + $0x49] sm:$0xff] }
 0x30c   : > { %14285 = vmatprep.mubr.msk.f32.mxu0 %vm736_vm2, %v5173_v30  ;;  %v17752_v30 = vld [vmem:[#allocation3 + $0x31] sm:$0xff]  ;;  %19587 = vst [vmem:[#allocation46_spill] sm:$0xff] %v17756_v27 }
 0x30d   : > { %19586 = vst [vmem:[#allocation45_spill] sm:$0xff] %v17752_v30 }
 0x30f   : > { %14286 = vmatmul.mubr.msk.f32.vlgmr.msra.gmra.mrb[2].mxu0 %vm736_vm2, %v5174_v24  ;;  %v17760_v24 = vld [vmem:[#allocation3 + $0x51] sm:$0xff] }
 0x310   : > { %14334 = vmatpush3.msk.msra.mxu0 %vm1005_vm3, %v17584_v35  ;;  %14288 = vmatprep.mubr.msk.f32.mxu0 %vm736_vm2, %v17744_v5  ;;  %19588 = vst [vmem:[#allocation47_spill] sm:$0xff] %v17760_v24  ;;  %v17764_v35 = vld [vmem:[#allocation3 + $0x69] sm:$0xff]  ;;  %v17768_v5 = vld [vmem:[#allocation3 + $0x71] sm:$0xff] }
 0x311   : > { %14383 = vmatprep.subr.msk.mxu0 %vm1005_vm3, %v17741_v22  ;;  %19589 = vst [vmem:[#allocation48_spill] sm:$0xff] %v17764_v35  ;;  %19590 = vst [vmem:[#allocation49_spill] sm:$0xff] %v17768_v5 }
 0x313   : > { %14289 = vmatmul.mubr.msk.f32.gmra.mrb[4].mxu0 %vm736_vm2, %v17752_v30  ;;  %v17772_v30 = vld [vmem:[#allocation3 + $0x89] sm:$0xff] }
 0x314   : > { %14291 = vmatprep.mubr.msk.f32.mxu0 %vm736_vm2, %v17756_v27  ;;  %19591 = vst [vmem:[#allocation50_spill] sm:$0xff] %v17772_v30  ;;  %v17776_v27 = vld [vmem:[#allocation3 + $0x91] sm:$0xff] }
 0x315   : > { %19592 = vst [vmem:[#allocation51_spill] sm:$0xff] %v17776_v27 }
 0x317   : > { %14292 = vmatmul.mubr.msk.f32.gmra.mrb[6].mxu0 %vm736_vm2, %v17760_v24  ;;  %v17780_v24 = vld [vmem:[#allocation3 + $0xa9] sm:$0xff] }
 0x318   : > { %14294 = vmatprep.mubr.msk.f32.mxu0 %vm736_vm2, %v17764_v35  ;;  %19593 = vst [vmem:[#allocation52_spill] sm:$0xff] %v17780_v24  ;;  %v17784_v35 = vld [vmem:[#allocation3 + $0xb1] sm:$0xff] }
 0x319   : > { %19594 = vst [vmem:[#allocation53_spill] sm:$0xff] %v17784_v35 }
 0x31b   : > { %14295 = vmatmul.mubr.msk.f32.gmra.mrb[8].mxu0 %vm736_vm2, %v17768_v5  ;;  %v17788_v5 = vld [vmem:[#allocation3 + $0xc9] sm:$0xff] }
 0x31c   : > { %14297 = vmatprep.mubr.msk.f32.mxu0 %vm736_vm2, %v17772_v30  ;;  %19595 = vst [vmem:[#allocation54_spill] sm:$0xff] %v17788_v5  ;;  %v17792_v30 = vld [vmem:[#allocation3 + $0xd1] sm:$0xff] }
 0x31d   : > { %19596 = vst [vmem:[#allocation55_spill] sm:$0xff] %v17792_v30 }
 0x31f   : > { %14298 = vmatmul.mubr.msk.f32.gmra.mrb[10].mxu0 %vm736_vm2, %v17776_v27  ;;  %v17796_v27 = vld [vmem:[#allocation3 + $0xe9] sm:$0xff] }
 0x320   : > { %14300 = vmatprep.mubr.msk.f32.mxu0 %vm736_vm2, %v17780_v24  ;;  %19597 = vst [vmem:[#allocation56_spill] sm:$0xff] %v17796_v27  ;;  %v17800_v24 = vld [vmem:[#allocation3 + $0xf1] sm:$0xff] }
 0x321   : > { %19598 = vst [vmem:[#allocation57_spill] sm:$0xff] %v17800_v24 }
 0x323   : > { %14301 = vmatmul.mubr.msk.f32.gmra.mrb[12].mxu0 %vm736_vm2, %v17784_v35  ;;  %v17804_v35 = vld [vmem:[#allocation3 + $0x109] sm:$0xff] }
 0x324   : > { %14303 = vmatprep.mubr.msk.f32.mxu0 %vm736_vm2, %v17788_v5  ;;  %19599 = vst [vmem:[#allocation58_spill] sm:$0xff] %v17804_v35  ;;  %v17808_v5 = vld [vmem:[#allocation3 + $0x111] sm:$0xff] }
 0x325   : > { %19600 = vst [vmem:[#allocation59_spill] sm:$0xff] %v17808_v5 }
 0x327   : > { %14304 = vmatmul.mubr.msk.f32.gmra.mrb[14].mxu0 %vm736_vm2, %v17792_v30  ;;  %v17812_v30 = vld [vmem:[#allocation3 + $0x129] sm:$0xff] }
 0x328   : > { %14306 = vmatprep.mubr.msk.f32.mxu0 %vm736_vm2, %v17796_v27  ;;  %19601 = vst [vmem:[#allocation60_spill] sm:$0xff] %v17812_v30  ;;  %v17816_v27 = vld [vmem:[#allocation3 + $0x131] sm:$0xff] }
 0x329   : > { %19602 = vst [vmem:[#allocation61_spill] sm:$0xff] %v17816_v27 }
 0x32b   : > { %14307 = vmatmul.mubr.msk.f32.gmra.mrb[16].mxu0 %vm736_vm2, %v17800_v24  ;;  %v17820_v24 = vld [vmem:[#allocation3 + $0x149] sm:$0xff] }
 0x32c   : > { %14309 = vmatprep.mubr.msk.f32.mxu0 %vm736_vm2, %v17804_v35  ;;  %19603 = vst [vmem:[#allocation62_spill] sm:$0xff] %v17820_v24  ;;  %v17824_v35 = vld [vmem:[#allocation3 + $0x151] sm:$0xff] }
 0x32d   : > { %19604 = vst [vmem:[#allocation63_spill] sm:$0xff] %v17824_v35 }
 0x32f   : > { %14310 = vmatmul.mubr.msk.f32.gmra.mrb[18].mxu0 %vm736_vm2, %v17808_v5  ;;  %v17828_v5 = vld [vmem:[#allocation3 + $0x169] sm:$0xff] }
 0x330   : > { %14312 = vmatprep.mubr.msk.f32.mxu0 %vm736_vm2, %v17812_v30  ;;  %19605 = vst [vmem:[#allocation64_spill] sm:$0xff] %v17828_v5  ;;  %v17832_v30 = vld [vmem:[#allocation3 + $0x171] sm:$0xff] }
 0x331   : > { %19606 = vst [vmem:[#allocation65_spill] sm:$0xff] %v17832_v30 }
 0x333   : > { %14313 = vmatmul.mubr.msk.f32.gmra.mrb[20].mxu0 %vm736_vm2, %v17816_v27  ;;  %v17836_v27 = vld [vmem:[#allocation3 + $0x189] sm:$0xff] }
 0x334   : > { %14315 = vmatprep.mubr.msk.f32.mxu0 %vm736_vm2, %v17820_v24  ;;  %19607 = vst [vmem:[#allocation66_spill] sm:$0xff] %v17836_v27  ;;  %v17840_v24 = vld [vmem:[#allocation3 + $0x191] sm:$0xff] }
 0x335   : > { %19608 = vst [vmem:[#allocation67_spill] sm:$0xff] %v17840_v24 }
 0x337   : > { %14316 = vmatmul.mubr.msk.f32.gmra.mrb[22].mxu0 %vm736_vm2, %v17824_v35  ;;  %v17844_v35 = vld [vmem:[#allocation3 + $0x1a9] sm:$0xff] }
 0x338   : > { %14318 = vmatprep.mubr.msk.f32.mxu0 %vm736_vm2, %v17828_v5  ;;  %19609 = vst [vmem:[#allocation68_spill] sm:$0xff] %v17844_v35  ;;  %v17848_v5 = vld [vmem:[#allocation3 + $0x1b1] sm:$0xff] }
 0x33b   : > { %14319 = vmatmul.mubr.msk.f32.gmra.mrb[24].mxu0 %vm736_vm2, %v17832_v30  ;;  %v17852_v30 = vld [vmem:[#allocation3 + $0x1c9] sm:$0xff] }
 0x33c   : > { %14321 = vmatprep.mubr.msk.f32.mxu0 %vm736_vm2, %v17836_v27  ;;  %19610 = vst [vmem:[#allocation69_spill] sm:$0xff] %v17852_v30  ;;  %v17856_v27 = vld [vmem:[#allocation3 + $0x1d1] sm:$0xff] }
 0x33f   : > { %14322 = vmatmul.mubr.msk.f32.gmra.mrb[26].mxu0 %vm736_vm2, %v17840_v24  ;;  %v17860_v24 = vld [vmem:[#allocation3 + $0x1e9] sm:$0xff] }
 0x340   : > { %14324 = vmatprep.mubr.msk.f32.mxu0 %vm736_vm2, %v17844_v35  ;;  %19611 = vst [vmem:[#allocation70_spill] sm:$0xff] %v17860_v24  ;;  %v17864_v35 = vld [vmem:[#allocation3 + $0x1f1] sm:$0xff] }
 0x343   : > { %14325 = vmatmul.mubr.msk.f32.gmra.mrb[28].mxu0 %vm736_vm2, %v17848_v5 }
 0x344   : > { %14327 = vmatprep.mubr.msk.f32.mxu0 %vm736_vm2, %v17852_v30  ;;  %v12395_v30 = vld [vmem:[%s19303_s6 + $0x14] sm:$0xf] }
 0x347   : > { %14328 = vmatmul.mubr.msk.f32.gmra.mrb[30].mxu0 %vm736_vm2, %v17856_v27 }
 0x348   : > { %14330 = vmatprep.mubr.msk.f32.mxu0 %vm736_vm2, %v17860_v24 }
 0x34b   : > { %14331 = vmatmul.mubr.msk.f32.gmra.mrb[32].mxu0 %vm736_vm2, %v17864_v35 }
 0x34c   : > { %14335 = vmatprep.mubr.msk.f32.mxu0 %vm736_vm2, %v17392_v62  ;;  %v17932_v62 = vld [vmem:[#allocation3 + $0x207] sm:$0xff] }
 0x34f   : > { %14336 = vmatmul.mubr.msk.f32.vlgmr.msra.gmra.mrb[2].mxu0 %vm736_vm2, %v17397_v4  ;;  %v17938_v4 = vld [vmem:[#allocation3 + $0x20f] sm:$0xff] }
 0x350   : > { %14384 = vmatpush3.msk.msra.mxu0 %vm1005_vm3, %v17741_v22  ;;  %14338 = vmatprep.mubr.msk.f32.mxu0 %vm736_vm2, %v17402_v8  ;;  %v12429_v22 = vld [vmem:[%s19303_s6 + $0x18] sm:$0xf] }
 0x351   : > { %14433 = vmatprep.subr.msk.mxu0 %vm1005_vm3, %v12395_v30 }
 0x353   : > { %14339 = vmatmul.mubr.msk.f32.gmra.mrb[4].mxu0 %vm736_vm2, %v17407_v12 }
 0x354   : > { %14341 = vmatprep.mubr.msk.f32.mxu0 %vm736_vm2, %v17412_v17 }
 0x357   : > { %14342 = vmatmul.mubr.msk.f32.gmra.mrb[6].mxu0 %vm736_vm2, %v17417_v31 }
 0x358   : > { %14344 = vmatprep.mubr.msk.f32.mxu0 %vm736_vm2, %v17422_v43 }
 0x35b   : > { %14345 = vmatmul.mubr.msk.f32.gmra.mrb[8].mxu0 %vm736_vm2, %v17427_v26 }
 0x35c   : > { %14347 = vmatprep.mubr.msk.f32.mxu0 %vm736_vm2, %v17432_v50 }
 0x35f   : > { %14348 = vmatmul.mubr.msk.f32.gmra.mrb[10].mxu0 %vm736_vm2, %v17437_v33 }
 0x360   : > { %14350 = vmatprep.mubr.msk.f32.mxu0 %vm736_vm2, %v17442_v55 }
 0x363   : > { %14351 = vmatmul.mubr.msk.f32.gmra.mrb[12].mxu0 %vm736_vm2, %v17447_v0 }
 0x364   : > { %14353 = vmatprep.mubr.msk.f32.mxu0 %vm736_vm2, %v17452_v16 }
 0x367   : > { %14354 = vmatmul.mubr.msk.f32.gmra.mrb[14].mxu0 %vm736_vm2, %v17457_v19 }
 0x368   : > { %14356 = vmatprep.mubr.msk.f32.mxu0 %vm736_vm2, %v17462_v21 }
 0x36b   : > { %14357 = vmatmul.mubr.msk.f32.gmra.mrb[16].mxu0 %vm736_vm2, %v17471_v25 }
 0x36c   : > { %14359 = vmatprep.mubr.msk.f32.mxu0 %vm736_vm2, %v17480_v32 }
 0x36f   : > { %14360 = vmatmul.mubr.msk.f32.gmra.mrb[18].mxu0 %vm736_vm2, %v17489_v37 }
 0x370   : > { %14362 = vmatprep.mubr.msk.f32.mxu0 %vm736_vm2, %v17498_v63 }
 0x373   : > { %14363 = vmatmul.mubr.msk.f32.gmra.mrb[20].mxu0 %vm736_vm2, %v17507_v46 }
 0x374   : > { %14365 = vmatprep.mubr.msk.f32.mxu0 %vm736_vm2, %v17516_v3 }
 0x377   : > { %14366 = vmatmul.mubr.msk.f32.gmra.mrb[22].mxu0 %vm736_vm2, %v17525_v60 }
 0x378   : > { %14368 = vmatprep.mubr.msk.f32.mxu0 %vm736_vm2, %v17534_v54 }
 0x37b   : > { %14369 = vmatmul.mubr.msk.f32.gmra.mrb[24].mxu0 %vm736_vm2, %v17543_v6 }
 0x37c   : > { %14371 = vmatprep.mubr.msk.f32.mxu0 %vm736_vm2, %v17552_v40 }
 0x37f   : > { %14372 = vmatmul.mubr.msk.f32.gmra.mrb[26].mxu0 %vm736_vm2, %v17557_v47 }
 0x380   : > { %14374 = vmatprep.mubr.msk.f32.mxu0 %vm736_vm2, %v17562_v53 }
 0x383   : > { %14375 = vmatmul.mubr.msk.f32.gmra.mrb[28].mxu0 %vm736_vm2, %v17567_v13 }
 0x384   : > { %14377 = vmatprep.mubr.msk.f32.mxu0 %vm736_vm2, %v17572_v18 }
 0x387   : > { %14378 = vmatmul.mubr.msk.f32.gmra.mrb[30].mxu0 %vm736_vm2, %v17576_v23 }
 0x388   : > { %14380 = vmatprep.mubr.msk.f32.mxu0 %vm736_vm2, %v17932_v62 }
 0x38b   : > { %14381 = vmatmul.mubr.msk.f32.gmra.mrb[32].mxu0 %vm736_vm2, %v17938_v4 }
 0x38c   : > { %14385 = vmatprep.mubr.msk.f32.mxu0 %vm736_vm2, %v17587_v41  ;;  %v19612_v41 = vld [vmem:[#allocation41_spill] sm:$0xff] }
 0x38f   : > { %14386 = vmatmul.mubr.msk.f32.vlgmr.msra.gmra.mrb[2].mxu0 %vm736_vm2, %v17599_v2  ;;  %v19613_v2 = vld [vmem:[#allocation43_spill] sm:$0xff] }
 0x390   : > { %14434 = vmatpush3.msk.msra.mxu0 %vm1005_vm3, %v12395_v30  ;;  %14388 = vmatprep.mubr.msk.f32.mxu0 %vm736_vm2, %v17603_v56  ;;  %v18007_v30 = vld [vmem:[#allocation3 + $0x208] sm:$0xff] }
 0x391   : > { %14483 = vmatprep.subr.msk.mxu0 %vm1005_vm3, %v12429_v22  ;;  %19614 = vst [vmem:[#allocation71_spill] sm:$0xff] %v18007_v30 }
 0x393   : > { %14389 = vmatmul.mubr.msk.f32.gmra.mrb[4].mxu0 %vm736_vm2, %v17611_v14 }
 0x394   : > { %14391 = vmatprep.mubr.msk.f32.mxu0 %vm736_vm2, %v17615_v45 }
 0x397   : > { %14392 = vmatmul.mubr.msk.f32.gmra.mrb[6].mxu0 %vm736_vm2, %v17623_v20 }
 0x398   : > { %14394 = vmatprep.mubr.msk.f32.mxu0 %vm736_vm2, %v17627_v28 }
 0x39b   : > { %14395 = vmatmul.mubr.msk.f32.gmra.mrb[8].mxu0 %vm736_vm2, %v17635_v52 }
 0x39c   : > { %14397 = vmatprep.mubr.msk.f32.mxu0 %vm736_vm2, %v17639_v61 }
 0x39f   : > { %14398 = vmatmul.mubr.msk.f32.gmra.mrb[10].mxu0 %vm736_vm2, %v17647_v29 }
 0x3a0   : > { %14400 = vmatprep.mubr.msk.f32.mxu0 %vm736_vm2, %v17651_v48 }
 0x3a3   : > { %14401 = vmatmul.mubr.msk.f32.gmra.mrb[12].mxu0 %vm736_vm2, %v17659_v1 }
 0x3a4   : > { %14403 = vmatprep.mubr.msk.f32.mxu0 %vm736_vm2, %v17663_v9 }
 0x3a7   : > { %14404 = vmatmul.mubr.msk.f32.gmra.mrb[14].mxu0 %vm736_vm2, %v17667_v39 }
 0x3a8   : > { %14406 = vmatprep.mubr.msk.f32.mxu0 %vm736_vm2, %v17671_v57 }
 0x3ab   : > { %14407 = vmatmul.mubr.msk.f32.gmra.mrb[16].mxu0 %vm736_vm2, %v17675_v11 }
 0x3ac   : > { %14409 = vmatprep.mubr.msk.f32.mxu0 %vm736_vm2, %v17679_v42 }
 0x3af   : > { %14410 = vmatmul.mubr.msk.f32.gmra.mrb[18].mxu0 %vm736_vm2, %v17683_v44 }
 0x3b0   : > { %14412 = vmatprep.mubr.msk.f32.mxu0 %vm736_vm2, %v17687_v59 }
 0x3b3   : > { %14413 = vmatmul.mubr.msk.f32.gmra.mrb[20].mxu0 %vm736_vm2, %v17691_v10 }
 0x3b4   : > { %14415 = vmatprep.mubr.msk.f32.mxu0 %vm736_vm2, %v17695_v7 }
 0x3b7   : > { %14416 = vmatmul.mubr.msk.f32.gmra.mrb[22].mxu0 %vm736_vm2, %v17700_v49 }
 0x3b8   : > { %14418 = vmatprep.mubr.msk.f32.mxu0 %vm736_vm2, %v17704_v15 }
 0x3bb   : > { %14419 = vmatmul.mubr.msk.f32.gmra.mrb[24].mxu0 %vm736_vm2, %v17709_v51  ;;  %v19626_v51 = vld [vmem:[#allocation54_spill] sm:$0xff] }
 0x3bc   : > { %14421 = vmatprep.mubr.msk.f32.mxu0 %vm736_vm2, %v17713_v38  ;;  %v18011_v38 = vld [vmem:[#allocation3 + $0x210] sm:$0xff] }
 0x3bd   : > { %19615 = vst [vmem:[#allocation72_spill] sm:$0xff] %v18011_v38 }
 0x3bf   : > { %14422 = vmatmul.mubr.msk.f32.gmra.mrb[26].mxu0 %vm736_vm2, %v17717_v58  ;;  %v19622_v58 = vld [vmem:[#allocation50_spill] sm:$0xff] }
 0x3c0   : > { %14424 = vmatprep.mubr.msk.f32.mxu0 %vm736_vm2, %v17721_v36  ;;  %v19616_v36 = vld [vmem:[#allocation44_spill] sm:$0xff] }
 0x3c3   : > { %14425 = vmatmul.mubr.msk.f32.gmra.mrb[28].mxu0 %vm736_vm2, %v19612_v41  ;;  %v19617_v41 = vld [vmem:[#allocation45_spill] sm:$0xff] }
 0x3c4   : > { %14427 = vmatprep.mubr.msk.f32.mxu0 %vm736_vm2, %v17729_v34  ;;  %v12463_v34 = vld [vmem:[%s19303_s6 + $0x1c] sm:$0xf] }
 0x3c7   : > { %14428 = vmatmul.mubr.msk.f32.gmra.mrb[30].mxu0 %vm736_vm2, %v19613_v2  ;;  %v19618_v2 = vld [vmem:[#allocation46_spill] sm:$0xff] }
 0x3c8   : > { %14430 = vmatprep.mubr.msk.f32.mxu0 %vm736_vm2, %v18007_v30  ;;  %v19619_v30 = vld [vmem:[#allocation47_spill] sm:$0xff] }
 0x3cb   : > { %14431 = vmatmul.mubr.msk.f32.gmra.mrb[32].mxu0 %vm736_vm2, %v18011_v38  ;;  %v19620_v38 = vld [vmem:[#allocation48_spill] sm:$0xff] }
 0x3cc   : > { %14435 = vmatprep.mubr.msk.f32.mxu0 %vm736_vm2, %v19616_v36  ;;  %v19621_v36 = vld [vmem:[#allocation49_spill] sm:$0xff] }
 0x3cf   : > { %14436 = vmatmul.mubr.msk.f32.vlgmr.msra.gmra.mrb[2].mxu0 %vm736_vm2, %v19617_v41  ;;  %v19623_v41 = vld [vmem:[#allocation51_spill] sm:$0xff] }
 0x3d0   : > { %14484 = vmatpush3.msk.msra.mxu0 %vm1005_vm3, %v12429_v22  ;;  %14438 = vmatprep.mubr.msk.f32.mxu0 %vm736_vm2, %v19618_v2  ;;  %v19624_v22 = vld [vmem:[#allocation52_spill] sm:$0xff]  ;;  %v19625_v2 = vld [vmem:[#allocation53_spill] sm:$0xff] }
 0x3d1   : > { %14533 = vmatprep.subr.msk.mxu0 %vm1005_vm3, %v12463_v34 }
 0x3d3   : > { %14439 = vmatmul.mubr.msk.f32.gmra.mrb[4].mxu0 %vm736_vm2, %v19619_v30  ;;  %v19627_v30 = vld [vmem:[#allocation55_spill] sm:$0xff] }
 0x3d4   : > { %14441 = vmatprep.mubr.msk.f32.mxu0 %vm736_vm2, %v19620_v38  ;;  %v19628_v38 = vld [vmem:[#allocation56_spill] sm:$0xff] }
 0x3d7   : > { %14442 = vmatmul.mubr.msk.f32.gmra.mrb[6].mxu0 %vm736_vm2, %v19621_v36  ;;  %v19629_v36 = vld [vmem:[#allocation57_spill] sm:$0xff] }
 0x3d8   : > { %14444 = vmatprep.mubr.msk.f32.mxu0 %vm736_vm2, %v19622_v58  ;;  %v19630_v58 = vld [vmem:[#allocation58_spill] sm:$0xff] }
 0x3db   : > { %14445 = vmatmul.mubr.msk.f32.gmra.mrb[8].mxu0 %vm736_vm2, %v19623_v41  ;;  %v19631_v41 = vld [vmem:[#allocation59_spill] sm:$0xff] }
 0x3dc   : > { %14447 = vmatprep.mubr.msk.f32.mxu0 %vm736_vm2, %v19624_v22  ;;  %v19632_v22 = vld [vmem:[#allocation60_spill] sm:$0xff] }
 0x3df   : > { %14448 = vmatmul.mubr.msk.f32.gmra.mrb[10].mxu0 %vm736_vm2, %v19625_v2  ;;  %v19633_v2 = vld [vmem:[#allocation61_spill] sm:$0xff] }
 0x3e0   : > { %14450 = vmatprep.mubr.msk.f32.mxu0 %vm736_vm2, %v19626_v51  ;;  %v19634_v51 = vld [vmem:[#allocation62_spill] sm:$0xff] }
 0x3e3   : > { %14451 = vmatmul.mubr.msk.f32.gmra.mrb[12].mxu0 %vm736_vm2, %v19627_v30  ;;  %v19635_v30 = vld [vmem:[#allocation63_spill] sm:$0xff] }
 0x3e4   : > { %14453 = vmatprep.mubr.msk.f32.mxu0 %vm736_vm2, %v19628_v38  ;;  %v19636_v38 = vld [vmem:[#allocation64_spill] sm:$0xff] }
 0x3e7   : > { %14454 = vmatmul.mubr.msk.f32.gmra.mrb[14].mxu0 %vm736_vm2, %v19629_v36  ;;  %v19637_v36 = vld [vmem:[#allocation65_spill] sm:$0xff] }
 0x3e8   : > { %14456 = vmatprep.mubr.msk.f32.mxu0 %vm736_vm2, %v19630_v58  ;;  %v19638_v58 = vld [vmem:[#allocation66_spill] sm:$0xff] }
 0x3eb   : > { %14457 = vmatmul.mubr.msk.f32.gmra.mrb[16].mxu0 %vm736_vm2, %v19631_v41  ;;  %v19639_v41 = vld [vmem:[#allocation67_spill] sm:$0xff] }
 0x3ec   : > { %14459 = vmatprep.mubr.msk.f32.mxu0 %vm736_vm2, %v19632_v22  ;;  %v19640_v22 = vld [vmem:[#allocation68_spill] sm:$0xff] }
 0x3ef   : > { %14460 = vmatmul.mubr.msk.f32.gmra.mrb[18].mxu0 %vm736_vm2, %v19633_v2 }
 0x3f0   : > { %14462 = vmatprep.mubr.msk.f32.mxu0 %vm736_vm2, %v19634_v51  ;;  %v19641_v51 = vld [vmem:[#allocation69_spill] sm:$0xff] }
 0x3f3   : > { %14463 = vmatmul.mubr.msk.f32.gmra.mrb[20].mxu0 %vm736_vm2, %v19635_v30 }
 0x3f4   : > { %14465 = vmatprep.mubr.msk.f32.mxu0 %vm736_vm2, %v19636_v38 }
 0x3f7   : > { %14466 = vmatmul.mubr.msk.f32.gmra.mrb[22].mxu0 %vm736_vm2, %v19637_v36 }
 0x3f8   : > { %14468 = vmatprep.mubr.msk.f32.mxu0 %vm736_vm2, %v19638_v58  ;;  %v18080_v58 = vld [vmem:[#allocation3 + $0x209] sm:$0xff] }
 0x3fb   : > { %14469 = vmatmul.mubr.msk.f32.gmra.mrb[24].mxu0 %vm736_vm2, %v19639_v41 }
 0x3fc   : > { %14471 = vmatprep.mubr.msk.f32.mxu0 %vm736_vm2, %v19640_v22  ;;  %v18084_v22 = vld [vmem:[#allocation3 + $0x211] sm:$0xff] }
 0x3ff   : > { %14472 = vmatmul.mubr.msk.f32.gmra.mrb[26].mxu0 %vm736_vm2, %v17848_v5 }
 0x400   : > { %14474 = vmatprep.mubr.msk.f32.mxu0 %vm736_vm2, %v19641_v51 }
 0x403   : > { %14475 = vmatmul.mubr.msk.f32.gmra.mrb[28].mxu0 %vm736_vm2, %v17856_v27 }
 0x404   : > { %14477 = vmatprep.mubr.msk.f32.mxu0 %vm736_vm2, %v17860_v24  ;;  %v12497_v24 = vld [vmem:[%s19303_s6 + $0x20] sm:$0xf] }
 0x407   : > { %14478 = vmatmul.mubr.msk.f32.gmra.mrb[30].mxu0 %vm736_vm2, %v17864_v35 }
 0x408   : > { %14480 = vmatprep.mubr.msk.f32.mxu0 %vm736_vm2, %v18080_v58 }
 0x40b   : > { %14481 = vmatmul.mubr.msk.f32.gmra.mrb[32].mxu0 %vm736_vm2, %v18084_v22 }
 0x40c   : > { %14485 = vmatprep.mubr.msk.f32.mxu0 %vm736_vm2, %v17402_v8  ;;  %v6764_v8 = vld [vmem:[#allocation3 + $0x227] sm:$0xff] }
 0x40f   : > { %14486 = vmatmul.mubr.msk.f32.vlgmr.msra.gmra.mrb[2].mxu0 %vm736_vm2, %v17407_v12  ;;  %v6765_v12 = vld [vmem:[#allocation3 + $0x22f] sm:$0xff] }
 0x410   : > { %14534 = vmatpush3.msk.msra.mxu0 %vm1005_vm3, %v12463_v34  ;;  %14488 = vmatprep.mubr.msk.f32.mxu0 %vm736_vm2, %v17412_v17  ;;  %v12533_v17 = vld [vmem:[%s19306_s9 + $0x8] sm:$0xff]  ;;  %v19652_v34 = vld [vmem:[#allocation47_spill] sm:$0xff] }
 0x411   : > { %14583 = vmatprep.subr.msk.mxu0 %vm1005_vm3, %v12497_v24  ;;  %14633 = vmatprep.subr.mxu1 %v12533_v17 }
 0x412   : > { %14634 = vmatpush3.msra.mxu1 %v12533_v17 }
 0x413   : > { %14489 = vmatmul.mubr.msk.f32.gmra.mrb[4].mxu0 %vm736_vm2, %v17417_v31  ;;  %v19642_v31 = vld [vmem:[#allocation24_spill] sm:$0xff] }
 0x414   : > { %14491 = vmatprep.mubr.msk.f32.mxu0 %vm736_vm2, %v17422_v43  ;;  %v19643_v43 = vld [vmem:[#allocation38_spill] sm:$0xff] }
 0x417   : > { %14492 = vmatmul.mubr.msk.f32.gmra.mrb[6].mxu0 %vm736_vm2, %v17427_v26  ;;  %v19644_v26 = vld [vmem:[#allocation39_spill] sm:$0xff] }
 0x418   : > { %14494 = vmatprep.mubr.msk.f32.mxu0 %vm736_vm2, %v17432_v50  ;;  %v19645_v50 = vld [vmem:[#allocation40_spill] sm:$0xff] }
 0x41b   : > { %14495 = vmatmul.mubr.msk.f32.gmra.mrb[8].mxu0 %vm736_vm2, %v17437_v33  ;;  %v19646_v33 = vld [vmem:[#allocation41_spill] sm:$0xff] }
 0x41c   : > { %14497 = vmatprep.mubr.msk.f32.mxu0 %vm736_vm2, %v17442_v55  ;;  %v19647_v55 = vld [vmem:[#allocation42_spill] sm:$0xff] }
 0x41f   : > { %14498 = vmatmul.mubr.msk.f32.gmra.mrb[10].mxu0 %vm736_vm2, %v17447_v0  ;;  %v19648_v0 = vld [vmem:[#allocation43_spill] sm:$0xff] }
 0x420   : > { %14500 = vmatprep.mubr.msk.f32.mxu0 %vm736_vm2, %v17452_v16  ;;  %v19649_v16 = vld [vmem:[#allocation71_spill] sm:$0xff] }
 0x423   : > { %14501 = vmatmul.mubr.msk.f32.gmra.mrb[12].mxu0 %vm736_vm2, %v17457_v19  ;;  %v7154_v19 = vld [vmem:[#allocation3 + $0x228] sm:$0xff] }
 0x424   : > { %14503 = vmatprep.mubr.msk.f32.mxu0 %vm736_vm2, %v17462_v21  ;;  %v19650_v21 = vld [vmem:[#allocation72_spill] sm:$0xff] }
 0x427   : > { %14504 = vmatmul.mubr.msk.f32.gmra.mrb[14].mxu0 %vm736_vm2, %v17471_v25  ;;  %v7155_v25 = vld [vmem:[#allocation3 + $0x230] sm:$0xff] }
 0x428   : > { %14506 = vmatprep.mubr.msk.f32.mxu0 %vm736_vm2, %v17480_v32  ;;  %v19651_v32 = vld [vmem:[#allocation46_spill] sm:$0xff] }
 0x42b   : > { %14507 = vmatmul.mubr.msk.f32.gmra.mrb[16].mxu0 %vm736_vm2, %v17489_v37  ;;  %v19653_v37 = vld [vmem:[#allocation48_spill] sm:$0xff] }
 0x42c   : > { %14509 = vmatprep.mubr.msk.f32.mxu0 %vm736_vm2, %v17498_v63  ;;  %v19654_v63 = vld [vmem:[#allocation49_spill] sm:$0xff] }
 0x42f   : > { %14510 = vmatmul.mubr.msk.f32.gmra.mrb[18].mxu0 %vm736_vm2, %v17507_v46  ;;  %v19656_v46 = vld [vmem:[#allocation51_spill] sm:$0xff] }
 0x430   : > { %14512 = vmatprep.mubr.msk.f32.mxu0 %vm736_vm2, %v17516_v3  ;;  %v19658_v3 = vld [vmem:[#allocation53_spill] sm:$0xff] }
 0x433   : > { %14513 = vmatmul.mubr.msk.f32.gmra.mrb[20].mxu0 %vm736_vm2, %v17525_v60  ;;  %v19661_v60 = vld [vmem:[#allocation56_spill] sm:$0xff] }
 0x434   : > { %14515 = vmatprep.mubr.msk.f32.mxu0 %vm736_vm2, %v17534_v54  ;;  %v19664_v54 = vld [vmem:[#allocation59_spill] sm:$0xff] }
 0x437   : > { %14516 = vmatmul.mubr.msk.f32.gmra.mrb[22].mxu0 %vm736_vm2, %v17543_v6  ;;  %v19667_v6 = vld [vmem:[#allocation66_spill] sm:$0xff] }
 0x438   : > { %14518 = vmatprep.mubr.msk.f32.mxu0 %vm736_vm2, %v17552_v40  ;;  %v7545_v40 = vld [vmem:[#allocation3 + $0x231] sm:$0xff] }
 0x43b   : > { %14519 = vmatmul.mubr.msk.f32.gmra.mrb[24].mxu0 %vm736_vm2, %v17557_v47  ;;  %v8215_v47 = vld [vmem:[%s19306_s9] sm:$0xff] }
 0x43c   : > { %14521 = vmatprep.mubr.msk.f32.mxu0 %vm736_vm2, %v17562_v53  ;;  %14683 = vmatprep.subr.mxu1 %v8215_v47  ;;  %v18291_v53 = vld [vmem:[%s19306_s9 + $0x10] sm:$0xff] }
 0x43f   : > { %14522 = vmatmul.mubr.msk.f32.gmra.mrb[26].mxu0 %vm736_vm2, %v17567_v13 }
 0x440   : > { %14524 = vmatprep.mubr.msk.f32.mxu0 %vm736_vm2, %v17572_v18  ;;  %v18297_v18 = vld [vmem:[%s19304_s7] ss:$0 sm:$0xff] }
 0x443   : > { %14525 = vmatmul.mubr.msk.f32.gmra.mrb[28].mxu0 %vm736_vm2, %v17576_v23  ;;  %v19670_v23 = vld [vmem:[#allocation5_spill] sm:$0xff] }
 0x444   : > { %14527 = vmatprep.mubr.msk.f32.mxu0 %vm736_vm2, %v17932_v62 }
 0x447   : > { %14528 = vmatmul.mubr.msk.f32.gmra.mrb[30].mxu0 %vm736_vm2, %v17938_v4 }
 0x448   : > { %14530 = vmatprep.mubr.msk.f32.mxu0 %vm736_vm2, %v6764_v8  ;;  %v19674_v8 = vld [vmem:[#allocation9_spill] sm:$0xff] }
 0x44b   : > { %14531 = vmatmul.mubr.msk.f32.gmra.mrb[32].mxu0 %vm736_vm2, %v6765_v12 }
 0x44c   : > { %14535 = vmatprep.mubr.msk.f32.mxu0 %vm736_vm2, %v17603_v56  ;;  %v18303_v56 = vld [vmem:[%s19305_s8] ss:$0 sm:$0xff] }
 0x44f   : > { %14536 = vmatmul.mubr.msk.f32.vlgmr.msra.gmra.mrb[2].mxu0 %vm736_vm2, %v17611_v14 }
 0x450   : > { %14584 = vmatpush3.msk.msra.mxu0 %vm1005_vm3, %v12497_v24  ;;  %14538 = vmatprep.mubr.msk.f32.mxu0 %vm736_vm2, %v17615_v45  ;;  %v19673_v24 = vld [vmem:[#allocation7_spill] sm:$0xff] }
 0x453   : > { %14539 = vmatmul.mubr.msk.f32.gmra.mrb[4].mxu0 %vm736_vm2, %v17623_v20  ;;  %v19672_v20 = vld [vmem:[#allocation6_spill] sm:$0xff] }
 0x454   : > { %14541 = vmatprep.mubr.msk.f32.mxu0 %vm736_vm2, %v17627_v28 }
 0x457   : > { %14542 = vmatmul.mubr.msk.f32.gmra.mrb[6].mxu0 %vm736_vm2, %v17635_v52 }
 0x458   : > { %14544 = vmatprep.mubr.msk.f32.mxu0 %vm736_vm2, %v17639_v61 }
 0x45b   : > { %14545 = vmatmul.mubr.msk.f32.gmra.mrb[8].mxu0 %vm736_vm2, %v17647_v29  ;;  %v7544_v29 = vld [vmem:[#allocation3 + $0x229] sm:$0xff] }
 0x45c   : > { %14547 = vmatprep.mubr.msk.f32.mxu0 %vm736_vm2, %v17651_v48  ;;  %v19671_v48 = vld [vmem:[#allocation35_spill] sm:$0xff] }
 0x45f   : > { %14548 = vmatmul.mubr.msk.f32.gmra.mrb[10].mxu0 %vm736_vm2, %v17659_v1  ;;  %v19666_v1 = vld [vmem:[#allocation62_spill] sm:$0xff] }
 0x460   : > { %14550 = vmatprep.mubr.msk.f32.mxu0 %vm736_vm2, %v17663_v9 }
 0x463   : > { %14551 = vmatmul.mubr.msk.f32.gmra.mrb[12].mxu0 %vm736_vm2, %v17667_v39 }
 0x464   : > { %14553 = vmatprep.mubr.msk.f32.mxu0 %vm736_vm2, %v17671_v57  ;;  %v19665_v57 = vld [vmem:[#allocation60_spill] sm:$0xff] }
 0x467   : > { %14554 = vmatmul.mubr.msk.f32.gmra.mrb[14].mxu0 %vm736_vm2, %v17675_v11  ;;  %v19668_v11 = vld [vmem:[#allocation68_spill] sm:$0xff] }
 0x468   : > { %14556 = vmatprep.mubr.msk.f32.mxu0 %vm736_vm2, %v17679_v42 }
 0x46b   : > { %14557 = vmatmul.mubr.msk.f32.gmra.mrb[16].mxu0 %vm736_vm2, %v17683_v44  ;;  %v19663_v44 = vld [vmem:[#allocation58_spill] sm:$0xff] }
 0x46c   : > { %14559 = vmatprep.mubr.msk.f32.mxu0 %vm736_vm2, %v17687_v59  ;;  %v19662_v59 = vld [vmem:[#allocation57_spill] sm:$0xff] }
 0x46f   : > { %14560 = vmatmul.mubr.msk.f32.gmra.mrb[18].mxu0 %vm736_vm2, %v17691_v10  ;;  %v19660_v10 = vld [vmem:[#allocation55_spill] sm:$0xff] }
 0x470   : > { %14562 = vmatprep.mubr.msk.f32.mxu0 %vm736_vm2, %v17695_v7  ;;  %v19659_v7 = vld [vmem:[#allocation54_spill] sm:$0xff] }
 0x473   : > { %14563 = vmatmul.mubr.msk.f32.gmra.mrb[20].mxu0 %vm736_vm2, %v17700_v49  ;;  %v19657_v49 = vld [vmem:[#allocation52_spill] sm:$0xff] }
 0x474   : > { %14565 = vmatprep.mubr.msk.f32.mxu0 %vm736_vm2, %v17704_v15  ;;  %v19655_v15 = vld [vmem:[#allocation50_spill] sm:$0xff] }
 0x477   : > { %14566 = vmatmul.mubr.msk.f32.gmra.mrb[22].mxu0 %vm736_vm2, %v19642_v31 }
 0x478   : > { %14568 = vmatprep.mubr.msk.f32.mxu0 %vm736_vm2, %v19643_v43 }
 0x47b   : > { %14569 = vmatmul.mubr.msk.f32.gmra.mrb[24].mxu0 %vm736_vm2, %v19644_v26  ;;  %v19675_v26 = vld [vmem:[#allocation8_spill] sm:$0xff] }
 0x47c   : > { %14571 = vmatprep.mubr.msk.f32.mxu0 %vm736_vm2, %v19645_v50 }
 0x47f   : > { %14572 = vmatmul.mubr.msk.f32.gmra.mrb[26].mxu0 %vm736_vm2, %v19646_v33 }
 0x480   : > { %14574 = vmatprep.mubr.msk.f32.mxu0 %vm736_vm2, %v19647_v55 }
 0x483   : > { %14575 = vmatmul.mubr.msk.f32.gmra.mrb[28].mxu0 %vm736_vm2, %v19648_v0 }
 0x484   : > { %14577 = vmatprep.mubr.msk.f32.mxu0 %vm736_vm2, %v19649_v16 }
 0x487   : > { %14578 = vmatmul.mubr.msk.f32.gmra.mrb[30].mxu0 %vm736_vm2, %v19650_v21 }
 0x488   : > { %14580 = vmatprep.mubr.msk.f32.mxu0 %vm736_vm2, %v7154_v19 }
 0x48b   : > { %14581 = vmatmul.mubr.msk.f32.gmra.mrb[32].mxu0 %vm736_vm2, %v7155_v25 }
 0x48c   : > { %14585 = vmatprep.mubr.msk.f32.mxu0 %vm736_vm2, %v19651_v32  ;;  %v19676_v32 = vld [vmem:[#allocation10_spill] sm:$0xff] }
 0x48f   : > { %14586 = vmatmul.mubr.msk.f32.vlgmr.msra.gmra.mrb[2].mxu0 %vm736_vm2, %v19652_v34 }
 0x490   : > { %14588 = vmatprep.mubr.msk.f32.mxu0 %vm736_vm2, %v19653_v37 }
 0x493   : > { %14589 = vmatmul.mubr.msk.f32.gmra.mrb[4].mxu0 %vm736_vm2, %v19654_v63 }
 0x494   : > { %14591 = vmatprep.mubr.msk.f32.mxu0 %vm736_vm2, %v19655_v15 }
 0x497   : > { %14592 = vmatmul.mubr.msk.f32.gmra.mrb[6].mxu0 %vm736_vm2, %v19656_v46  ;;  %v19677_v46 = vld [vmem:[#allocation11_spill] sm:$0xff] }
 0x498   : > { %14594 = vmatprep.mubr.msk.f32.mxu0 %vm736_vm2, %v19657_v49 }
 0x49b   : > { %14595 = vmatmul.mubr.msk.f32.gmra.mrb[8].mxu0 %vm736_vm2, %v19658_v3 }
 0x49c   : > { %14597 = vmatprep.mubr.msk.f32.mxu0 %vm736_vm2, %v19659_v7 }
 0x49f   : > { %14598 = vmatmul.mubr.msk.f32.gmra.mrb[10].mxu0 %vm736_vm2, %v19660_v10 }
 0x4a0   : > { %14600 = vmatprep.mubr.msk.f32.mxu0 %vm736_vm2, %v19661_v60 }
 0x4a3   : > { %14601 = vmatmul.mubr.msk.f32.gmra.mrb[12].mxu0 %vm736_vm2, %v19662_v59 }
 0x4a4   : > { %14603 = vmatprep.mubr.msk.f32.mxu0 %vm736_vm2, %v19663_v44 }
 0x4a7   : > { %14604 = vmatmul.mubr.msk.f32.gmra.mrb[14].mxu0 %vm736_vm2, %v19664_v54 }
 0x4a8   : > { %14606 = vmatprep.mubr.msk.f32.mxu0 %vm736_vm2, %v19665_v57  ;;  %v19678_v57 = vld [vmem:[#allocation12_spill] sm:$0xff] }
 0x4ab   : > { %14607 = vmatmul.mubr.msk.f32.gmra.mrb[16].mxu0 %vm736_vm2, %v19633_v2 }
 0x4ac   : > { %14609 = vmatprep.mubr.msk.f32.mxu0 %vm736_vm2, %v19666_v1 }
 0x4af   : > { %14610 = vmatmul.mubr.msk.f32.gmra.mrb[18].mxu0 %vm736_vm2, %v19635_v30 }
 0x4b0   : > { %14612 = vmatprep.mubr.msk.f32.mxu0 %vm736_vm2, %v19636_v38  ;;  %v19669_v38 = vld [vmem:[#allocation70_spill] sm:$0xff] }
 0x4b3   : > { %14613 = vmatmul.mubr.msk.f32.gmra.mrb[20].mxu0 %vm736_vm2, %v19637_v36 }
 0x4b4   : > { %14615 = vmatprep.mubr.msk.f32.mxu0 %vm736_vm2, %v19667_v6 }
 0x4b7   : > { %14616 = vmatmul.mubr.msk.f32.gmra.mrb[22].mxu0 %vm736_vm2, %v19639_v41 }
 0x4b8   : > { %14618 = vmatprep.mubr.msk.f32.mxu0 %vm736_vm2, %v19668_v11 }
 0x4bb   : > { %14619 = vmatmul.mubr.msk.f32.gmra.mrb[24].mxu0 %vm736_vm2, %v17848_v5 }
 0x4bc   : > { %14621 = vmatprep.mubr.msk.f32.mxu0 %vm736_vm2, %v19641_v51  ;;  %v8216_v51 = vld [vmem:[#allocation4 + $0x8] sm:$0xff] }
 0x4bd   : > { %14635 = vmatprep.mubr.msk.f32.mxu1 %vm439_vm0, %v8216_v51 }
 0x4bf   : > { %14622 = vmatmul.mubr.msk.f32.gmra.mrb[26].mxu0 %vm736_vm2, %v17856_v27  ;;  %v8217_v27 = vld [vmem:[#allocation4 + $0x10] sm:$0xff] }
 0x4c0   : > { %14624 = vmatprep.mubr.msk.f32.mxu0 %vm736_vm2, %v19669_v38  ;;  %14636 = vmatmul.mubr.msk.f32.vlgmr.msra.gmra.mrb[34].mxu1 %vm439_vm0, %v8217_v27 }
 0x4c1   : > { %14684 = vmatpush3.msra.mxu1 %v8215_v47 }
 0x4c2   : > { %14733 = vmatprep.subr.mxu1 %v18291_v53 }
 0x4c3   : > { %14625 = vmatmul.mubr.msk.f32.gmra.mrb[28].mxu0 %vm736_vm2, %v17864_v35 }
 0x4c4   : > { %14627 = vmatprep.mubr.msk.f32.mxu0 %vm736_vm2, %v18080_v58 }
 0x4c7   : > { %14628 = vmatmul.mubr.msk.f32.gmra.mrb[30].mxu0 %vm736_vm2, %v18084_v22 }
 0x4c8   : > { %14630 = vmatprep.mubr.msk.f32.mxu0 %vm736_vm2, %v7544_v29  ;;  %v19679_v29 = vld [vmem:[#allocation13_spill] sm:$0xff] }
 0x4cb   : > { %14631 = vmatmul.mubr.msk.f32.gmra.mrb[32].mxu0 %vm736_vm2, %v7545_v40 }
 0x562   : > { %v14587_v13 = vpop.f32.mrb[2].mxu0 }
 0x563   : > { %v15101_v9 = vadd.f32 %v14587_v13, %v19670_v23  ;;  %v7713_v52 = vpop.f32.mrb[3].mxu0 }
 0x564   : > { %v15102_v42 = vadd.f32 %v7713_v52, %v19671_v48 }
 0x565   : > { %v7912_v14 = vmul.f32 %v15101_v9, %v18297_v18 }
 0x566   : > { %v7911_v45 = vmul.f32 %v15102_v42, %v18297_v18  ;;  %v14590_v39 = vpop.f32.mrb[4].mxu0 }
 0x567   : > { %v7951_v61 = vadd.f32 %v18303_v56, %v7912_v14  ;;  %v15103_v28 = vadd.f32 %v14590_v39, %v19672_v20  ;;  %v7723_v58 = vpop.f32.mrb[5].mxu0  ;;  %v19680_v14 = vld [vmem:[#allocation14_spill] sm:$0xff] }
 0x568   : > { %v7950_v5 = vadd.f32 %v18303_v56, %v7911_v45  ;;  %v15104_v35 = vadd.f32 %v7723_v58, %v19673_v24 }
 0x569   : > { %vm7983_vm5 = vcmp.gt.f32.partialorder %v7951_v61, 0.0  ;;  %v8015_v62 = vmul.f32 0.01, %v7951_v61  ;;  %v7914_v4 = vmul.f32 %v15103_v28, %v18297_v18  ;;  %v19681_v28 = vld [vmem:[#allocation15_spill] sm:$0xff] }
 0x56a   : > { %vm7982_vm6 = vcmp.gt.f32.partialorder %v7950_v5, 0.0  ;;  %v8014_v2 = vmul.f32 0.01, %v7950_v5  ;;  %v7913_v30 = vmul.f32 %v15104_v35, %v18297_v18  ;;  %v14593_v36 = vpop.f32.mrb[6].mxu0 }
 0x56b   : > { %v8047_v41 = vsel %vm7983_vm5, %v7951_v61, %v8015_v62  ;;  %v7953_v22 = vadd.f32 %v18303_v56, %v7914_v4  ;;  %v15105_v12 = vadd.f32 %v14593_v36, %v19674_v8  ;;  %v7733_v17 = vpop.f32.mrb[7].mxu0 }
 0x56c   : > { %8152 = vst.msk [vmem:[#allocation4 + $0x30] sm:$0xff] %vm439_vm0, %v8047_v41  ;;  %v8046_v31 = vsel %vm7982_vm6, %v7950_v5, %v8014_v2  ;;  %v7952_v43 = vadd.f32 %v18303_v56, %v7913_v30  ;;  %v15106_v50 = vadd.f32 %v7733_v17, %v19675_v26 }
 0x56d   : > { %8151 = vst.msk [vmem:[#allocation4 + $0x28] sm:$0xff] %vm439_vm0, %v8046_v31  ;;  %vm7985_vm7 = vcmp.gt.f32.partialorder %v7953_v22, 0.0  ;;  %v8017_v33 = vmul.f32 0.01, %v7953_v22  ;;  %v7916_v55 = vmul.f32 %v15105_v12, %v18297_v18 }
 0x56e   : > { %vm7984_vm8 = vcmp.gt.f32.partialorder %v7952_v43, 0.0  ;;  %v8016_v0 = vmul.f32 0.01, %v7952_v43  ;;  %v7915_v16 = vmul.f32 %v15106_v50, %v18297_v18  ;;  %v14596_v19 = vpop.f32.mrb[8].mxu0 }
 0x56f   : > { %v8049_v21 = vsel %vm7985_vm7, %v7953_v22, %v8017_v33  ;;  %v7955_v25 = vadd.f32 %v18303_v56, %v7916_v55  ;;  %v15107_v34 = vadd.f32 %v14596_v19, %v19676_v32  ;;  %v7743_v37 = vpop.f32.mrb[9].mxu0  ;;  %v19682_v22 = vld [vmem:[#allocation16_spill] sm:$0xff] }
 0x570   : > { %8154 = vst.msk [vmem:[#allocation4 + $0x50] sm:$0xff] %vm439_vm0, %v8049_v21  ;;  %v8048_v63 = vsel %vm7984_vm8, %v7952_v43, %v8016_v0  ;;  %v7954_v15 = vadd.f32 %v18303_v56, %v7915_v16  ;;  %v15108_v49 = vadd.f32 %v7743_v37, %v19677_v46  ;;  %v19683_v43 = vld [vmem:[#allocation17_spill] sm:$0xff] }
 0x571   : > { %8153 = vst.msk [vmem:[#allocation4 + $0x48] sm:$0xff] %vm439_vm0, %v8048_v63  ;;  %vm7987_vm9 = vcmp.gt.f32.partialorder %v7955_v25, 0.0  ;;  %v8019_v3 = vmul.f32 0.01, %v7955_v25  ;;  %v7918_v7 = vmul.f32 %v15107_v34, %v18297_v18  ;;  %v19684_v34 = vld [vmem:[#allocation18_spill] sm:$0xff] }
 0x572   : > { %vm7986_vm10 = vcmp.gt.f32.partialorder %v7954_v15, 0.0  ;;  %v8018_v10 = vmul.f32 0.01, %v7954_v15  ;;  %v7917_v60 = vmul.f32 %v15108_v49, %v18297_v18  ;;  %v14599_v59 = vpop.f32.mrb[10].mxu0  ;;  %v19685_v49 = vld [vmem:[#allocation19_spill] sm:$0xff] }
 0x573   : > { %v8051_v44 = vsel %vm7987_vm9, %v7955_v25, %v8019_v3  ;;  %v7957_v54 = vadd.f32 %v18303_v56, %v7918_v7  ;;  %v15109_v1 = vadd.f32 %v14599_v59, %v19678_v57  ;;  %v7753_v6 = vpop.f32.mrb[11].mxu0  ;;  %v18341_v13 = vld [vmem:[#allocation4 + $0x30] sm:$0xff] }
 0x574   : > { %8156 = vst.msk [vmem:[#allocation4 + $0x70] sm:$0xff] %vm439_vm0, %v8051_v44  ;;  %v8050_v11 = vsel %vm7986_vm10, %v7954_v15, %v8018_v10  ;;  %v7956_v38 = vadd.f32 %v18303_v56, %v7917_v60  ;;  %v15110_v40 = vadd.f32 %v7753_v6, %v19679_v29  ;;  %v18335_v51 = vld [vmem:[#allocation4 + $0x28] sm:$0xff] }
 0x575   : > { %8155 = vst.msk [vmem:[#allocation4 + $0x68] sm:$0xff] %vm439_vm0, %v8050_v11  ;;  %vm7989_vm11 = vcmp.gt.f32.partialorder %v7957_v54, 0.0  ;;  %v8021_v27 = vmul.f32 0.01, %v7957_v54  ;;  %v7920_v47 = vmul.f32 %v15109_v1, %v18297_v18  ;;  %14638 = vmatprep.mubr.msk.f32.mxu1 %vm439_vm0, %v18335_v51  ;;  %v19686_v11 = vld [vmem:[#allocation20_spill] sm:$0xff] }
 0x576   : > { %vm7988_vm12 = vcmp.gt.f32.partialorder %v7956_v38, 0.0  ;;  %v8020_v23 = vmul.f32 0.01, %v7956_v38  ;;  %v7919_v9 = vmul.f32 %v15110_v40, %v18297_v18  ;;  %v14602_v52 = vpop.f32.mrb[12].mxu0  ;;  %14639 = vmatmul.mubr.msk.f32.gmra.mrb[36].mxu1 %vm439_vm0, %v18341_v13 }
 0x577   : > { %v8053_v48 = vsel %vm7989_vm11, %v7957_v54, %v8021_v27  ;;  %v7959_v42 = vadd.f32 %v18303_v56, %v7920_v47  ;;  %v15111_v45 = vadd.f32 %v14602_v52, %v19680_v14  ;;  %v7763_v39 = vpop.f32.mrb[13].mxu0  ;;  %v18357_v62 = vld [vmem:[#allocation4 + $0x50] sm:$0xff]  ;;  %v19687_v47 = vld [vmem:[#allocation21_spill] sm:$0xff] }
 0x578   : > { %8158 = vst.msk [vmem:[#allocation4 + $0x90] sm:$0xff] %vm439_vm0, %v8053_v48  ;;  %v8052_v61 = vsel %vm7988_vm12, %v7956_v38, %v8020_v23  ;;  %v7958_v20 = vadd.f32 %v18303_v56, %v7919_v9  ;;  %v15112_v58 = vadd.f32 %v7763_v39, %v19681_v28  ;;  %v18351_v5 = vld [vmem:[#allocation4 + $0x48] sm:$0xff] }
 0x579   : > { %8157 = vst.msk [vmem:[#allocation4 + $0x88] sm:$0xff] %vm439_vm0, %v8052_v61  ;;  %vm7991_vm13 = vcmp.gt.f32.partialorder %v7959_v42, 0.0  ;;  %v8023_v24 = vmul.f32 0.01, %v7959_v42  ;;  %v7922_v35 = vmul.f32 %v15111_v45, %v18297_v18  ;;  %14641 = vmatprep.mubr.msk.f32.mxu1 %vm439_vm0, %v18351_v5  ;;  %v19688_v28 = vld [vmem:[#allocation22_spill] sm:$0xff] }
 0x57a   : > { %vm7990_vm14 = vcmp.gt.f32.partialorder %v7958_v20, 0.0  ;;  %v8022_v4 = vmul.f32 0.01, %v7958_v20  ;;  %v7921_v2 = vmul.f32 %v15112_v58, %v18297_v18  ;;  %v14605_v30 = vpop.f32.mrb[14].mxu0  ;;  %14642 = vmatmul.mubr.msk.f32.gmra.mrb[38].mxu1 %vm439_vm0, %v18357_v62 }
 0x57b   : > { %v8055_v36 = vsel %vm7991_vm13, %v7959_v42, %v8023_v24  ;;  %v7961_v41 = vadd.f32 %v18303_v56, %v7922_v35  ;;  %v15113_v8 = vadd.f32 %v14605_v30, %v19682_v22  ;;  %v7773_v12 = vpop.f32.mrb[15].mxu0  ;;  %v18373_v0 = vld [vmem:[#allocation4 + $0x70] sm:$0xff] }
 0x57c   : > { %8160 = vst.msk [vmem:[#allocation4 + $0xb0] sm:$0xff] %vm439_vm0, %v8055_v36  ;;  %v8054_v17 = vsel %vm7990_vm14, %v7958_v20, %v8022_v4  ;;  %v7960_v31 = vadd.f32 %v18303_v56, %v7921_v2  ;;  %v15114_v26 = vadd.f32 %v7773_v12, %v19683_v43  ;;  %v18367_v50 = vld [vmem:[#allocation4 + $0x68] sm:$0xff]  ;;  %v19689_v2 = vld [vmem:[#allocation36_spill] sm:$0xff] }
 0x57d   : > { %8159 = vst.msk [vmem:[#allocation4 + $0xa8] sm:$0xff] %vm439_vm0, %v8054_v17  ;;  %vm7993_vm15 = vcmp.gt.f32.partialorder %v7961_v41, 0.0  ;;  %v8025_v33 = vmul.f32 0.01, %v7961_v41  ;;  %v7924_v55 = vmul.f32 %v15113_v8, %v18297_v18  ;;  %14644 = vmatprep.mubr.msk.f32.mxu1 %vm439_vm0, %v18367_v50 }
 0x57e   : > { %vm7992_vm1 = vcmp.gt.f32.partialorder %v7960_v31, 0.0  ;;  %v8024_v16 = vmul.f32 0.01, %v7960_v31  ;;  %v7923_v19 = vmul.f32 %v15114_v26, %v18297_v18  ;;  %v14608_v21 = vpop.f32.mrb[16].mxu0  ;;  %14645 = vmatmul.mubr.msk.f32.gmra.mrb[40].mxu1 %vm439_vm0, %v18373_v0 }
 0x57f   : > { %v8057_v25 = vsel %vm7993_vm15, %v7961_v41, %v8025_v33  ;;  %v7963_v32 = vadd.f32 %v18303_v56, %v7924_v55  ;;  %v15115_v37 = vadd.f32 %v14608_v21, %v19684_v34  ;;  %v7783_v63 = vpop.f32.mrb[17].mxu0  ;;  %v18389_v59 = vld [vmem:[#allocation4 + $0x90] sm:$0xff]  ;;  %v19690_v33 = vld [vmem:[#allocation37_spill] sm:$0xff] }
 0x580   : > { %8162 = vst.msk [vmem:[#allocation4 + $0xd0] sm:$0xff] %vm439_vm0, %v8057_v25  ;;  %v8056_v15 = vsel %vm7992_vm1, %v7960_v31, %v8024_v16  ;;  %v7962_v46 = vadd.f32 %v18303_v56, %v7923_v19  ;;  %v15116_v3 = vadd.f32 %v7783_v63, %v19685_v49  ;;  %v18383_v7 = vld [vmem:[#allocation4 + $0x88] sm:$0xff]  ;;  %v19691_v25 = vld [vmem:[#allocation25_spill] sm:$0xff] }
 0x581   : > { %8161 = vst.msk [vmem:[#allocation4 + $0xc8] sm:$0xff] %vm439_vm0, %v8056_v15  ;;  %vm7995_vm2 = vcmp.gt.f32.partialorder %v7963_v32, 0.0  ;;  %v8027_v10 = vmul.f32 0.01, %v7963_v32  ;;  %v7926_v60 = vmul.f32 %v15115_v37, %v18297_v18  ;;  %14647 = vmatprep.mubr.msk.f32.mxu1 %vm439_vm0, %v18383_v7 }
 0x582   : > { %vm7994_vm3 = vcmp.gt.f32.partialorder %v7962_v46, 0.0  ;;  %v8026_v44 = vmul.f32 0.01, %v7962_v46  ;;  %v7925_v54 = vmul.f32 %v15116_v3, %v18297_v18  ;;  %v14611_v57 = vpop.f32.mrb[18].mxu0  ;;  %14648 = vmatmul.mubr.msk.f32.gmra.mrb[42].mxu1 %vm439_vm0, %v18389_v59 }
 0x583   : > { %v8059_v1 = vsel %vm7995_vm2, %v7963_v32, %v8027_v10  ;;  %v7965_v6 = vadd.f32 %v18303_v56, %v7926_v60  ;;  %v15117_v38 = vadd.f32 %v14611_v57, %v19686_v11  ;;  %v7793_v29 = vpop.f32.mrb[19].mxu0  ;;  %v18405_v42 = vld [vmem:[#allocation4 + $0xb0] sm:$0xff] }
 0x584   : > { %8164 = vst.msk [vmem:[#allocation4 + $0xf0] sm:$0xff] %vm439_vm0, %v8059_v1  ;;  %v8058_v40 = vsel %vm7994_vm3, %v7962_v46, %v8026_v44  ;;  %v7964_v27 = vadd.f32 %v18303_v56, %v7925_v54  ;;  %v15118_v23 = vadd.f32 %v7793_v29, %v19687_v47  ;;  %v18399_v9 = vld [vmem:[#allocation4 + $0xa8] sm:$0xff]  ;;  %v19693_v11 = vld [vmem:[#allocation27_spill] sm:$0xff] }
 0x585   : > { %8163 = vst.msk [vmem:[#allocation4 + $0xe8] sm:$0xff] %vm439_vm0, %v8058_v40  ;;  %vm7997_vm4 = vcmp.gt.f32.partialorder %v7965_v6, 0.0  ;;  %v8029_v52 = vmul.f32 0.01, %v7965_v6  ;;  %v7928_v48 = vmul.f32 %v15117_v38, %v18297_v18  ;;  %14650 = vmatprep.mubr.msk.f32.mxu1 %vm439_vm0, %v18399_v9  ;;  %v19692_v44 = vld [vmem:[#allocation26_spill] sm:$0xff] }
 0x586   : > { %vm7996_vm5 = vcmp.gt.f32.partialorder %v7964_v27, 0.0  ;;  %v8028_v14 = vmul.f32 0.01, %v7964_v27  ;;  %v7927_v45 = vmul.f32 %v15118_v23, %v18297_v18  ;;  %v14614_v39 = vpop.f32.mrb[20].mxu0  ;;  %14651 = vmatmul.mubr.msk.f32.gmra.mrb[44].mxu1 %vm439_vm0, %v18405_v42 }
 0x587   : > { %v8061_v61 = vsel %vm7997_vm4, %v7965_v6, %v8029_v52  ;;  %v7967_v20 = vadd.f32 %v18303_v56, %v7928_v48  ;;  %v15119_v58 = vadd.f32 %v14614_v39, %v19688_v28  ;;  %v7803_v24 = vpop.f32.mrb[21].mxu0  ;;  %v18421_v8 = vld [vmem:[#allocation4 + $0xd0] sm:$0xff]  ;;  %v19694_v39 = vld [vmem:[#allocation28_spill] sm:$0xff] }
 0x588   : > { %8166 = vst.msk [vmem:[#allocation4 + $0x110] sm:$0xff] %vm439_vm0, %v8061_v61  ;;  %v8060_v35 = vsel %vm7996_vm5, %v7964_v27, %v8028_v14  ;;  %v7966_v4 = vadd.f32 %v18303_v56, %v7927_v45  ;;  %v15120_v30 = vadd.f32 %v7803_v24, %v19689_v2  ;;  %v18415_v36 = vld [vmem:[#allocation4 + $0xc8] sm:$0xff]  ;;  %v19695_v24 = vld [vmem:[#allocation29_spill] sm:$0xff] }
 0x589   : > { %8165 = vst.msk [vmem:[#allocation4 + $0x108] sm:$0xff] %vm439_vm0, %v8060_v35  ;;  %vm7999_vm6 = vcmp.gt.f32.partialorder %v7967_v20, 0.0  ;;  %v8031_v41 = vmul.f32 0.01, %v7967_v20  ;;  %v7930_v22 = vmul.f32 %v15119_v58, %v18297_v18  ;;  %14653 = vmatprep.mubr.msk.f32.mxu1 %vm439_vm0, %v18415_v36 }
 0x58a   : > { %vm7998_vm7 = vcmp.gt.f32.partialorder %v7966_v4, 0.0  ;;  %v8030_v12 = vmul.f32 0.01, %v7966_v4  ;;  %v7929_v17 = vmul.f32 %v15120_v30, %v18297_v18  ;;  %v14617_v31 = vpop.f32.mrb[22].mxu0  ;;  %14654 = vmatmul.mubr.msk.f32.gmra.mrb[46].mxu1 %vm439_vm0, %v18421_v8 }
 0x58b   : > { %v8063_v43 = vsel %vm7999_vm6, %v7967_v20, %v8031_v41  ;;  %v7969_v26 = vadd.f32 %v18303_v56, %v7930_v22  ;;  %v15121_v55 = vadd.f32 %v14617_v31, %v19690_v33  ;;  %v7813_v16 = vpop.f32.mrb[23].mxu0  ;;  %v18437_v15 = vld [vmem:[#allocation4 + $0xf0] sm:$0xff] }
 0x58c   : > { %8168 = vst.msk [vmem:[#allocation4 + $0x130] sm:$0xff] %vm439_vm0, %v8063_v43  ;;  %v8062_v19 = vsel %vm7998_vm7, %v7966_v4, %v8030_v12  ;;  %v7968_v21 = vadd.f32 %v18303_v56, %v7929_v17  ;;  %v15122_v32 = vadd.f32 %v7813_v16, %v19691_v25  ;;  %v18431_v34 = vld [vmem:[#allocation4 + $0xe8] sm:$0xff] }
 0x58d   : > { %8167 = vst.msk [vmem:[#allocation4 + $0x128] sm:$0xff] %vm439_vm0, %v8062_v19  ;;  %vm8001_vm8 = vcmp.gt.f32.partialorder %v7969_v26, 0.0  ;;  %v8033_v37 = vmul.f32 0.01, %v7969_v26  ;;  %v7932_v63 = vmul.f32 %v15121_v55, %v18297_v18  ;;  %14656 = vmatprep.mubr.msk.f32.mxu1 %vm439_vm0, %v18431_v34 }
 0x58e   : > { %vm8000_vm9 = vcmp.gt.f32.partialorder %v7968_v21, 0.0  ;;  %v8032_v46 = vmul.f32 0.01, %v7968_v21  ;;  %v7931_v49 = vmul.f32 %v15122_v32, %v18297_v18  ;;  %v14620_v3 = vpop.f32.mrb[24].mxu0  ;;  %14657 = vmatmul.mubr.msk.f32.gmra.mrb[48].mxu1 %vm439_vm0, %v18437_v15 }
 0x58f   : > { %v8065_v10 = vsel %vm8001_vm8, %v7969_v26, %v8033_v37  ;;  %v7971_v60 = vadd.f32 %v18303_v56, %v7932_v63  ;;  %v15123_v54 = vadd.f32 %v14620_v3, %v19692_v44  ;;  %v7823_v57 = vpop.f32.mrb[25].mxu0  ;;  %v18453_v47 = vld [vmem:[#allocation4 + $0x110] sm:$0xff]  ;;  %v19696_v26 = vld [vmem:[#allocation30_spill] sm:$0xff] }
 0x590   : > { %8170 = vst.msk [vmem:[#allocation4 + $0x150] sm:$0xff] %vm439_vm0, %v8065_v10  ;;  %v8064_v1 = vsel %vm8000_vm9, %v7968_v21, %v8032_v46  ;;  %v7970_v6 = vadd.f32 %v18303_v56, %v7931_v49  ;;  %v15124_v38 = vadd.f32 %v7823_v57, %v19693_v11  ;;  %v18447_v29 = vld [vmem:[#allocation4 + $0x108] sm:$0xff]  ;;  %v19697_v21 = vld [vmem:[#allocation31_spill] sm:$0xff] }
 0x591   : > { %8169 = vst.msk [vmem:[#allocation4 + $0x148] sm:$0xff] %vm439_vm0, %v8064_v1  ;;  %vm8003_vm10 = vcmp.gt.f32.partialorder %v7971_v60, 0.0  ;;  %v8035_v40 = vmul.f32 0.01, %v7971_v60  ;;  %v7934_v27 = vmul.f32 %v15123_v54, %v18297_v18  ;;  %14659 = vmatprep.mubr.msk.f32.mxu1 %vm439_vm0, %v18447_v29  ;;  %v19698_v54 = vld [vmem:[#allocation32_spill] sm:$0xff] }
 0x592   : > { %vm8002_vm11 = vcmp.gt.f32.partialorder %v7970_v6, 0.0  ;;  %v8034_v23 = vmul.f32 0.01, %v7970_v6  ;;  %v7933_v52 = vmul.f32 %v15124_v38, %v18297_v18  ;;  %v14623_v48 = vpop.f32.mrb[26].mxu0  ;;  %14660 = vmatmul.mubr.msk.f32.gmra.mrb[50].mxu1 %vm439_vm0, %v18453_v47  ;;  %v19699_v38 = vld [vmem:[#allocation33_spill] sm:$0xff] }
 0x593   : > { %v8067_v14 = vsel %vm8003_vm10, %v7971_v60, %v8035_v40  ;;  %v7973_v45 = vadd.f32 %v18303_v56, %v7934_v27  ;;  %v15125_v61 = vadd.f32 %v14623_v48, %v19694_v39  ;;  %v7833_v20 = vpop.f32.mrb[27].mxu0  ;;  %v18469_v41 = vld [vmem:[#allocation4 + $0x130] sm:$0xff] }
 0x594   : > { %8172 = vst.msk [vmem:[#allocation4 + $0x170] sm:$0xff] %vm439_vm0, %v8067_v14  ;;  %v8066_v28 = vsel %vm8002_vm11, %v7970_v6, %v8034_v23  ;;  %v7972_v58 = vadd.f32 %v18303_v56, %v7933_v52  ;;  %v15126_v35 = vadd.f32 %v7833_v20, %v19695_v24  ;;  %v18463_v4 = vld [vmem:[#allocation4 + $0x128] sm:$0xff] }
 0x595   : > { %8171 = vst.msk [vmem:[#allocation4 + $0x168] sm:$0xff] %vm439_vm0, %v8066_v28  ;;  %vm8005_vm12 = vcmp.gt.f32.partialorder %v7973_v45, 0.0  ;;  %v8037_v2 = vmul.f32 0.01, %v7973_v45  ;;  %v7936_v30 = vmul.f32 %v15125_v61, %v18297_v18  ;;  %14662 = vmatprep.mubr.msk.f32.mxu1 %vm439_vm0, %v18463_v4  ;;  %v19700_v28 = vld [vmem:[#allocation34_spill] sm:$0xff] }
 0x596   : > { %vm8004_vm13 = vcmp.gt.f32.partialorder %v7972_v58, 0.0  ;;  %v8036_v22 = vmul.f32 0.01, %v7972_v58  ;;  %v7935_v12 = vmul.f32 %v15126_v35, %v18297_v18  ;;  %v14626_v17 = vpop.f32.mrb[28].mxu0  ;;  %14663 = vmatmul.mubr.msk.f32.gmra.mrb[52].mxu1 %vm439_vm0, %v18469_v41 }
 0x597   : > { %v8069_v31 = vsel %vm8005_vm12, %v7973_v45, %v8037_v2  ;;  %v7975_v43 = vadd.f32 %v18303_v56, %v7936_v30  ;;  %v15127_v33 = vadd.f32 %v14626_v17, %v19696_v26  ;;  %v7843_v55 = vpop.f32.mrb[29].mxu0  ;;  %v18485_v46 = vld [vmem:[#allocation4 + $0x150] sm:$0xff] }
 0x598   : > { %8174 = vst.msk [vmem:[#allocation4 + $0x190] sm:$0xff] %vm439_vm0, %v8069_v31  ;;  %v8068_v16 = vsel %vm8004_vm13, %v7972_v58, %v8036_v22  ;;  %v7974_v19 = vadd.f32 %v18303_v56, %v7935_v12  ;;  %v15128_v25 = vadd.f32 %v7843_v55, %v19697_v21  ;;  %v18479_v32 = vld [vmem:[#allocation4 + $0x148] sm:$0xff]  ;;  %v19701_v30 = vld [vmem:[#allocation23_spill] sm:$0xff] }
 0x599   : > { %8173 = vst.msk [vmem:[#allocation4 + $0x188] sm:$0xff] %vm439_vm0, %v8068_v16  ;;  %vm8007_vm14 = vcmp.gt.f32.partialorder %v7975_v43, 0.0  ;;  %v8039_v37 = vmul.f32 0.01, %v7975_v43  ;;  %v7938_v63 = vmul.f32 %v15127_v33, %v18297_v18  ;;  %14665 = vmatprep.mubr.msk.f32.mxu1 %vm439_vm0, %v18479_v32 }
 0x59a   : > { %vm8006_vm15 = vcmp.gt.f32.partialorder %v7974_v19, 0.0  ;;  %v8038_v49 = vmul.f32 0.01, %v7974_v19  ;;  %v7937_v3 = vmul.f32 %v15128_v25, %v18297_v18  ;;  %v14629_v10 = vpop.f32.mrb[30].mxu0  ;;  %14666 = vmatmul.mubr.msk.f32.gmra.mrb[54].mxu1 %vm439_vm0, %v18485_v46 }
 0x59b   : > { %v8071_v60 = vsel %vm8007_vm14, %v7975_v43, %v8039_v37  ;;  %v7977_v44 = vadd.f32 %v18303_v56, %v7938_v63  ;;  %v15129_v57 = vadd.f32 %v14629_v10, %v19698_v54  ;;  %v7853_v1 = vpop.f32.mrb[31].mxu0  ;;  %v18501_v48 = vld [vmem:[#allocation4 + $0x170] sm:$0xff] }
 0x59c   : > { %8176 = vst.msk [vmem:[#allocation4 + $0x1b0] sm:$0xff] %vm439_vm0, %v8071_v60  ;;  %v8070_v6 = vsel %vm8006_vm15, %v7974_v19, %v8038_v49  ;;  %v7976_v11 = vadd.f32 %v18303_v56, %v7937_v3  ;;  %v15130_v40 = vadd.f32 %v7853_v1, %v19699_v38  ;;  %v18495_v27 = vld [vmem:[#allocation4 + $0x168] sm:$0xff]  ;;  %v18556_v1 = vld [vmem:[%s19306_s9 + $0x18] sm:$0xff] }
 0x59d   : > { %8175 = vst.msk [vmem:[#allocation4 + $0x1a8] sm:$0xff] %vm439_vm0, %v8070_v6  ;;  %vm8009_vm1 = vcmp.gt.f32.partialorder %v7977_v44, 0.0  ;;  %v8041_v23 = vmul.f32 0.01, %v7977_v44  ;;  %v7940_v52 = vmul.f32 %v15129_v57, %v18297_v18  ;;  %14668 = vmatprep.mubr.msk.f32.mxu1 %vm439_vm0, %v18495_v27  ;;  %v8184_v57 = vld [vmem:[#allocation4 + $0xf] sm:$0xff]  ;;  %v18559_v6 = vld [vmem:[#allocation4 + $0x27] sm:$0xff] }
 0x59e   : > { %vm8008_vm2 = vcmp.gt.f32.partialorder %v7976_v11, 0.0  ;;  %v8040_v14 = vmul.f32 0.01, %v7976_v11  ;;  %v7939_v45 = vmul.f32 %v15130_v40, %v18297_v18  ;;  %v14632_v39 = vpop.f32.mrb[32].mxu0  ;;  %14669 = vmatmul.mubr.msk.f32.gmra.mrb[56].mxu1 %vm439_vm0, %v18501_v48  ;;  %v18569_v38 = vld [vmem:[#allocation4 + $0x47] sm:$0xff]  ;;  %v18573_v40 = vld [vmem:[#allocation4 + $0x4f] sm:$0xff] }
 0x59f   : > { %v8073_v61 = vsel %vm8009_vm1, %v7977_v44, %v8041_v23  ;;  %v7979_v20 = vadd.f32 %v18303_v56, %v7940_v52  ;;  %v15131_v58 = vadd.f32 %v14632_v39, %v19700_v28  ;;  %v7863_v24 = vpop.f32.mrb[33].mxu0  ;;  %v18517_v43 = vld [vmem:[#allocation4 + $0x190] sm:$0xff]  ;;  %v8183_v44 = vld [vmem:[#allocation4 + $0x7] sm:$0xff] }
 0x5a0   : > { %8178 = vst.msk [vmem:[#allocation4 + $0x1d0] sm:$0xff] %vm439_vm0, %v8073_v61  ;;  %v8072_v35 = vsel %vm8008_vm2, %v7976_v11, %v8040_v14  ;;  %v7978_v2 = vadd.f32 %v18303_v56, %v7939_v45  ;;  %v15132_v22 = vadd.f32 %v7863_v24, %v19701_v30  ;;  %v18511_v12 = vld [vmem:[#allocation4 + $0x188] sm:$0xff] }
 0x5a1   : > { %8177 = vst.msk [vmem:[#allocation4 + $0x1c8] sm:$0xff] %vm439_vm0, %v8072_v35  ;;  %vm8011_vm3 = vcmp.gt.f32.partialorder %v7979_v20, 0.0  ;;  %v8043_v17 = vmul.f32 0.01, %v7979_v20  ;;  %v7942_v31 = vmul.f32 %v15131_v58, %v18297_v18  ;;  %14671 = vmatprep.mubr.msk.f32.mxu1 %vm439_vm0, %v18511_v12  ;;  %v18565_v11 = vld [vmem:[#allocation4 + $0x2f] sm:$0xff]  ;;  %v18585_v52 = vld [vmem:[#allocation4 + $0x87] sm:$0xff] }
 0x5a2   : > { %vm8010_vm4 = vcmp.gt.f32.partialorder %v7978_v2, 0.0  ;;  %v8042_v26 = vmul.f32 0.01, %v7978_v2  ;;  %v7941_v33 = vmul.f32 %v15132_v22, %v18297_v18  ;;  %14672 = vmatmul.mubr.msk.f32.gmra.mrb[58].mxu1 %vm439_vm0, %v18517_v43  ;;  %v18581_v23 = vld [vmem:[#allocation4 + $0x6f] sm:$0xff]  ;;  %v18593_v45 = vld [vmem:[#allocation4 + $0xa7] sm:$0xff] }
 0x5a3   : > { %v8075_v55 = vsel %vm8011_vm3, %v7979_v20, %v8043_v17  ;;  %v7981_v16 = vadd.f32 %v18303_v56, %v7942_v31  ;;  %v18530_v18 = vld [vmem:[#allocation4 + $0x1b0] sm:$0xff]  ;;  %v18601_v61 = vld [vmem:[#allocation4 + $0xc7] sm:$0xff] }
 0x5a4   : > { %8180 = vst.msk [vmem:[#allocation4 + $0x1f0] sm:$0xff] %vm439_vm0, %v8075_v55  ;;  %v8074_v19 = vsel %vm8010_vm4, %v7978_v2, %v8042_v26  ;;  %v7980_v21 = vadd.f32 %v18303_v56, %v7941_v33  ;;  %v18525_v25 = vld [vmem:[#allocation4 + $0x1a8] sm:$0xff] }
 0x5a5   : > { %8179 = vst.msk [vmem:[#allocation4 + $0x1e8] sm:$0xff] %vm439_vm0, %v8074_v19  ;;  %vm8013_vm5 = vcmp.gt.f32.partialorder %v7981_v16, 0.0  ;;  %v8045_v37 = vmul.f32 0.01, %v7981_v16  ;;  %14674 = vmatprep.mubr.msk.f32.mxu1 %vm439_vm0, %v18525_v25  ;;  %v18589_v14 = vld [vmem:[#allocation4 + $0x8f] sm:$0xff]  ;;  %v18609_v28 = vld [vmem:[#allocation4 + $0xe7] sm:$0xff] }
 0x5a6   : > { %vm8012_vm6 = vcmp.gt.f32.partialorder %v7980_v21, 0.0  ;;  %v8044_v63 = vmul.f32 0.01, %v7980_v21  ;;  %14675 = vmatmul.mubr.msk.f32.gmra.mrb[60].mxu1 %vm439_vm0, %v18530_v18  ;;  %v18597_v39 = vld [vmem:[#allocation4 + $0xaf] sm:$0xff]  ;;  %v18617_v24 = vld [vmem:[#allocation4 + $0x107] sm:$0xff] }
 0x5a7   : > { %v8077_v49 = vsel %vm8013_vm5, %v7981_v16, %v8045_v37  ;;  %v18540_v10 = vld [vmem:[#allocation4 + $0x1d0] sm:$0xff]  ;;  %v18625_v2 = vld [vmem:[#allocation4 + $0x127] sm:$0xff] }
 0x5a8   : > { %8182 = vst.msk [vmem:[#allocation4 + $0x210] sm:$0xff] %vm439_vm0, %v8077_v49  ;;  %v8076_v56 = vsel %vm8012_vm6, %v7980_v21, %v8044_v63  ;;  %v18535_v3 = vld [vmem:[#allocation4 + $0x1c8] sm:$0xff] }
 0x5a9   : > { %8181 = vst.msk [vmem:[#allocation4 + $0x208] sm:$0xff] %vm439_vm0, %v8076_v56  ;;  %14677 = vmatprep.mubr.msk.f32.mxu1 %vm439_vm0, %v18535_v3  ;;  %v18605_v20 = vld [vmem:[#allocation4 + $0xcf] sm:$0xff]  ;;  %v18633_v22 = vld [vmem:[#allocation4 + $0x147] sm:$0xff] }
 0x5aa   : > { %14678 = vmatmul.mubr.msk.f32.gmra.mrb[62].mxu1 %vm439_vm0, %v18540_v10  ;;  %v18613_v58 = vld [vmem:[#allocation4 + $0xef] sm:$0xff]  ;;  %v18641_v31 = vld [vmem:[#allocation4 + $0x167] sm:$0xff] }
 0x5ab   : > { %v18548_v54 = vld [vmem:[#allocation4 + $0x1f0] sm:$0xff]  ;;  %v18649_v33 = vld [vmem:[#allocation4 + $0x187] sm:$0xff] }
 0x5ac   : > { %v18544_v60 = vld [vmem:[#allocation4 + $0x1e8] sm:$0xff]  ;;  %19703 = vst [vmem:[#allocation45_spill] sm:$0xff] %v18548_v54 }
 0x5ad   : > { %19702 = vst [vmem:[#allocation44_spill] sm:$0xff] %v18544_v60  ;;  %14680 = vmatprep.mubr.msk.f32.mxu1 %vm439_vm0, %v18544_v60  ;;  %v18621_v35 = vld [vmem:[#allocation4 + $0x10f] sm:$0xff]  ;;  %v18657_v16 = vld [vmem:[#allocation4 + $0x1a7] sm:$0xff] }
 0x5ae   : > { %14681 = vmatmul.mubr.msk.f32.gmra.mrb[64].mxu1 %vm439_vm0, %v18548_v54  ;;  %v18629_v30 = vld [vmem:[#allocation4 + $0x12f] sm:$0xff]  ;;  %v18665_v21 = vld [vmem:[#allocation4 + $0x1c7] sm:$0xff] }
 0x5af   : > { %14685 = vmatprep.mubr.msk.f32.mxu1 %vm439_vm0, %v8183_v44  ;;  %v18637_v17 = vld [vmem:[#allocation4 + $0x14f] sm:$0xff]  ;;  %v18673_v63 = vld [vmem:[#allocation4 + $0x1e7] sm:$0xff] }
 0x5b0   : > { %v18645_v26 = vld [vmem:[#allocation4 + $0x16f] sm:$0xff] }
 0x5b1   : > { %v18653_v55 = vld [vmem:[#allocation4 + $0x18f] sm:$0xff] }
 0x5b2   : > { %14686 = vmatmul.mubr.msk.f32.vlgmr.msra.gmra.mrb[34].mxu1 %vm439_vm0, %v8184_v57  ;;  %v18661_v19 = vld [vmem:[#allocation4 + $0x1af] sm:$0xff]  ;;  %v18685_v57 = vld [vmem:[%s19306_s9 + $0x20] sm:$0xff] }
 0x5b3   : > { %14734 = vmatpush3.msra.mxu1 %v18291_v53  ;;  %14688 = vmatprep.mubr.msk.f32.mxu1 %vm439_vm0, %v18559_v6  ;;  %v18577_v53 = vld [vmem:[#allocation4 + $0x67] sm:$0xff]  ;;  %v18669_v37 = vld [vmem:[#allocation4 + $0x1cf] sm:$0xff] }
 0x5b4   : > { %14783 = vmatprep.subr.mxu1 %v18556_v1  ;;  %v8892_v49 = vld [vmem:[#allocation4 + $0x9] sm:$0xff]  ;;  %v8893_v44 = vld [vmem:[#allocation4 + $0x11] sm:$0xff] }
 0x5b5   : > { %v18677_v56 = vld [vmem:[#allocation4 + $0x1ef] sm:$0xff] }
 0x5b6   : > { %14689 = vmatmul.mubr.msk.f32.gmra.mrb[36].mxu1 %vm439_vm0, %v18565_v11  ;;  %v18688_v54 = vld [vmem:[#allocation4 + $0x29] sm:$0xff]  ;;  %v18694_v60 = vld [vmem:[#allocation4 + $0x31] sm:$0xff] }
 0x5b7   : > { %14691 = vmatprep.mubr.msk.f32.mxu1 %vm439_vm0, %v18569_v38  ;;  %19704 = vst [vmem:[#allocation61_spill] sm:$0xff] %v18688_v54  ;;  %19705 = vst [vmem:[#allocation63_spill] sm:$0xff] %v18694_v60 }
 0x5ba   : > { %14692 = vmatmul.mubr.msk.f32.gmra.mrb[38].mxu1 %vm439_vm0, %v18573_v40 }
 0x5bb   : > { %14694 = vmatprep.mubr.msk.f32.mxu1 %vm439_vm0, %v18577_v53 }
 0x5be   : > { %14695 = vmatmul.mubr.msk.f32.gmra.mrb[40].mxu1 %vm439_vm0, %v18581_v23 }
 0x5bf   : > { %14697 = vmatprep.mubr.msk.f32.mxu1 %vm439_vm0, %v18585_v52 }
 0x5c2   : > { %14698 = vmatmul.mubr.msk.f32.gmra.mrb[42].mxu1 %vm439_vm0, %v18589_v14 }
 0x5c3   : > { %14700 = vmatprep.mubr.msk.f32.mxu1 %vm439_vm0, %v18593_v45 }
 0x5c6   : > { %14701 = vmatmul.mubr.msk.f32.gmra.mrb[44].mxu1 %vm439_vm0, %v18597_v39 }
 0x5c7   : > { %14703 = vmatprep.mubr.msk.f32.mxu1 %vm439_vm0, %v18601_v61 }
 0x5ca   : > { %14704 = vmatmul.mubr.msk.f32.gmra.mrb[46].mxu1 %vm439_vm0, %v18605_v20 }
 0x5cb   : > { %14706 = vmatprep.mubr.msk.f32.mxu1 %vm439_vm0, %v18609_v28 }
 0x5ce   : > { %14707 = vmatmul.mubr.msk.f32.gmra.mrb[48].mxu1 %vm439_vm0, %v18613_v58 }
 0x5cf   : > { %14709 = vmatprep.mubr.msk.f32.mxu1 %vm439_vm0, %v18617_v24 }
 0x5d2   : > { %14710 = vmatmul.mubr.msk.f32.gmra.mrb[50].mxu1 %vm439_vm0, %v18621_v35 }
 0x5d3   : > { %14712 = vmatprep.mubr.msk.f32.mxu1 %vm439_vm0, %v18625_v2 }
 0x5d6   : > { %14713 = vmatmul.mubr.msk.f32.gmra.mrb[52].mxu1 %vm439_vm0, %v18629_v30 }
 0x5d7   : > { %14715 = vmatprep.mubr.msk.f32.mxu1 %vm439_vm0, %v18633_v22 }
 0x5da   : > { %14716 = vmatmul.mubr.msk.f32.gmra.mrb[54].mxu1 %vm439_vm0, %v18637_v17 }
 0x5db   : > { %14718 = vmatprep.mubr.msk.f32.mxu1 %vm439_vm0, %v18641_v31 }
 0x5de   : > { %14719 = vmatmul.mubr.msk.f32.gmra.mrb[56].mxu1 %vm439_vm0, %v18645_v26 }
 0x5df   : > { %14721 = vmatprep.mubr.msk.f32.mxu1 %vm439_vm0, %v18649_v33 }
 0x5e2   : > { %14722 = vmatmul.mubr.msk.f32.gmra.mrb[58].mxu1 %vm439_vm0, %v18653_v55 }
 0x5e3   : > { %14724 = vmatprep.mubr.msk.f32.mxu1 %vm439_vm0, %v18657_v16 }
 0x5e6   : > { %14725 = vmatmul.mubr.msk.f32.gmra.mrb[60].mxu1 %vm439_vm0, %v18661_v19 }
 0x5e7   : > { %14727 = vmatprep.mubr.msk.f32.mxu1 %vm439_vm0, %v18665_v21 }
 0x5ea   : > { %14728 = vmatmul.mubr.msk.f32.gmra.mrb[62].mxu1 %vm439_vm0, %v18669_v37 }
 0x5eb   : > { %14730 = vmatprep.mubr.msk.f32.mxu1 %vm439_vm0, %v18673_v63 }
 0x5ee   : > { %14731 = vmatmul.mubr.msk.f32.gmra.mrb[64].mxu1 %vm439_vm0, %v18677_v56 }
 0x5ef   : > { %14735 = vmatprep.mubr.msk.f32.mxu1 %vm439_vm0, %v8892_v49  ;;  %v18698_v49 = vld [vmem:[#allocation4 + $0x49] sm:$0xff] }
 0x5f0   : > { %19706 = vst [vmem:[#allocation64_spill] sm:$0xff] %v18698_v49 }
 0x5f2   : > { %14736 = vmatmul.mubr.msk.f32.vlgmr.msra.gmra.mrb[34].mxu1 %vm439_vm0, %v8893_v44  ;;  %v18702_v44 = vld [vmem:[#allocation4 + $0x51] sm:$0xff] }
 0x5f3   : > { %14784 = vmatpush3.msra.mxu1 %v18556_v1  ;;  %14738 = vmatprep.mubr.msk.f32.mxu1 %vm439_vm0, %v18688_v54  ;;  %19707 = vst [vmem:[#allocation65_spill] sm:$0xff] %v18702_v44  ;;  %v18706_v1 = vld [vmem:[#allocation4 + $0x69] sm:$0xff]  ;;  %v18710_v54 = vld [vmem:[#allocation4 + $0x71] sm:$0xff] }
 0x5f4   : > { %14833 = vmatprep.subr.mxu1 %v18685_v57  ;;  %19708 = vst [vmem:[#allocation67_spill] sm:$0xff] %v18706_v1  ;;  %19709 = vst [vmem:[#allocation69_spill] sm:$0xff] %v18710_v54 }
 0x5f6   : > { %14739 = vmatmul.mubr.msk.f32.gmra.mrb[36].mxu1 %vm439_vm0, %v18694_v60  ;;  %v18714_v60 = vld [vmem:[#allocation4 + $0x89] sm:$0xff] }
 0x5f7   : > { %14741 = vmatprep.mubr.msk.f32.mxu1 %vm439_vm0, %v18698_v49  ;;  %19710 = vst [vmem:[#allocation24_spill] sm:$0xff] %v18714_v60  ;;  %v18718_v49 = vld [vmem:[#allocation4 + $0x91] sm:$0xff] }
 0x5f8   : > { %19711 = vst [vmem:[#allocation38_spill] sm:$0xff] %v18718_v49 }
 0x5fa   : > { %14742 = vmatmul.mubr.msk.f32.gmra.mrb[38].mxu1 %vm439_vm0, %v18702_v44  ;;  %v18722_v44 = vld [vmem:[#allocation4 + $0xa9] sm:$0xff] }
 0x5fb   : > { %14744 = vmatprep.mubr.msk.f32.mxu1 %vm439_vm0, %v18706_v1  ;;  %19712 = vst [vmem:[#allocation39_spill] sm:$0xff] %v18722_v44  ;;  %v18726_v1 = vld [vmem:[#allocation4 + $0xb1] sm:$0xff] }
 0x5fc   : > { %19713 = vst [vmem:[#allocation40_spill] sm:$0xff] %v18726_v1 }
 0x5fe   : > { %14745 = vmatmul.mubr.msk.f32.gmra.mrb[40].mxu1 %vm439_vm0, %v18710_v54  ;;  %v18730_v54 = vld [vmem:[#allocation4 + $0xc9] sm:$0xff] }
 0x5ff   : > { %14747 = vmatprep.mubr.msk.f32.mxu1 %vm439_vm0, %v18714_v60  ;;  %19714 = vst [vmem:[#allocation41_spill] sm:$0xff] %v18730_v54  ;;  %v18734_v60 = vld [vmem:[#allocation4 + $0xd1] sm:$0xff] }
 0x600   : > { %19715 = vst [vmem:[#allocation42_spill] sm:$0xff] %v18734_v60 }
 0x602   : > { %14748 = vmatmul.mubr.msk.f32.gmra.mrb[42].mxu1 %vm439_vm0, %v18718_v49  ;;  %v18738_v49 = vld [vmem:[#allocation4 + $0xe9] sm:$0xff] }
 0x603   : > { %14750 = vmatprep.mubr.msk.f32.mxu1 %vm439_vm0, %v18722_v44  ;;  %19716 = vst [vmem:[#allocation43_spill] sm:$0xff] %v18738_v49  ;;  %v18742_v44 = vld [vmem:[#allocation4 + $0xf1] sm:$0xff] }
 0x604   : > { %19717 = vst [vmem:[#allocation71_spill] sm:$0xff] %v18742_v44 }
 0x606   : > { %14751 = vmatmul.mubr.msk.f32.gmra.mrb[44].mxu1 %vm439_vm0, %v18726_v1  ;;  %v18746_v1 = vld [vmem:[#allocation4 + $0x109] sm:$0xff] }
 0x607   : > { %14753 = vmatprep.mubr.msk.f32.mxu1 %vm439_vm0, %v18730_v54  ;;  %19718 = vst [vmem:[#allocation72_spill] sm:$0xff] %v18746_v1  ;;  %v18750_v54 = vld [vmem:[#allocation4 + $0x111] sm:$0xff] }
 0x608   : > { %19719 = vst [vmem:[#allocation46_spill] sm:$0xff] %v18750_v54 }
 0x60a   : > { %14754 = vmatmul.mubr.msk.f32.gmra.mrb[46].mxu1 %vm439_vm0, %v18734_v60  ;;  %v18754_v60 = vld [vmem:[#allocation4 + $0x129] sm:$0xff] }
 0x60b   : > { %14756 = vmatprep.mubr.msk.f32.mxu1 %vm439_vm0, %v18738_v49  ;;  %19720 = vst [vmem:[#allocation47_spill] sm:$0xff] %v18754_v60  ;;  %v18758_v49 = vld [vmem:[#allocation4 + $0x131] sm:$0xff] }
 0x60c   : > { %19721 = vst [vmem:[#allocation48_spill] sm:$0xff] %v18758_v49 }
 0x60e   : > { %14757 = vmatmul.mubr.msk.f32.gmra.mrb[48].mxu1 %vm439_vm0, %v18742_v44  ;;  %v18762_v44 = vld [vmem:[#allocation4 + $0x149] sm:$0xff] }
 0x60f   : > { %14759 = vmatprep.mubr.msk.f32.mxu1 %vm439_vm0, %v18746_v1  ;;  %19722 = vst [vmem:[#allocation49_spill] sm:$0xff] %v18762_v44  ;;  %v18766_v1 = vld [vmem:[#allocation4 + $0x151] sm:$0xff] }
 0x610   : > { %19723 = vst [vmem:[#allocation50_spill] sm:$0xff] %v18766_v1 }
 0x612   : > { %14760 = vmatmul.mubr.msk.f32.gmra.mrb[50].mxu1 %vm439_vm0, %v18750_v54  ;;  %v18770_v54 = vld [vmem:[#allocation4 + $0x169] sm:$0xff] }
 0x613   : > { %14762 = vmatprep.mubr.msk.f32.mxu1 %vm439_vm0, %v18754_v60  ;;  %19724 = vst [vmem:[#allocation51_spill] sm:$0xff] %v18770_v54  ;;  %v18774_v60 = vld [vmem:[#allocation4 + $0x171] sm:$0xff] }
 0x614   : > { %19725 = vst [vmem:[#allocation52_spill] sm:$0xff] %v18774_v60 }
 0x616   : > { %14763 = vmatmul.mubr.msk.f32.gmra.mrb[52].mxu1 %vm439_vm0, %v18758_v49  ;;  %v18778_v49 = vld [vmem:[#allocation4 + $0x189] sm:$0xff] }
 0x617   : > { %14765 = vmatprep.mubr.msk.f32.mxu1 %vm439_vm0, %v18762_v44  ;;  %19726 = vst [vmem:[#allocation53_spill] sm:$0xff] %v18778_v49  ;;  %v18782_v44 = vld [vmem:[#allocation4 + $0x191] sm:$0xff] }
 0x618   : > { %19727 = vst [vmem:[#allocation54_spill] sm:$0xff] %v18782_v44 }
 0x61a   : > { %14766 = vmatmul.mubr.msk.f32.gmra.mrb[54].mxu1 %vm439_vm0, %v18766_v1  ;;  %v18786_v1 = vld [vmem:[#allocation4 + $0x1a9] sm:$0xff] }
 0x61b   : > { %14768 = vmatprep.mubr.msk.f32.mxu1 %vm439_vm0, %v18770_v54  ;;  %19728 = vst [vmem:[#allocation55_spill] sm:$0xff] %v18786_v1  ;;  %v18790_v54 = vld [vmem:[#allocation4 + $0x1b1] sm:$0xff] }
 0x61e   : > { %14769 = vmatmul.mubr.msk.f32.gmra.mrb[56].mxu1 %vm439_vm0, %v18774_v60  ;;  %v18794_v60 = vld [vmem:[#allocation4 + $0x1c9] sm:$0xff] }
 0x61f   : > { %14771 = vmatprep.mubr.msk.f32.mxu1 %vm439_vm0, %v18778_v49  ;;  %19729 = vst [vmem:[#allocation56_spill] sm:$0xff] %v18794_v60  ;;  %v18798_v49 = vld [vmem:[#allocation4 + $0x1d1] sm:$0xff] }
 0x622   : > { %14772 = vmatmul.mubr.msk.f32.gmra.mrb[58].mxu1 %vm439_vm0, %v18782_v44  ;;  %v18802_v44 = vld [vmem:[#allocation4 + $0x1e9] sm:$0xff] }
 0x623   : > { %14774 = vmatprep.mubr.msk.f32.mxu1 %vm439_vm0, %v18786_v1  ;;  %19730 = vst [vmem:[#allocation57_spill] sm:$0xff] %v18802_v44  ;;  %v18806_v1 = vld [vmem:[#allocation4 + $0x1f1] sm:$0xff] }
 0x626   : > { %14775 = vmatmul.mubr.msk.f32.gmra.mrb[60].mxu1 %vm439_vm0, %v18790_v54 }
 0x627   : > { %14777 = vmatprep.mubr.msk.f32.mxu1 %vm439_vm0, %v18794_v60  ;;  %v12697_v60 = vld [vmem:[%s19306_s9 + $0x28] sm:$0xff] }
 0x62a   : > { %14778 = vmatmul.mubr.msk.f32.gmra.mrb[62].mxu1 %vm439_vm0, %v18798_v49 }
 0x62b   : > { %14780 = vmatprep.mubr.msk.f32.mxu1 %vm439_vm0, %v18802_v44 }
 0x62e   : > { %14781 = vmatmul.mubr.msk.f32.gmra.mrb[64].mxu1 %vm439_vm0, %v18806_v1 }
 0x62f   : > { %14785 = vmatprep.mubr.msk.f32.mxu1 %vm439_vm0, %v18559_v6  ;;  %v18874_v6 = vld [vmem:[#allocation4 + $0x207] sm:$0xff] }
 0x632   : > { %14786 = vmatmul.mubr.msk.f32.vlgmr.msra.gmra.mrb[34].mxu1 %vm439_vm0, %v18565_v11  ;;  %v18878_v11 = vld [vmem:[#allocation4 + $0x20f] sm:$0xff] }
 0x633   : > { %14834 = vmatpush3.msra.mxu1 %v18685_v57  ;;  %14788 = vmatprep.mubr.msk.f32.mxu1 %vm439_vm0, %v18569_v38  ;;  %v12730_v57 = vld [vmem:[%s19306_s9 + $0x30] sm:$0xff] }
 0x634   : > { %14883 = vmatprep.subr.mxu1 %v12697_v60 }
 0x636   : > { %14789 = vmatmul.mubr.msk.f32.gmra.mrb[36].mxu1 %vm439_vm0, %v18573_v40 }
 0x637   : > { %14791 = vmatprep.mubr.msk.f32.mxu1 %vm439_vm0, %v18577_v53 }
 0x63a   : > { %14792 = vmatmul.mubr.msk.f32.gmra.mrb[38].mxu1 %vm439_vm0, %v18581_v23 }
 0x63b   : > { %14794 = vmatprep.mubr.msk.f32.mxu1 %vm439_vm0, %v18585_v52 }
 0x63e   : > { %14795 = vmatmul.mubr.msk.f32.gmra.mrb[40].mxu1 %vm439_vm0, %v18589_v14 }
 0x63f   : > { %14797 = vmatprep.mubr.msk.f32.mxu1 %vm439_vm0, %v18593_v45 }
 0x642   : > { %14798 = vmatmul.mubr.msk.f32.gmra.mrb[42].mxu1 %vm439_vm0, %v18597_v39 }
 0x643   : > { %14800 = vmatprep.mubr.msk.f32.mxu1 %vm439_vm0, %v18601_v61 }
 0x646   : > { %14801 = vmatmul.mubr.msk.f32.gmra.mrb[44].mxu1 %vm439_vm0, %v18605_v20 }
 0x647   : > { %14803 = vmatprep.mubr.msk.f32.mxu1 %vm439_vm0, %v18609_v28 }
 0x64a   : > { %14804 = vmatmul.mubr.msk.f32.gmra.mrb[46].mxu1 %vm439_vm0, %v18613_v58 }
 0x64b   : > { %14806 = vmatprep.mubr.msk.f32.mxu1 %vm439_vm0, %v18617_v24 }
 0x64e   : > { %14807 = vmatmul.mubr.msk.f32.gmra.mrb[48].mxu1 %vm439_vm0, %v18621_v35 }
 0x64f   : > { %14809 = vmatprep.mubr.msk.f32.mxu1 %vm439_vm0, %v18625_v2 }
 0x652   : > { %14810 = vmatmul.mubr.msk.f32.gmra.mrb[50].mxu1 %vm439_vm0, %v18629_v30 }
 0x653   : > { %14812 = vmatprep.mubr.msk.f32.mxu1 %vm439_vm0, %v18633_v22 }
 0x656   : > { %14813 = vmatmul.mubr.msk.f32.gmra.mrb[52].mxu1 %vm439_vm0, %v18637_v17 }
 0x657   : > { %14815 = vmatprep.mubr.msk.f32.mxu1 %vm439_vm0, %v18641_v31 }
 0x65a   : > { %14816 = vmatmul.mubr.msk.f32.gmra.mrb[54].mxu1 %vm439_vm0, %v18645_v26 }
 0x65b   : > { %14818 = vmatprep.mubr.msk.f32.mxu1 %vm439_vm0, %v18649_v33 }
 0x65e   : > { %14819 = vmatmul.mubr.msk.f32.gmra.mrb[56].mxu1 %vm439_vm0, %v18653_v55 }
 0x65f   : > { %14821 = vmatprep.mubr.msk.f32.mxu1 %vm439_vm0, %v18657_v16 }
 0x662   : > { %14822 = vmatmul.mubr.msk.f32.gmra.mrb[58].mxu1 %vm439_vm0, %v18661_v19 }
 0x663   : > { %14824 = vmatprep.mubr.msk.f32.mxu1 %vm439_vm0, %v18665_v21 }
 0x666   : > { %14825 = vmatmul.mubr.msk.f32.gmra.mrb[60].mxu1 %vm439_vm0, %v18669_v37 }
 0x667   : > { %14827 = vmatprep.mubr.msk.f32.mxu1 %vm439_vm0, %v18673_v63 }
 0x66a   : > { %14828 = vmatmul.mubr.msk.f32.gmra.mrb[62].mxu1 %vm439_vm0, %v18677_v56 }
 0x66b   : > { %14830 = vmatprep.mubr.msk.f32.mxu1 %vm439_vm0, %v18874_v6 }
 0x66e   : > { %14831 = vmatmul.mubr.msk.f32.gmra.mrb[64].mxu1 %vm439_vm0, %v18878_v11 }
 0x66f   : > { %14835 = vmatprep.mubr.msk.f32.mxu1 %vm439_vm0, %v18335_v51  ;;  %v19731_v51 = vld [vmem:[#allocation44_spill] sm:$0xff] }
 0x672   : > { %14836 = vmatmul.mubr.msk.f32.vlgmr.msra.gmra.mrb[34].mxu1 %vm439_vm0, %v18341_v13  ;;  %v19732_v13 = vld [vmem:[#allocation45_spill] sm:$0xff] }
 0x673   : > { %14884 = vmatpush3.msra.mxu1 %v12697_v60  ;;  %14838 = vmatprep.mubr.msk.f32.mxu1 %vm439_vm0, %v18351_v5  ;;  %v18945_v5 = vld [vmem:[#allocation4 + $0x208] sm:$0xff] }
 0x674   : > { %14933 = vmatprep.subr.mxu1 %v12730_v57  ;;  %v19744_v60 = vld [vmem:[#allocation42_spill] sm:$0xff] }
 0x676   : > { %14839 = vmatmul.mubr.msk.f32.gmra.mrb[36].mxu1 %vm439_vm0, %v18357_v62  ;;  %v18949_v62 = vld [vmem:[#allocation4 + $0x210] sm:$0xff] }
 0x677   : > { %14841 = vmatprep.mubr.msk.f32.mxu1 %vm439_vm0, %v18367_v50  ;;  %v19733_v50 = vld [vmem:[#allocation61_spill] sm:$0xff] }
 0x67a   : > { %14842 = vmatmul.mubr.msk.f32.gmra.mrb[38].mxu1 %vm439_vm0, %v18373_v0  ;;  %v12763_v0 = vld [vmem:[%s19306_s9 + $0x38] sm:$0xff] }
 0x67b   : > { %14844 = vmatprep.mubr.msk.f32.mxu1 %vm439_vm0, %v18383_v7  ;;  %v19734_v7 = vld [vmem:[#allocation63_spill] sm:$0xff] }
 0x67e   : > { %14845 = vmatmul.mubr.msk.f32.gmra.mrb[40].mxu1 %vm439_vm0, %v18389_v59  ;;  %v19735_v59 = vld [vmem:[#allocation64_spill] sm:$0xff] }
 0x67f   : > { %14847 = vmatprep.mubr.msk.f32.mxu1 %vm439_vm0, %v18399_v9  ;;  %v19736_v9 = vld [vmem:[#allocation65_spill] sm:$0xff] }
 0x682   : > { %14848 = vmatmul.mubr.msk.f32.gmra.mrb[42].mxu1 %vm439_vm0, %v18405_v42  ;;  %v19737_v42 = vld [vmem:[#allocation67_spill] sm:$0xff] }
 0x683   : > { %14850 = vmatprep.mubr.msk.f32.mxu1 %vm439_vm0, %v18415_v36  ;;  %v19738_v36 = vld [vmem:[#allocation69_spill] sm:$0xff] }
 0x686   : > { %14851 = vmatmul.mubr.msk.f32.gmra.mrb[44].mxu1 %vm439_vm0, %v18421_v8  ;;  %v19739_v8 = vld [vmem:[#allocation24_spill] sm:$0xff] }
 0x687   : > { %14853 = vmatprep.mubr.msk.f32.mxu1 %vm439_vm0, %v18431_v34  ;;  %v19740_v34 = vld [vmem:[#allocation38_spill] sm:$0xff] }
 0x68a   : > { %14854 = vmatmul.mubr.msk.f32.gmra.mrb[46].mxu1 %vm439_vm0, %v18437_v15  ;;  %v19741_v15 = vld [vmem:[#allocation39_spill] sm:$0xff] }
 0x68b   : > { %14856 = vmatprep.mubr.msk.f32.mxu1 %vm439_vm0, %v18447_v29  ;;  %v19742_v29 = vld [vmem:[#allocation40_spill] sm:$0xff] }
 0x68e   : > { %14857 = vmatmul.mubr.msk.f32.gmra.mrb[48].mxu1 %vm439_vm0, %v18453_v47  ;;  %v19743_v47 = vld [vmem:[#allocation41_spill] sm:$0xff] }
 0x68f   : > { %14859 = vmatprep.mubr.msk.f32.mxu1 %vm439_vm0, %v18463_v4 }
 0x692   : > { %14860 = vmatmul.mubr.msk.f32.gmra.mrb[50].mxu1 %vm439_vm0, %v18469_v41 }
 0x693   : > { %14862 = vmatprep.mubr.msk.f32.mxu1 %vm439_vm0, %v18479_v32 }
 0x696   : > { %14863 = vmatmul.mubr.msk.f32.gmra.mrb[52].mxu1 %vm439_vm0, %v18485_v46 }
 0x697   : > { %14865 = vmatprep.mubr.msk.f32.mxu1 %vm439_vm0, %v18495_v27 }
 0x69a   : > { %14866 = vmatmul.mubr.msk.f32.gmra.mrb[54].mxu1 %vm439_vm0, %v18501_v48 }
 0x69b   : > { %14868 = vmatprep.mubr.msk.f32.mxu1 %vm439_vm0, %v18511_v12 }
 0x69e   : > { %14869 = vmatmul.mubr.msk.f32.gmra.mrb[56].mxu1 %vm439_vm0, %v18517_v43 }
 0x69f   : > { %14871 = vmatprep.mubr.msk.f32.mxu1 %vm439_vm0, %v18525_v25 }
 0x6a2   : > { %14872 = vmatmul.mubr.msk.f32.gmra.mrb[58].mxu1 %vm439_vm0, %v18530_v18 }
 0x6a3   : > { %14874 = vmatprep.mubr.msk.f32.mxu1 %vm439_vm0, %v18535_v3 }
 0x6a6   : > { %14875 = vmatmul.mubr.msk.f32.gmra.mrb[60].mxu1 %vm439_vm0, %v18540_v10 }
 0x6a7   : > { %14877 = vmatprep.mubr.msk.f32.mxu1 %vm439_vm0, %v19731_v51 }
 0x6aa   : > { %14878 = vmatmul.mubr.msk.f32.gmra.mrb[62].mxu1 %vm439_vm0, %v19732_v13 }
 0x6ab   : > { %14880 = vmatprep.mubr.msk.f32.mxu1 %vm439_vm0, %v18945_v5 }
 0x6ae   : > { %14881 = vmatmul.mubr.msk.f32.gmra.mrb[64].mxu1 %vm439_vm0, %v18949_v62 }
 0x6af   : > { %14885 = vmatprep.mubr.msk.f32.mxu1 %vm439_vm0, %v19733_v50  ;;  %v19746_v50 = vld [vmem:[#allocation71_spill] sm:$0xff] }
 0x6b2   : > { %14886 = vmatmul.mubr.msk.f32.vlgmr.msra.gmra.mrb[34].mxu1 %vm439_vm0, %v19734_v7  ;;  %v19747_v7 = vld [vmem:[#allocation72_spill] sm:$0xff] }
 0x6b3   : > { %14934 = vmatpush3.msra.mxu1 %v12730_v57  ;;  %14888 = vmatprep.mubr.msk.f32.mxu1 %vm439_vm0, %v19735_v59  ;;  %v19745_v57 = vld [vmem:[#allocation43_spill] sm:$0xff] }
 0x6b4   : > { %14983 = vmatprep.subr.mxu1 %v12763_v0 }
 0x6b6   : > { %14889 = vmatmul.mubr.msk.f32.gmra.mrb[36].mxu1 %vm439_vm0, %v19736_v9 }
 0x6b7   : > { %14891 = vmatprep.mubr.msk.f32.mxu1 %vm439_vm0, %v19737_v42 }
 0x6ba   : > { %14892 = vmatmul.mubr.msk.f32.gmra.mrb[38].mxu1 %vm439_vm0, %v19738_v36 }
 0x6bb   : > { %14894 = vmatprep.mubr.msk.f32.mxu1 %vm439_vm0, %v19739_v8 }
 0x6be   : > { %14895 = vmatmul.mubr.msk.f32.gmra.mrb[40].mxu1 %vm439_vm0, %v19740_v34  ;;  %v19748_v34 = vld [vmem:[#allocation46_spill] sm:$0xff] }
 0x6bf   : > { %14897 = vmatprep.mubr.msk.f32.mxu1 %vm439_vm0, %v19741_v15  ;;  %v19749_v15 = vld [vmem:[#allocation47_spill] sm:$0xff] }
 0x6c2   : > { %14898 = vmatmul.mubr.msk.f32.gmra.mrb[42].mxu1 %vm439_vm0, %v19742_v29  ;;  %v19750_v29 = vld [vmem:[#allocation48_spill] sm:$0xff] }
 0x6c3   : > { %14900 = vmatprep.mubr.msk.f32.mxu1 %vm439_vm0, %v19743_v47  ;;  %v19751_v47 = vld [vmem:[#allocation49_spill] sm:$0xff] }
 0x6c6   : > { %14901 = vmatmul.mubr.msk.f32.gmra.mrb[44].mxu1 %vm439_vm0, %v19744_v60  ;;  %v19752_v60 = vld [vmem:[#allocation50_spill] sm:$0xff] }
 0x6c7   : > { %14903 = vmatprep.mubr.msk.f32.mxu1 %vm439_vm0, %v19745_v57  ;;  %v19753_v57 = vld [vmem:[#allocation51_spill] sm:$0xff] }
 0x6ca   : > { %14904 = vmatmul.mubr.msk.f32.gmra.mrb[46].mxu1 %vm439_vm0, %v19746_v50  ;;  %v19754_v50 = vld [vmem:[#allocation52_spill] sm:$0xff] }
 0x6cb   : > { %14906 = vmatprep.mubr.msk.f32.mxu1 %vm439_vm0, %v19747_v7  ;;  %v19755_v7 = vld [vmem:[#allocation53_spill] sm:$0xff] }
 0x6ce   : > { %14907 = vmatmul.mubr.msk.f32.gmra.mrb[48].mxu1 %vm439_vm0, %v19748_v34  ;;  %v19756_v34 = vld [vmem:[#allocation54_spill] sm:$0xff] }
 0x6cf   : > { %14909 = vmatprep.mubr.msk.f32.mxu1 %vm439_vm0, %v19749_v15  ;;  %v19757_v15 = vld [vmem:[#allocation55_spill] sm:$0xff] }
 0x6d2   : > { %14910 = vmatmul.mubr.msk.f32.gmra.mrb[50].mxu1 %vm439_vm0, %v19750_v29 }
 0x6d3   : > { %14912 = vmatprep.mubr.msk.f32.mxu1 %vm439_vm0, %v19751_v47  ;;  %v19758_v47 = vld [vmem:[#allocation56_spill] sm:$0xff] }
 0x6d6   : > { %14913 = vmatmul.mubr.msk.f32.gmra.mrb[52].mxu1 %vm439_vm0, %v19752_v60 }
 0x6d7   : > { %14915 = vmatprep.mubr.msk.f32.mxu1 %vm439_vm0, %v19753_v57 }
 0x6da   : > { %14916 = vmatmul.mubr.msk.f32.gmra.mrb[54].mxu1 %vm439_vm0, %v19754_v50 }
 0x6db   : > { %14918 = vmatprep.mubr.msk.f32.mxu1 %vm439_vm0, %v19755_v7  ;;  %v19016_v7 = vld [vmem:[#allocation4 + $0x209] sm:$0xff] }
 0x6de   : > { %14919 = vmatmul.mubr.msk.f32.gmra.mrb[56].mxu1 %vm439_vm0, %v19756_v34 }
 0x6df   : > { %14921 = vmatprep.mubr.msk.f32.mxu1 %vm439_vm0, %v19757_v15  ;;  %v19020_v15 = vld [vmem:[#allocation4 + $0x211] sm:$0xff] }
 0x6e2   : > { %14922 = vmatmul.mubr.msk.f32.gmra.mrb[58].mxu1 %vm439_vm0, %v18790_v54 }
 0x6e3   : > { %14924 = vmatprep.mubr.msk.f32.mxu1 %vm439_vm0, %v19758_v47 }
 0x6e6   : > { %14925 = vmatmul.mubr.msk.f32.gmra.mrb[60].mxu1 %vm439_vm0, %v18798_v49 }
 0x6e7   : > { %14927 = vmatprep.mubr.msk.f32.mxu1 %vm439_vm0, %v18802_v44  ;;  %v12796_v44 = vld [vmem:[%s19306_s9 + $0x40] sm:$0xff] }
 0x6ea   : > { %14928 = vmatmul.mubr.msk.f32.gmra.mrb[62].mxu1 %vm439_vm0, %v18806_v1 }
 0x6eb   : > { %14930 = vmatprep.mubr.msk.f32.mxu1 %vm439_vm0, %v19016_v7 }
 0x6ee   : > { %14931 = vmatmul.mubr.msk.f32.gmra.mrb[64].mxu1 %vm439_vm0, %v19020_v15 }
 0x6ef   : > { %14935 = vmatprep.mubr.msk.f32.mxu1 %vm439_vm0, %v18569_v38  ;;  %v10471_v38 = vld [vmem:[#allocation4 + $0x227] sm:$0xff] }
 0x6f2   : > { %14936 = vmatmul.mubr.msk.f32.vlgmr.msra.gmra.mrb[34].mxu1 %vm439_vm0, %v18573_v40  ;;  %v10472_v40 = vld [vmem:[#allocation4 + $0x22f] sm:$0xff] }
 0x6f3   : > { %14984 = vmatpush3.msra.mxu1 %v12763_v0  ;;  %14938 = vmatprep.mubr.msk.f32.mxu1 %vm439_vm0, %v18577_v53  ;;  %v10828_v53 = vld [vmem:[#allocation4 + $0x48] sm:$0xff] }
 0x6f4   : > { %15033 = vmatprep.subr.mxu1 %v12796_v44 }
 0x6f6   : > { %14939 = vmatmul.mubr.msk.f32.gmra.mrb[36].mxu1 %vm439_vm0, %v18581_v23  ;;  %v10829_v23 = vld [vmem:[#allocation4 + $0x50] sm:$0xff] }
 0x6f7   : > { %14941 = vmatprep.mubr.msk.f32.mxu1 %vm439_vm0, %v18585_v52  ;;  %v10830_v52 = vld [vmem:[#allocation4 + $0x68] sm:$0xff] }
 0x6fa   : > { %14942 = vmatmul.mubr.msk.f32.gmra.mrb[38].mxu1 %vm439_vm0, %v18589_v14  ;;  %v10831_v14 = vld [vmem:[#allocation4 + $0x70] sm:$0xff] }
 0x6fb   : > { %14944 = vmatprep.mubr.msk.f32.mxu1 %vm439_vm0, %v18593_v45  ;;  %v10832_v45 = vld [vmem:[#allocation4 + $0x88] sm:$0xff] }
 0x6fe   : > { %14945 = vmatmul.mubr.msk.f32.gmra.mrb[40].mxu1 %vm439_vm0, %v18597_v39  ;;  %v10833_v39 = vld [vmem:[#allocation4 + $0x90] sm:$0xff] }
 0x6ff   : > { %14947 = vmatprep.mubr.msk.f32.mxu1 %vm439_vm0, %v18601_v61  ;;  %v10834_v61 = vld [vmem:[#allocation4 + $0xa8] sm:$0xff] }
 0x702   : > { %14948 = vmatmul.mubr.msk.f32.gmra.mrb[42].mxu1 %vm439_vm0, %v18605_v20  ;;  %v10835_v20 = vld [vmem:[#allocation4 + $0xb0] sm:$0xff] }
 0x703   : > { %14950 = vmatprep.mubr.msk.f32.mxu1 %vm439_vm0, %v18609_v28  ;;  %v10836_v28 = vld [vmem:[#allocation4 + $0xc8] sm:$0xff] }
 0x706   : > { %14951 = vmatmul.mubr.msk.f32.gmra.mrb[44].mxu1 %vm439_vm0, %v18613_v58  ;;  %v10837_v58 = vld [vmem:[#allocation4 + $0xd0] sm:$0xff] }
 0x707   : > { %14953 = vmatprep.mubr.msk.f32.mxu1 %vm439_vm0, %v18617_v24  ;;  %v10838_v24 = vld [vmem:[#allocation4 + $0xe8] sm:$0xff] }
 0x70a   : > { %14954 = vmatmul.mubr.msk.f32.gmra.mrb[46].mxu1 %vm439_vm0, %v18621_v35  ;;  %v10839_v35 = vld [vmem:[#allocation4 + $0xf0] sm:$0xff] }
 0x70b   : > { %14956 = vmatprep.mubr.msk.f32.mxu1 %vm439_vm0, %v18625_v2  ;;  %v10840_v2 = vld [vmem:[#allocation4 + $0x108] sm:$0xff] }
 0x70e   : > { %14957 = vmatmul.mubr.msk.f32.gmra.mrb[48].mxu1 %vm439_vm0, %v18629_v30  ;;  %v10841_v30 = vld [vmem:[#allocation4 + $0x110] sm:$0xff] }
 0x70f   : > { %14959 = vmatprep.mubr.msk.f32.mxu1 %vm439_vm0, %v18633_v22  ;;  %v19769_v22 = vld [vmem:[#allocation49_spill] sm:$0xff] }
 0x712   : > { %14960 = vmatmul.mubr.msk.f32.gmra.mrb[50].mxu1 %vm439_vm0, %v18637_v17  ;;  %v19770_v17 = vld [vmem:[#allocation53_spill] sm:$0xff] }
 0x713   : > { %14962 = vmatprep.mubr.msk.f32.mxu1 %vm439_vm0, %v18641_v31  ;;  %v19771_v31 = vld [vmem:[#allocation55_spill] sm:$0xff] }
 0x716   : > { %14963 = vmatmul.mubr.msk.f32.gmra.mrb[52].mxu1 %vm439_vm0, %v18645_v26  ;;  %v19772_v26 = vld [vmem:[#allocation57_spill] sm:$0xff] }
 0x717   : > { %14965 = vmatprep.mubr.msk.f32.mxu1 %vm439_vm0, %v18649_v33  ;;  %v11245_v33 = vld [vmem:[#allocation4 + $0x229] sm:$0xff] }
 0x71a   : > { %14966 = vmatmul.mubr.msk.f32.gmra.mrb[54].mxu1 %vm439_vm0, %v18653_v55  ;;  %v19202_v55 = vld [vmem:[%s19307_s10] ss:$0 sm:$0xff] }
 0x71b   : > { %14968 = vmatprep.mubr.msk.f32.mxu1 %vm439_vm0, %v18657_v16 }
 0x71e   : > { %14969 = vmatmul.mubr.msk.f32.gmra.mrb[56].mxu1 %vm439_vm0, %v18661_v19 }
 0x71f   : > { %14971 = vmatprep.mubr.msk.f32.mxu1 %vm439_vm0, %v18665_v21  ;;  %v19208_v21 = vld [vmem:[%s19308_s11] ss:$0 sm:$0xff] }
 0x722   : > { %14972 = vmatmul.mubr.msk.f32.gmra.mrb[58].mxu1 %vm439_vm0, %v18669_v37 }
 0x723   : > { %14974 = vmatprep.mubr.msk.f32.mxu1 %vm439_vm0, %v18673_v63 }
 0x726   : > { %14975 = vmatmul.mubr.msk.f32.gmra.mrb[60].mxu1 %vm439_vm0, %v18677_v56 }
 0x727   : > { %14977 = vmatprep.mubr.msk.f32.mxu1 %vm439_vm0, %v18874_v6 }
 0x72a   : > { %14978 = vmatmul.mubr.msk.f32.gmra.mrb[62].mxu1 %vm439_vm0, %v18878_v11 }
 0x72b   : > { %14980 = vmatprep.mubr.msk.f32.mxu1 %vm439_vm0, %v10471_v38 }
 0x72e   : > { %14981 = vmatmul.mubr.msk.f32.gmra.mrb[64].mxu1 %vm439_vm0, %v10472_v40 }
 0x72f   : > { %14985 = vmatprep.mubr.msk.f32.mxu1 %vm439_vm0, %v10828_v53 }
 0x732   : > { %14986 = vmatmul.mubr.msk.f32.vlgmr.msra.gmra.mrb[34].mxu1 %vm439_vm0, %v10829_v23 }
 0x733   : > { %15034 = vmatpush3.msra.mxu1 %v12796_v44  ;;  %14988 = vmatprep.mubr.msk.f32.mxu1 %vm439_vm0, %v10830_v52 }
 0x736   : > { %14989 = vmatmul.mubr.msk.f32.gmra.mrb[36].mxu1 %vm439_vm0, %v10831_v14 }
 0x737   : > { %14991 = vmatprep.mubr.msk.f32.mxu1 %vm439_vm0, %v10832_v45 }
 0x73a   : > { %14992 = vmatmul.mubr.msk.f32.gmra.mrb[38].mxu1 %vm439_vm0, %v10833_v39 }
 0x73b   : > { %14994 = vmatprep.mubr.msk.f32.mxu1 %vm439_vm0, %v10834_v61 }
 0x73e   : > { %14995 = vmatmul.mubr.msk.f32.gmra.mrb[40].mxu1 %vm439_vm0, %v10835_v20 }
 0x73f   : > { %14997 = vmatprep.mubr.msk.f32.mxu1 %vm439_vm0, %v10836_v28 }
 0x742   : > { %14998 = vmatmul.mubr.msk.f32.gmra.mrb[42].mxu1 %vm439_vm0, %v10837_v58 }
 0x743   : > { %15000 = vmatprep.mubr.msk.f32.mxu1 %vm439_vm0, %v10838_v24 }
 0x746   : > { %15001 = vmatmul.mubr.msk.f32.gmra.mrb[44].mxu1 %vm439_vm0, %v10839_v35 }
 0x747   : > { %15003 = vmatprep.mubr.msk.f32.mxu1 %vm439_vm0, %v10840_v2 }
 0x74a   : > { %15004 = vmatmul.mubr.msk.f32.gmra.mrb[46].mxu1 %vm439_vm0, %v10841_v30 }
 0x74b   : > { %15006 = vmatprep.mubr.msk.f32.mxu1 %vm439_vm0, %v18463_v4  ;;  %v10858_v4 = vld [vmem:[#allocation4 + $0x228] sm:$0xff] }
 0x74e   : > { %15007 = vmatmul.mubr.msk.f32.gmra.mrb[48].mxu1 %vm439_vm0, %v18469_v41  ;;  %v10859_v41 = vld [vmem:[#allocation4 + $0x230] sm:$0xff] }
 0x74f   : > { %15009 = vmatprep.mubr.msk.f32.mxu1 %vm439_vm0, %v18479_v32  ;;  %v19759_v32 = vld [vmem:[#allocation38_spill] sm:$0xff] }
 0x752   : > { %15010 = vmatmul.mubr.msk.f32.gmra.mrb[50].mxu1 %vm439_vm0, %v18485_v46  ;;  %v19760_v46 = vld [vmem:[#allocation39_spill] sm:$0xff] }
 0x753   : > { %15012 = vmatprep.mubr.msk.f32.mxu1 %vm439_vm0, %v18495_v27  ;;  %v19761_v27 = vld [vmem:[#allocation40_spill] sm:$0xff] }
 0x756   : > { %15013 = vmatmul.mubr.msk.f32.gmra.mrb[52].mxu1 %vm439_vm0, %v18501_v48  ;;  %v19762_v48 = vld [vmem:[#allocation41_spill] sm:$0xff] }
 0x757   : > { %15015 = vmatprep.mubr.msk.f32.mxu1 %vm439_vm0, %v18511_v12  ;;  %v19763_v12 = vld [vmem:[#allocation42_spill] sm:$0xff] }
 0x75a   : > { %15016 = vmatmul.mubr.msk.f32.gmra.mrb[54].mxu1 %vm439_vm0, %v18517_v43  ;;  %v19764_v43 = vld [vmem:[#allocation43_spill] sm:$0xff] }
 0x75b   : > { %15018 = vmatprep.mubr.msk.f32.mxu1 %vm439_vm0, %v18525_v25  ;;  %v19765_v25 = vld [vmem:[#allocation71_spill] sm:$0xff] }
 0x75e   : > { %15019 = vmatmul.mubr.msk.f32.gmra.mrb[56].mxu1 %vm439_vm0, %v18530_v18  ;;  %v19766_v18 = vld [vmem:[#allocation72_spill] sm:$0xff] }
 0x75f   : > { %15021 = vmatprep.mubr.msk.f32.mxu1 %vm439_vm0, %v18535_v3  ;;  %v19767_v3 = vld [vmem:[#allocation46_spill] sm:$0xff] }
 0x762   : > { %15022 = vmatmul.mubr.msk.f32.gmra.mrb[58].mxu1 %vm439_vm0, %v18540_v10  ;;  %v19768_v10 = vld [vmem:[#allocation47_spill] sm:$0xff] }
 0x763   : > { %15024 = vmatprep.mubr.msk.f32.mxu1 %vm439_vm0, %v19731_v51 }
 0x766   : > { %15025 = vmatmul.mubr.msk.f32.gmra.mrb[60].mxu1 %vm439_vm0, %v19732_v13 }
 0x767   : > { %15027 = vmatprep.mubr.msk.f32.mxu1 %vm439_vm0, %v18945_v5 }
 0x76a   : > { %15028 = vmatmul.mubr.msk.f32.gmra.mrb[62].mxu1 %vm439_vm0, %v18949_v62 }
 0x76b   : > { %15030 = vmatprep.mubr.msk.f32.mxu1 %vm439_vm0, %v10858_v4 }
 0x76e   : > { %15031 = vmatmul.mubr.msk.f32.gmra.mrb[64].mxu1 %vm439_vm0, %v10859_v41 }
 0x76f   : > { %15035 = vmatprep.mubr.msk.f32.mxu1 %vm439_vm0, %v19735_v59 }
 0x772   : > { %15036 = vmatmul.mubr.msk.f32.vlgmr.msra.gmra.mrb[34].mxu1 %vm439_vm0, %v19736_v9 }
 0x773   : > { %15038 = vmatprep.mubr.msk.f32.mxu1 %vm439_vm0, %v19737_v42 }
 0x776   : > { %15039 = vmatmul.mubr.msk.f32.gmra.mrb[36].mxu1 %vm439_vm0, %v19738_v36 }
 0x777   : > { %15041 = vmatprep.mubr.msk.f32.mxu1 %vm439_vm0, %v19739_v8 }
 0x77a   : > { %15042 = vmatmul.mubr.msk.f32.gmra.mrb[38].mxu1 %vm439_vm0, %v19759_v32 }
 0x77b   : > { %15044 = vmatprep.mubr.msk.f32.mxu1 %vm439_vm0, %v19760_v46 }
 0x77e   : > { %15045 = vmatmul.mubr.msk.f32.gmra.mrb[40].mxu1 %vm439_vm0, %v19761_v27 }
 0x77f   : > { %15047 = vmatprep.mubr.msk.f32.mxu1 %vm439_vm0, %v19762_v48 }
 0x782   : > { %15048 = vmatmul.mubr.msk.f32.gmra.mrb[42].mxu1 %vm439_vm0, %v19763_v12 }
 0x783   : > { %15050 = vmatprep.mubr.msk.f32.mxu1 %vm439_vm0, %v19764_v43 }
 0x786   : > { %15051 = vmatmul.mubr.msk.f32.gmra.mrb[44].mxu1 %vm439_vm0, %v19765_v25 }
 0x787   : > { %15053 = vmatprep.mubr.msk.f32.mxu1 %vm439_vm0, %v19766_v18 }
 0x78a   : > { %15054 = vmatmul.mubr.msk.f32.gmra.mrb[46].mxu1 %vm439_vm0, %v19767_v3 }
 0x78b   : > { %15056 = vmatprep.mubr.msk.f32.mxu1 %vm439_vm0, %v19768_v10 }
 0x78e   : > { %15057 = vmatmul.mubr.msk.f32.gmra.mrb[48].mxu1 %vm439_vm0, %v19750_v29 }
 0x78f   : > { %15059 = vmatprep.mubr.msk.f32.mxu1 %vm439_vm0, %v19769_v22 }
 0x792   : > { %15060 = vmatmul.mubr.msk.f32.gmra.mrb[50].mxu1 %vm439_vm0, %v19752_v60 }
 0x793   : > { %15062 = vmatprep.mubr.msk.f32.mxu1 %vm439_vm0, %v19753_v57 }
 0x796   : > { %15063 = vmatmul.mubr.msk.f32.gmra.mrb[52].mxu1 %vm439_vm0, %v19754_v50 }
 0x797   : > { %15065 = vmatprep.mubr.msk.f32.mxu1 %vm439_vm0, %v19770_v17 }
 0x79a   : > { %15066 = vmatmul.mubr.msk.f32.gmra.mrb[54].mxu1 %vm439_vm0, %v19756_v34 }
 0x79b   : > { %15068 = vmatprep.mubr.msk.f32.mxu1 %vm439_vm0, %v19771_v31 }
 0x79e   : > { %15069 = vmatmul.mubr.msk.f32.gmra.mrb[56].mxu1 %vm439_vm0, %v18790_v54  ;;  %v11246_v54 = vld [vmem:[#allocation4 + $0x231] sm:$0xff] }
 0x79f   : > { %15071 = vmatprep.mubr.msk.f32.mxu1 %vm439_vm0, %v19758_v47 }
 0x7a2   : > { %15072 = vmatmul.mubr.msk.f32.gmra.mrb[58].mxu1 %vm439_vm0, %v18798_v49 }
 0x7a3   : > { %15074 = vmatprep.mubr.msk.f32.mxu1 %vm439_vm0, %v19772_v26 }
 0x7a6   : > { %15075 = vmatmul.mubr.msk.f32.gmra.mrb[60].mxu1 %vm439_vm0, %v18806_v1 }
 0x7a7   : > { %15077 = vmatprep.mubr.msk.f32.mxu1 %vm439_vm0, %v19016_v7 }
 0x7aa   : > { %15078 = vmatmul.mubr.msk.f32.gmra.mrb[62].mxu1 %vm439_vm0, %v19020_v15 }
 0x7ab   : > { %15080 = vmatprep.mubr.msk.f32.mxu1 %vm439_vm0, %v11245_v33 }
 0x7ae   : > { %15081 = vmatmul.mubr.msk.f32.gmra.mrb[64].mxu1 %vm439_vm0, %v11246_v54 }
 0x845   : > { %v15037_v16 = vpop.f32.mrb[34].mxu1 }
 0x846   : > { %v11610_v19 = vmul.f32 %v15037_v16, %v19202_v55  ;;  %v11411_v37 = vpop.f32.mrb[35].mxu1 }
 0x847   : > { %v11609_v63 = vmul.f32 %v19202_v55, %v11411_v37 }
 0x848   : > { %v11649_v56 = vadd.f32 %v19208_v21, %v11610_v19 }
 0x849   : > { %v11648_v49 = vadd.f32 %v19208_v21, %v11609_v63  ;;  %v15040_v44 = vpop.f32.mrb[36].mxu1 }
 0x84a   : > { %v11421_v1 = vpop.f32.mrb[37].mxu1  ;;  %v11713_v51 = vmul.f32 0.01, %v11649_v56  ;;  %v11612_v13 = vmul.f32 %v15040_v44, %v19202_v55  ;;  %vm11681_vm7 = vcmp.gt.f32.partialorder %v11649_v56, 0.0 }
 0x84b   : > { %v11712_v6 = vmul.f32 0.01, %v11648_v49  ;;  %v11611_v11 = vmul.f32 %v19202_v55, %v11421_v1  ;;  %vm11680_vm0 = vcmp.gt.f32.partialorder %v11648_v49, 0.0 }
 0x84c   : > { %v11651_v9 = vadd.f32 %v19208_v21, %v11612_v13  ;;  %v11745_v34 = vsel %vm11681_vm7, %v11649_v56, %v11713_v51 }
 0x84d   : > { %v11650_v5 = vadd.f32 %v19208_v21, %v11611_v11  ;;  %v15043_v62 = vpop.f32.mrb[38].mxu1  ;;  %v11744_v0 = vsel %vm11680_vm0, %v11648_v49, %v11712_v6 }
 0x84e   : > { %11776 = vxpose.xlu0.b32.start [1/16] (narrow) %v11744_v0, 8  ;;  %v11431_v59 = vpop.f32.mrb[39].mxu1  ;;  %v11715_v29 = vmul.f32 0.01, %v11651_v9  ;;  %v11614_v47 = vmul.f32 %v15043_v62, %v19202_v55  ;;  %vm11683_vm9 = vcmp.gt.f32.partialorder %v11651_v9, 0.0 }
 0x84f   : > { %v11714_v42 = vmul.f32 0.01, %v11650_v5  ;;  %v11613_v36 = vmul.f32 %v19202_v55, %v11431_v59  ;;  %vm11682_vm8 = vcmp.gt.f32.partialorder %v11650_v5, 0.0 }
 0x850   : > { %v11653_v38 = vadd.f32 %v19208_v21, %v11614_v47  ;;  %v11747_v52 = vsel %vm11683_vm9, %v11651_v9, %v11715_v29 }
 0x851   : > { %v15046_v8 = vpop.f32.mrb[40].mxu1  ;;  %v11652_v60 = vadd.f32 %v19208_v21, %v11613_v36  ;;  %v11746_v50 = vsel %vm11682_vm8, %v11650_v5, %v11714_v42 }
 0x852   : > { %11777 = vxpose.xlu0.b32.cont [2/16] (narrow) %v11745_v34, 8  ;;  %v11441_v15 = vpop.f32.mrb[41].mxu1  ;;  %v11717_v45 = vmul.f32 0.01, %v11653_v38  ;;  %v11616_v39 = vmul.f32 %v15046_v8, %v19202_v55  ;;  %vm11685_vm11 = vcmp.gt.f32.partialorder %v11653_v38, 0.0 }
 0x853   : > { %v11716_v40 = vmul.f32 0.01, %v11652_v60  ;;  %v11615_v53 = vmul.f32 %v19202_v55, %v11441_v15  ;;  %vm11684_vm10 = vcmp.gt.f32.partialorder %v11652_v60, 0.0 }
 0x854   : > { %v11655_v35 = vadd.f32 %v19208_v21, %v11616_v39  ;;  %v11749_v4 = vsel %vm11685_vm11, %v11653_v38, %v11717_v45 }
 0x855   : > { %v15049_v57 = vpop.f32.mrb[42].mxu1  ;;  %v11654_v61 = vadd.f32 %v19208_v21, %v11615_v53  ;;  %v11748_v28 = vsel %vm11684_vm10, %v11652_v60, %v11716_v40 }
 0x856   : > { %11778 = vxpose.xlu0.b32.cont [3/16] (narrow) %v11746_v50, 8  ;;  %v11451_v7 = vpop.f32.mrb[43].mxu1  ;;  %v11618_v32 = vmul.f32 %v15049_v57, %v19202_v55  ;;  %v11719_v27 = vmul.f32 0.01, %v11655_v35  ;;  %vm11687_vm13 = vcmp.gt.f32.partialorder %v11655_v35, 0.0 }
 0x857   : > { %v11617_v24 = vmul.f32 %v19202_v55, %v11451_v7  ;;  %v11718_v2 = vmul.f32 0.01, %v11654_v61  ;;  %vm11686_vm12 = vcmp.gt.f32.partialorder %v11654_v61, 0.0 }
 0x858   : > { %v11657_v3 = vadd.f32 %v19208_v21, %v11618_v32  ;;  %v11751_v33 = vsel %vm11687_vm13, %v11655_v35, %v11719_v27 }
 0x859   : > { %v15052_v23 = vpop.f32.mrb[44].mxu1  ;;  %v11656_v46 = vadd.f32 %v19208_v21, %v11617_v24  ;;  %v11750_v12 = vsel %vm11686_vm12, %v11654_v61, %v11718_v2 }
 0x85a   : > { %11779 = vxpose.xlu0.b32.cont [4/16] (narrow) %v11747_v52, 8  ;;  %v11461_v14 = vpop.f32.mrb[45].mxu1  ;;  %v11620_v16 = vmul.f32 %v15052_v23, %v19202_v55  ;;  %vm11689_vm1 = vcmp.gt.f32.partialorder %v11657_v3, 0.0  ;;  %v11721_v63 = vmul.f32 0.01, %v11657_v3 }
 0x85b   : > { %v11720_v10 = vmul.f32 0.01, %v11656_v46  ;;  %v11619_v22 = vmul.f32 %v19202_v55, %v11461_v14  ;;  %vm11688_vm14 = vcmp.gt.f32.partialorder %v11656_v46, 0.0 }
 0x85c   : > { %v11659_v5 = vadd.f32 %v19208_v21, %v11620_v16  ;;  %v11753_v59 = vsel %vm11689_vm1, %v11657_v3, %v11721_v63 }
 0x85d   : > { %v19224_v20 = vpop.f32.mrb[46].mxu1  ;;  %v11658_v56 = vadd.f32 %v19208_v21, %v11619_v22  ;;  %v11752_v49 = vsel %vm11688_vm14, %v11656_v46, %v11720_v10 }
 0x85e   : > { %11780 = vxpose.xlu0.b32.cont [5/16] (narrow) %v11748_v28, 8  ;;  %v11471_v58 = vpop.f32.mrb[47].mxu1  ;;  %v11723_v29 = vmul.f32 0.01, %v11659_v5  ;;  %v11622_v47 = vmul.f32 %v19224_v20, %v19202_v55  ;;  %vm11691_vm5 = vcmp.gt.f32.partialorder %v11659_v5, 0.0 }
 0x85f   : > { %v11621_v62 = vmul.f32 %v19202_v55, %v11471_v58  ;;  %v11722_v0 = vmul.f32 0.01, %v11658_v56  ;;  %vm11690_vm3 = vcmp.gt.f32.partialorder %v11658_v56, 0.0 }
 0x860   : > { %v11661_v14 = vadd.f32 %v19208_v21, %v11622_v47  ;;  %v11755_v39 = vsel %vm11691_vm5, %v11659_v5, %v11723_v29 }
 0x861   : > { %v19228_v30 = vpop.f32.mrb[48].mxu1  ;;  %v11660_v60 = vadd.f32 %v19208_v21, %v11621_v62  ;;  %v11754_v38 = vsel %vm11690_vm3, %v11658_v56, %v11722_v0 }
 0x862   : > { %11781 = vxpose.xlu0.b32.cont [6/16] (narrow) %v11749_v4, 8  ;;  %v19230_v41 = vpop.f32.mrb[49].mxu1  ;;  %vm11693_vm8 = vcmp.gt.f32.partialorder %v11661_v14, 0.0 }
 0x863   : > { %vm11692_vm0 = vcmp.gt.f32.partialorder %v11660_v60, 0.0  ;;  %v11724_v61 = vmul.f32 0.01, %v11660_v60  ;;  %v11623_v20 = vmul.f32 %v19202_v55, %v19230_v41  ;;  %v11725_v41 = vmul.f32 0.01, %v11661_v14 }
 0x865   : > { %v15061_v48 = vpop.f32.mrb[50].mxu1  ;;  %v11756_v3 = vsel %vm11692_vm0, %v11660_v60, %v11724_v61  ;;  %v11757_v63 = vsel %vm11693_vm8, %v11661_v14, %v11725_v41 }
 0x866   : > { %v11626_v43 = vmul.f32 %v15061_v48, %v19202_v55  ;;  %11782 = vxpose.xlu0.b32.cont [7/16] (narrow) %v11750_v12, 8  ;;  %v11491_v25 = vpop.f32.mrb[51].mxu1  ;;  %v11624_v48 = vmul.f32 %v19228_v30, %v19202_v55 }
 0x867   : > { %v11625_v18 = vmul.f32 %v19202_v55, %v11491_v25 }
 0x868   : > { %v11665_v17 = vadd.f32 %v19208_v21, %v11626_v43  ;;  %v11662_v43 = vadd.f32 %v19208_v21, %v11623_v20  ;;  %v11663_v16 = vadd.f32 %v19208_v21, %v11624_v48 }
 0x869   : > { %v11664_v31 = vadd.f32 %v19208_v21, %v11625_v18  ;;  %v15064_v26 = vpop.f32.mrb[52].mxu1 }
 0x86a   : > { %11783 = vxpose.xlu0.b32.cont [8/16] (narrow) %v11751_v33, 8  ;;  %v11501_v54 = vpop.f32.mrb[53].mxu1  ;;  %v11628_v44 = vmul.f32 %v15064_v26, %v19202_v55  ;;  %v11729_v51 = vmul.f32 0.01, %v11665_v17  ;;  %vm11697_vm2 = vcmp.gt.f32.partialorder %v11665_v17, 0.0  ;;  %vm11694_vm10 = vcmp.gt.f32.partialorder %v11662_v43, 0.0 }
 0x86b   : > { %v11627_v19 = vmul.f32 %v19202_v55, %v11501_v54  ;;  %vm11696_vm15 = vcmp.gt.f32.partialorder %v11664_v31, 0.0  ;;  %v11728_v37 = vmul.f32 0.01, %v11664_v31  ;;  %v11727_v5 = vmul.f32 0.01, %v11663_v16 }
 0x86c   : > { %v11667_v9 = vadd.f32 %v19208_v21, %v11628_v44  ;;  %v11761_v8 = vsel %vm11697_vm2, %v11665_v17, %v11729_v51  ;;  %vm11695_vm12 = vcmp.gt.f32.partialorder %v11663_v16, 0.0 }
 0x86d   : > { %v11666_v1 = vadd.f32 %v19208_v21, %v11627_v19  ;;  %v15067_v6 = vpop.f32.mrb[54].mxu1  ;;  %v11760_v11 = vsel %vm11696_vm15, %v11664_v31, %v11728_v37  ;;  %v11726_v19 = vmul.f32 0.01, %v11662_v43 }
 0x86e   : > { %11784 = vxpose.xlu0.b32.cont [9/16] (narrow) %v11752_v49, 8  ;;  %11808 = vxpose.xlu1.b32.start [1/16] (narrow) %v11760_v11, 8  ;;  %v11511_v13 = vpop.f32.mrb[55].mxu1  ;;  %v11630_v57 = vmul.f32 %v15067_v6, %v19202_v55  ;;  %v11731_v53 = vmul.f32 0.01, %v11667_v9  ;;  %vm11699_vm6 = vcmp.gt.f32.partialorder %v11667_v9, 0.0 }
 0x86f   : > { %v11629_v42 = vmul.f32 %v19202_v55, %v11511_v13  ;;  %v11730_v34 = vmul.f32 0.01, %v11666_v1  ;;  %vm11698_vm4 = vcmp.gt.f32.partialorder %v11666_v1, 0.0 }
 0x870   : > { %v11669_v28 = vadd.f32 %v19208_v21, %v11630_v57  ;;  %v11763_v4 = vsel %vm11699_vm6, %v11667_v9, %v11731_v53 }
 0x871   : > { %v15070_v36 = vpop.f32.mrb[56].mxu1  ;;  %v11668_v50 = vadd.f32 %v19208_v21, %v11629_v42  ;;  %v11762_v40 = vsel %vm11698_vm4, %v11666_v1, %v11730_v34 }
 0x872   : > { %11785 = vxpose.xlu0.b32.cont [10/16] (narrow) %v11753_v59, 8  ;;  %11809 = vxpose.xlu1.b32.cont [2/16] (narrow) %v11761_v8, 8  ;;  %v11521_v15 = vpop.f32.mrb[57].mxu1  ;;  %v11632_v25 = vmul.f32 %v15070_v36, %v19202_v55  ;;  %v11733_v26 = vmul.f32 0.01, %v11669_v28  ;;  %vm11701_vm9 = vcmp.gt.f32.partialorder %v11669_v28, 0.0  ;;  %v11758_v59 = vsel %vm11694_vm10, %v11662_v43, %v11726_v19 }
 0x873   : > { %v11631_v24 = vmul.f32 %v19202_v55, %v11521_v15  ;;  %v11732_v32 = vmul.f32 0.01, %v11668_v50  ;;  %vm11700_vm7 = vcmp.gt.f32.partialorder %v11668_v50, 0.0  ;;  %v11759_v36 = vsel %vm11695_vm12, %v11663_v16, %v11727_v5 }
 0x874   : > { %v11671_v56 = vadd.f32 %v19208_v21, %v11632_v25  ;;  %v11765_v1 = vsel %vm11701_vm9, %v11669_v28, %v11733_v26 }
 0x875   : > { %v15073_v7 = vpop.f32.mrb[58].mxu1  ;;  %v11670_v10 = vadd.f32 %v19208_v21, %v11631_v24  ;;  %v11764_v31 = vsel %vm11700_vm7, %v11668_v50, %v11732_v32 }
 0x876   : > { %v11634_v23 = vmul.f32 %v15073_v7, %v19202_v55  ;;  %11786 = vxpose.xlu0.b32.cont [11/16] (narrow) %v11754_v38, 8  ;;  %11810 = vxpose.xlu1.b32.cont [3/16] (narrow) %v11762_v40, 8  ;;  %v11531_v52 = vpop.f32.mrb[59].mxu1  ;;  %v11735_v42 = vmul.f32 0.01, %v11671_v56  ;;  %vm11703_vm13 = vcmp.gt.f32.partialorder %v11671_v56, 0.0 }
 0x877   : > { %v11633_v45 = vmul.f32 %v19202_v55, %v11531_v52  ;;  %v11734_v6 = vmul.f32 0.01, %v11670_v10  ;;  %vm11702_vm11 = vcmp.gt.f32.partialorder %v11670_v10, 0.0 }
 0x878   : > { %v19262_v58 = vadd.f32 %v19208_v21, %v11634_v23  ;;  %v11767_v8 = vsel %vm11703_vm13, %v11671_v56, %v11735_v42 }
 0x879   : > { %v11672_v35 = vadd.f32 %v19208_v21, %v11633_v45  ;;  %v15076_v2 = vpop.f32.mrb[60].mxu1  ;;  %v11766_v9 = vsel %vm11702_vm11, %v11670_v10, %v11734_v6 }
 0x87a   : > { %v11636_v46 = vmul.f32 %v15076_v2, %v19202_v55  ;;  %11787 = vxpose.xlu0.b32.cont [12/16] (narrow) %v11755_v39, 8  ;;  %11811 = vxpose.xlu1.b32.cont [4/16] (narrow) %v11763_v4, 8  ;;  %v11541_v27 = vpop.f32.mrb[61].mxu1  ;;  %vm11705_vm15 = vcmp.gt.f32.partialorder %v19262_v58, 0.0 }
 0x87b   : > { %v11635_v12 = vmul.f32 %v19202_v55, %v11541_v27  ;;  %v11736_v34 = vmul.f32 0.01, %v11672_v35  ;;  %vm11704_vm14 = vcmp.gt.f32.partialorder %v11672_v35, 0.0 }
 0x87c   : > { %v11675_v18 = vadd.f32 %v19208_v21, %v11636_v46 }
 0x87d   : > { %v11674_v22 = vadd.f32 %v19208_v21, %v11635_v12  ;;  %v15079_v17 = vpop.f32.mrb[62].mxu1  ;;  %v11768_v15 = vsel %vm11704_vm14, %v11672_v35, %v11736_v34 }
 0x87e   : > { %v11638_v33 = vmul.f32 %v15079_v17, %v19202_v55  ;;  %11788 = vxpose.xlu0.b32.cont [13/16] (narrow) %v11756_v3, 8  ;;  %11812 = vxpose.xlu1.b32.cont [5/16] (narrow) %v11764_v31, 8  ;;  %v11551_v30 = vpop.f32.mrb[63].mxu1  ;;  %v11739_v60 = vmul.f32 0.01, %v11675_v18  ;;  %vm11707_vm2 = vcmp.gt.f32.partialorder %v11675_v18, 0.0 }
 0x87f   : > { %v11637_v54 = vmul.f32 %v19202_v55, %v11551_v30  ;;  %v11738_v29 = vmul.f32 0.01, %v11674_v22  ;;  %vm11706_vm1 = vcmp.gt.f32.partialorder %v11674_v22, 0.0 }
 0x880   : > { %v11677_v37 = vadd.f32 %v19208_v21, %v11638_v33  ;;  %v11771_v57 = vsel %vm11707_vm2, %v11675_v18, %v11739_v60 }
 0x881   : > { %v11676_v49 = vadd.f32 %v19208_v21, %v11637_v54  ;;  %v15082_v44 = vpop.f32.mrb[64].mxu1  ;;  %v11770_v47 = vsel %vm11706_vm1, %v11674_v22, %v11738_v29 }
 0x882   : > { %v11640_v11 = vmul.f32 %v15082_v44, %v19202_v55  ;;  %11789 = vxpose.xlu0.b32.cont [14/16] (narrow) %v11757_v63, 8  ;;  %11813 = vxpose.xlu1.b32.cont [6/16] (narrow) %v11765_v1, 8  ;;  %v11561_v51 = vpop.f32.mrb[65].mxu1  ;;  %v11741_v38 = vmul.f32 0.01, %v11677_v37  ;;  %vm11709_vm4 = vcmp.gt.f32.partialorder %v11677_v37, 0.0 }
 0x883   : > { %v11639_v13 = vmul.f32 %v19202_v55, %v11561_v51  ;;  %v11737_v55 = vmul.f32 0.01, %v19262_v58  ;;  %v11740_v50 = vmul.f32 0.01, %v11676_v49  ;;  %vm11708_vm3 = vcmp.gt.f32.partialorder %v11676_v49, 0.0 }
 0x884   : > { %v11679_v62 = vadd.f32 %v19208_v21, %v11640_v11  ;;  %v11773_v40 = vsel %vm11709_vm4, %v11677_v37, %v11741_v38 }
 0x885   : > { %v11678_v0 = vadd.f32 %v19208_v21, %v11639_v13  ;;  %v11769_v21 = vsel %vm11705_vm15, %v19262_v58, %v11737_v55  ;;  %v11772_v7 = vsel %vm11708_vm3, %v11676_v49, %v11740_v50 }
 0x886   : > { %11790 = vxpose.xlu0.b32.cont [15/16] (narrow) %v11758_v59, 8  ;;  %11814 = vxpose.xlu1.b32.cont [7/16] (narrow) %v11766_v9, 8  ;;  %v11743_v52 = vmul.f32 0.01, %v11679_v62  ;;  %vm11711_vm6 = vcmp.gt.f32.partialorder %v11679_v62, 0.0 }
 0x887   : > { %v11742_v53 = vmul.f32 0.01, %v11678_v0  ;;  %vm11710_vm5 = vcmp.gt.f32.partialorder %v11678_v0, 0.0 }
 0x888   : > { %v11775_v14 = vsel %vm11711_vm6, %v11679_v62, %v11743_v52 }
 0x889   : > { %v11774_v23 = vsel %vm11710_vm5, %v11678_v0, %v11742_v53 }
 0x88a   : > { %11791 = vxpose.xlu0.b32.end [16/16] (narrow) %v11759_v36, 8  ;;  %11815 = vxpose.xlu1.b32.cont [8/16] (narrow) %v11767_v8, 8 }
 0x88e   : > { %11816 = vxpose.xlu1.b32.cont [9/16] (narrow) %v11768_v15, 8 }
 0x892   : > { %11817 = vxpose.xlu1.b32.cont [10/16] (narrow) %v11769_v21, 8 }
 0x896   : > { %11818 = vxpose.xlu1.b32.cont [11/16] (narrow) %v11770_v47, 8 }
 0x89a   : > { %11819 = vxpose.xlu1.b32.cont [12/16] (narrow) %v11771_v57, 8 }
 0x89e   : > { %11820 = vxpose.xlu1.b32.cont [13/16] (narrow) %v11772_v7, 8 }
 0x8a2   : > { %11821 = vxpose.xlu1.b32.cont [14/16] (narrow) %v11773_v40, 8 }
 0x8a6   : > { %11822 = vxpose.xlu1.b32.cont [15/16] (narrow) %v11774_v23, 8 }
 0x8aa   : > { %11823 = vxpose.xlu1.b32.end [16/16] (narrow) %v11775_v14, 8 }
 0x8ce   : > { %v11792_v45 = vpop.trf.xlu0 }
 0x8cf   : > { %11840 = vst [vmem:[%s430_s18] sm:$0xff] %v11792_v45 }
 0x8ee   : > { %v11824_v39 = vpop.trf.xlu1 }
 0x8ef   : > { %11841 = vst [vmem:[%s430_s18 + $0x8] sm:$0xff] %v11824_v39 }
 0x8f0 PF: > { %s22_s21 = sadd.s32 1, %s15919_s21  }
 0x8f1   : > { %p19_p4 = scmp.ge.s32.totalorder %s22_s21, 4  }
 0x8f3   :  { %21 = sbr.rel (!%p19_p4) target bundleno = 1 (0x1), region = 131 }

</bundles_post_ra>
